<compile_context>
chip_gen: v7x
topology: tpu7x:2x2x1
jax: 0.10.0
libtpu: 0.0.40
codegen_flags: <defaults>
</compile_context>

<pallas_src>
import functools

import jax
import jax.numpy as jnp
from jax.experimental import pallas as pl
from jax.experimental.pallas import tpu as pltpu

# Full-f32 MXU precision so the f32 kernel path and the f32 XLA reference
# agree tightly.  The production fast path uses bf16 MXU operands
# (compute_dtype=jnp.bfloat16), where this flag is irrelevant.
jax.config.update("jax_default_matmul_precision", "highest")

_LANE = 128     # TPU lane width: channel / class dims are padded to this
_NEG = -1e30    # "minus infinity" for the max-pool time mask


def _round_up(x, m):
    return (x + m - 1) // m * m


def _textcnn_kernel(x_ref, wconv_ref, scale_ref, shift_ref, mask_ref,
                    w1_ref, b1_ref, w2_ref, b2_ref, out_ref, *, tb, seq_len):
    """One batch tile of the fused TextCNN forward.

    Rows of x_ref are TIME-MAJOR within the tile: row = t * TB + b.

    x_ref     : (T*TB, E)        activations (f32 or bf16)
    wconv_ref : (K_max*E, C_pad) fused im2col conv weight, all branches
    scale_ref : (1, C_pad)  f32  BN gamma / sqrt(var + eps)     (0 in pad cols)
    shift_ref : (1, C_pad)  f32  BN beta + (conv_b - mean) * scale
    mask_ref  : (T*TB, C_pad) f32  0 where t < Lout_i, -1e30 otherwise
    w1_ref    : (C_pad, H)       fc1 weight (rows >= sum_C are zero)
    b1_ref    : (1, H)      f32
    w2_ref    : (H, O_pad)       fc2 weight (cols >= num_class are zero)
    b2_ref    : (1, O_pad)  f32
    out_ref   : (TB, O_pad) f32
    """
    xs = x_ref[...]                                     # (T*TB, E)
    e = xs.shape[1]
    k_max = wconv_ref.shape[0] // e

    # --- im2col with K_max taps -------------------------------------------
    # Tap k needs x[b, t+k], which (time-major rows) lives k*TB rows below —
    # an 8-row-aligned sublane shift.  Rows that wrap past the tile end only
    # ever feed zero weight rows (taps >= K_i) or time positions masked to
    # -inf below, so the wrap-around filler is harmless.
    taps = [xs]
    for k in range(1, k_max):
        s = k * tb
        taps.append(jnp.concatenate([xs[s:], xs[:s]], axis=0))
    xcat = jnp.concatenate(taps, axis=1)                # (T*TB, K_max*E)

    # --- all conv branches as ONE lane-dense MXU matmul ---------------------
    y = jnp.dot(xcat, wconv_ref[...],
                preferred_element_type=jnp.float32)     # (T*TB, C_pad) f32
    # Folded conv-bias + BatchNorm(eval) + ReLU (f32 VPU), then the -inf time
    # mask so invalid positions cannot win the max-pool.
    y = jnp.maximum(y * scale_ref[...] + shift_ref[...], 0.0) + mask_ref[...]

    # --- AdaptiveMaxPool1d(1): max over time --------------------------------
    # Tree of pairwise maxes over aligned (TB, C_pad) time blocks: pure 2-D
    # VPU work, no unaligned slices.
    blocks = [y[t * tb:(t + 1) * tb, :] for t in range(seq_len)]
    while len(blocks) > 1:
        nxt = [jnp.maximum(a, b) for a, b in zip(blocks[0::2], blocks[1::2])]
        if len(blocks) % 2:
            nxt.append(blocks[-1])
        blocks = nxt
    feat = blocks[0]                                    # (TB, C_pad) f32

    # --- FC head: Linear -> ReLU -> Linear ----------------------------------
    z = jnp.dot(feat.astype(w1_ref.dtype), w1_ref[...],
                preferred_element_type=jnp.float32) + b1_ref[...]
    z = jnp.maximum(z, 0.0)
    out = jnp.dot(z.astype(w2_ref.dtype), w2_ref[...],
                  preferred_element_type=jnp.float32) + b2_ref[...]
    # TODO(synk): nn.Dropout(p=0.2) is identity at inference time; not applied.
    out_ref[...] = out.astype(out_ref.dtype)


class TextCNNPallas:
    """JAX / Pallas port of the PyTorch TextCNN module (inference forward)."""

    BN_EPS = 1e-5
    FC_HIDDEN = 256

    def __init__(self, kernel_sizes, num_channels, embed_size, num_class, key,
                 dropout=0.2):
        assert len(kernel_sizes) == len(num_channels)
        self.kernel_sizes = tuple(int(k) for k in kernel_sizes)
        self.num_channels = tuple(int(c) for c in num_channels)
        self.embed_size = int(embed_size)
        self.num_class = int(num_class)
        self.dropout = dropout  # inference: no-op

        E = self.embed_size
        n = len(self.kernel_sizes)
        keys = iter(jax.random.split(key, 6 * n + 4))

        def u(k, shape, lim):
            return jax.random.uniform(k, shape, jnp.float32, -lim, lim)

        # Per-branch params (PyTorch layouts): Conv1d weight (C, E, K), bias
        # (C,), BatchNorm1d gamma/beta/running_mean/running_var (C,).
        self.branches = []
        for K, C in zip(self.kernel_sizes, self.num_channels):
            lim = 1.0 / jnp.sqrt(E * K)
            conv_w = u(next(keys), (C, E, K), lim)
            conv_b = u(next(keys), (C,), lim)
            gamma = 1.0 + 0.1 * jax.random.normal(next(keys), (C,), jnp.float32)
            beta = 0.1 * jax.random.normal(next(keys), (C,), jnp.float32)
            run_mean = 0.1 * jax.random.normal(next(keys), (C,), jnp.float32)
            run_var = jax.random.uniform(next(keys), (C,), jnp.float32, 0.5, 1.5)
            self.branches.append(
                (K, C, conv_w, conv_b, gamma, beta, run_mean, run_var))

        sum_c = sum(self.num_channels)
        lim1 = 1.0 / jnp.sqrt(sum_c)
        lim2 = 1.0 / jnp.sqrt(self.FC_HIDDEN)
        self.fc1_w = u(next(keys), (self.FC_HIDDEN, sum_c), lim1)   # (out, in)
        self.fc1_b = u(next(keys), (self.FC_HIDDEN,), lim1)
        self.fc2_w = u(next(keys), (self.num_class, self.FC_HIDDEN), lim2)
        self.fc2_b = u(next(keys), (self.num_class,), lim2)

    # ---- host-side parameter folding / padding -----------------------------
    def _fused_params(self, compute_dtype):
        E = self.embed_size
        K_max = max(self.kernel_sizes)
        sum_c = sum(self.num_channels)
        Cp = _round_up(sum_c, _LANE)            # fused channel dim, lane-dense
        Op = _round_up(self.num_class, _LANE)   # lane-dense output
        H = self.FC_HIDDEN

        wconv = jnp.zeros((K_max * E, Cp), jnp.float32)
        scale = jnp.zeros((1, Cp), jnp.float32)
        shift = jnp.zeros((1, Cp), jnp.float32)
        off = 0
        for (K, C, conv_w, conv_b, gamma, beta, rm, rv) in self.branches:
            # im2col weight: row index = k*E + e, col = out-channel.
            w_mat = jnp.transpose(conv_w, (2, 1, 0)).reshape(K * E, C)
            wconv = wconv.at[:K * E, off:off + C].set(w_mat)   # taps >= K stay 0
            s = gamma / jnp.sqrt(rv + self.BN_EPS)
            scale = scale.at[0, off:off + C].set(s)
            shift = shift.at[0, off:off + C].set(beta + (conv_b - rm) * s)
            off += C

        w1 = jnp.zeros((Cp, H), jnp.float32).at[:sum_c, :].set(self.fc1_w.T)
        b1 = self.fc1_b.reshape(1, H).astype(jnp.float32)
        w2 = jnp.zeros((H, Op), jnp.float32).at[:, :self.num_class].set(self.fc2_w.T)
        b2 = jnp.zeros((1, Op), jnp.float32).at[0, :self.num_class].set(self.fc2_b)

        return (wconv.astype(compute_dtype), scale, shift,
                w1.astype(compute_dtype), b1,
                w2.astype(compute_dtype), b2, K_max, Cp, Op)

    def _time_mask(self, T, Cp, tb):
        """(T*TB, Cp) mask: 0 for valid time steps of each branch, -1e30 else."""
        mask = jnp.zeros((T, Cp), jnp.float32)
        off = 0
        for (K, C, *_rest) in self.branches:
            lout = T - K + 1
            mask = mask.at[lout:, off:off + C].set(_NEG)
            off += C
        # pad channels keep mask 0 (their conv output is exactly 0 -> feat 0)
        return jnp.repeat(mask, tb, axis=0)      # row = t*TB + b

    # ---- forward ------------------------------------------------------------
    def __call__(self, inputs, compute_dtype=jnp.float32, batch_tile=8):
        assert inputs.shape[2] == self.embed_size
        B, T, E = inputs.shape
        assert max(self.kernel_sizes) <= T

        TB = batch_tile
        B_pad = _round_up(B, TB)
        x = inputs.astype(jnp.float32)
        if B_pad != B:
            x = jnp.concatenate(
                [x, jnp.zeros((B_pad - B, T, E), jnp.float32)], axis=0)
        n_steps = B_pad // TB

        # Time-major rows within each batch tile: row = t*TB + b  ->  the conv
        # tap shifts inside the kernel become 8-row-aligned sublane shifts.
        x2 = (x.reshape(n_steps, TB, T, E)
                .transpose(0, 2, 1, 3)
                .reshape(n_steps * T * TB, E)
                .astype(compute_dtype))

        (wconv, scale, shift, w1, b1, w2, b2,
         _K_max, Cp, Op) = self._fused_params(compute_dtype)
        mask = self._time_mask(T, Cp, TB)

        kernel = functools.partial(_textcnn_kernel, tb=TB, seq_len=T)

        def resident(a):   # full-array block, constant index -> VMEM-resident
            return pl.BlockSpec(a.shape, lambda i: (0,) * a.ndim)

        # NOTE: if the x-tile DMA were ever exposed at larger shapes, bump the
        # input pipeline depth with pipeline_mode=pl.Buffered(3) on the x spec.
        out = pl.pallas_call(
            kernel,
            out_shape=jax.ShapeDtypeStruct((B_pad, Op), jnp.float32),
            grid=(n_steps,),
            in_specs=[
                pl.BlockSpec((TB * T, E), lambda i: (i, 0)),   # x tile (pipelined)
                resident(wconv), resident(scale), resident(shift), resident(mask),
                resident(w1), resident(b1), resident(w2), resident(b2),
            ],
            out_specs=pl.BlockSpec((TB, Op), lambda i: (i, 0)),
            compiler_params=pltpu.CompilerParams(
                # Independent batch tiles -> the two v7x TensorCores each take
                # half the grid; harmless on single-TC v5e/v6e.
                dimension_semantics=("parallel",),
                # Explicit budget (re-derived for v7x's 64 MiB VMEM); the
                # per-step working set here is well under 1 MiB.
                vmem_limit_bytes=32 * 1024 * 1024,
            ),
        )(x2, wconv, scale, shift, mask, w1, b1, w2, b2)

        return out[:B, :self.num_class]


# ----------------------------------------------------------------------------
# Pure-JAX reference mirroring the PyTorch forward (inference mode).
# ----------------------------------------------------------------------------
def _ref_forward(model, inputs):
    x = inputs.astype(jnp.float32)
    B, T, E = x.shape
    feats = []
    for (K, C, conv_w, conv_b, gamma, beta, rm, rv) in model.branches:
        Lout = T - K + 1
        y = jnp.zeros((B, C, Lout), jnp.float32)
        for k in range(K):
            y = y + jnp.einsum("ble,oe->bol", x[:, k:k + Lout, :], conv_w[:, :, k])
        y = y + conv_b[None, :, None]
        y = (y - rm[None, :, None]) / jnp.sqrt(rv[None, :, None] + model.BN_EPS)
        y = y * gamma[None, :, None] + beta[None, :, None]
        y = jnp.maximum(y, 0.0)
        feats.append(jnp.max(y, axis=2))
    feat = jnp.concatenate(feats, axis=1)
    z = jnp.maximum(feat @ model.fc1_w.T + model.fc1_b, 0.0)
    return z @ model.fc2_w.T + model.fc2_b


if __name__ == "__main__":
    key = jax.random.PRNGKey(0)
    k_param, k_x = jax.random.split(key)

    # Small shapes consistent with the module; B=16 so the batch grid has
    # multiple (2) steps with the default tile of 8 rows.
    B, T, E = 16, 16, 32
    kernel_sizes = (3, 4, 5)
    num_channels = (8, 8, 8)
    num_class = 5

    model = TextCNNPallas(kernel_sizes, num_channels, embed_size=E,
                          num_class=num_class, key=k_param)
    x = jax.random.normal(k_x, (B, T, E), jnp.float32)

    ref = jax.block_until_ready(_ref_forward(model, x))

    # f32 path: tight check against the f32 reference.
    out = jax.block_until_ready(model(x))
    assert out.shape == (B, num_class), out.shape
    max_err = float(jnp.max(jnp.abs(out - ref)))
    assert jnp.allclose(out, ref, rtol=2e-3, atol=2e-3), max_err

    # bf16 MXU-operand path (production fast path on v6e/v7x): looser check,
    # since MXU operands are rounded to bf16.
    out_bf16 = jax.block_until_ready(model(x, compute_dtype=jnp.bfloat16))
    assert out_bf16.shape == (B, num_class), out_bf16.shape
    max_err_bf16 = float(jnp.max(jnp.abs(out_bf16 - ref)))
    assert max_err_bf16 < 0.2, max_err_bf16

    print("KERNEL_OK")
</pallas_src>

<mosaic_0001>
module attributes {stable_mosaic.version = 11 : i64} {
  func.func @_textcnn_kernel(%arg0: i32, %arg1: memref<128x32xf32, #tpu.memory_space<vmem>>, %arg2: memref<160x128xf32, #tpu.memory_space<vmem>>, %arg3: memref<1x128xf32, #tpu.memory_space<vmem>>, %arg4: memref<1x128xf32, #tpu.memory_space<vmem>>, %arg5: memref<128x128xf32, #tpu.memory_space<vmem>>, %arg6: memref<128x256xf32, #tpu.memory_space<vmem>>, %arg7: memref<1x256xf32, #tpu.memory_space<vmem>>, %arg8: memref<256x128xf32, #tpu.memory_space<vmem>>, %arg9: memref<1x128xf32, #tpu.memory_space<vmem>>, %arg10: memref<8x128xf32, #tpu.memory_space<vmem>>) attributes {dimension_semantics = [#tpu.dimension_semantics<parallel>], iteration_bounds = array<i64: 2>, scalar_prefetch = 0 : i64, scratch_operands = 0 : i64, tpu.core_type = #tpu.core_type<tc>, window_params = [{transform_indices = @transform_0, window_bounds = array<i64: 128, 32>}, {pipeline_mode = #tpu.pipeline_mode<synchronous>, transform_indices = @transform_1, window_bounds = array<i64: 160, 128>}, {pipeline_mode = #tpu.pipeline_mode<synchronous>, transform_indices = @transform_2, window_bounds = array<i64: 1, 128>}, {pipeline_mode = #tpu.pipeline_mode<synchronous>, transform_indices = @transform_3, window_bounds = array<i64: 1, 128>}, {pipeline_mode = #tpu.pipeline_mode<synchronous>, transform_indices = @transform_4, window_bounds = array<i64: 128, 128>}, {pipeline_mode = #tpu.pipeline_mode<synchronous>, transform_indices = @transform_5, window_bounds = array<i64: 128, 256>}, {pipeline_mode = #tpu.pipeline_mode<synchronous>, transform_indices = @transform_6, window_bounds = array<i64: 1, 256>}, {pipeline_mode = #tpu.pipeline_mode<synchronous>, transform_indices = @transform_7, window_bounds = array<i64: 256, 128>}, {pipeline_mode = #tpu.pipeline_mode<synchronous>, transform_indices = @transform_8, window_bounds = array<i64: 1, 128>}, {transform_indices = @transform_9, window_bounds = array<i64: 8, 128>}]} {
    %c0 = arith.constant 0 : index
    %c0_0 = arith.constant 0 : index
    %0 = vector.load %arg1[%c0, %c0_0] : memref<128x32xf32, #tpu.memory_space<vmem>>, vector<128x32xf32>
    %1 = vector.extract_strided_slice %0 {offsets = [8, 0], sizes = [120, 32], strides = [1, 1]} : vector<128x32xf32> to vector<120x32xf32>
    %2 = vector.extract_strided_slice %0 {offsets = [0, 0], sizes = [8, 32], strides = [1, 1]} : vector<128x32xf32> to vector<8x32xf32>
    %3 = tpu.concatenate %1, %2 in 0 : vector<120x32xf32>, vector<8x32xf32> -> vector<128x32xf32>
    %4 = vector.extract_strided_slice %0 {offsets = [16, 0], sizes = [112, 32], strides = [1, 1]} : vector<128x32xf32> to vector<112x32xf32>
    %5 = vector.extract_strided_slice %0 {offsets = [0, 0], sizes = [16, 32], strides = [1, 1]} : vector<128x32xf32> to vector<16x32xf32>
    %6 = tpu.concatenate %4, %5 in 0 : vector<112x32xf32>, vector<16x32xf32> -> vector<128x32xf32>
    %7 = vector.extract_strided_slice %0 {offsets = [24, 0], sizes = [104, 32], strides = [1, 1]} : vector<128x32xf32> to vector<104x32xf32>
    %8 = vector.extract_strided_slice %0 {offsets = [0, 0], sizes = [24, 32], strides = [1, 1]} : vector<128x32xf32> to vector<24x32xf32>
    %9 = tpu.concatenate %7, %8 in 0 : vector<104x32xf32>, vector<24x32xf32> -> vector<128x32xf32>
    %10 = vector.extract_strided_slice %0 {offsets = [32, 0], sizes = [96, 32], strides = [1, 1]} : vector<128x32xf32> to vector<96x32xf32>
    %11 = vector.extract_strided_slice %0 {offsets = [0, 0], sizes = [32, 32], strides = [1, 1]} : vector<128x32xf32> to vector<32x32xf32>
    %12 = tpu.concatenate %10, %11 in 0 : vector<96x32xf32>, vector<32x32xf32> -> vector<128x32xf32>
    %13 = tpu.concatenate %0, %3, %6, %9, %12 in 1 : vector<128x32xf32>, vector<128x32xf32>, vector<128x32xf32>, vector<128x32xf32>, vector<128x32xf32> -> vector<128x160xf32>
    %c0_1 = arith.constant 0 : index
    %c0_2 = arith.constant 0 : index
    %14 = vector.load %arg2[%c0_1, %c0_2] : memref<160x128xf32, #tpu.memory_space<vmem>>, vector<160x128xf32>
    %cst = arith.constant dense<0.000000e+00> : vector<128x128xf32>
    %15 = tpu.matmul %13, %14, %cst {dimension_numbers = #tpu.dot_dimension_numbers<[1], [0], [0], [1], [0, 0, 1, 1], [], []>, precision = #tpu.contract_precision<fp32>} : vector<128x160xf32>, vector<160x128xf32>, vector<128x128xf32> -> vector<128x128xf32>
    %c0_3 = arith.constant 0 : index
    %c0_4 = arith.constant 0 : index
    %16 = vector.load %arg3[%c0_3, %c0_4] : memref<1x128xf32, #tpu.memory_space<vmem>>, vector<1x128xf32>
    %17 = vector.broadcast %16 : vector<1x128xf32> to vector<128x128xf32>
    %18 = arith.mulf %15, %17 : vector<128x128xf32>
    %c0_5 = arith.constant 0 : index
    %c0_6 = arith.constant 0 : index
    %19 = vector.load %arg4[%c0_5, %c0_6] : memref<1x128xf32, #tpu.memory_space<vmem>>, vector<1x128xf32>
    %20 = vector.broadcast %19 : vector<1x128xf32> to vector<128x128xf32>
    %21 = arith.addf %18, %20 : vector<128x128xf32>
    %cst_7 = arith.constant 0.000000e+00 : f32
    %22 = vector.broadcast %cst_7 : f32 to vector<128x128xf32>
    %23 = arith.maximumf %21, %22 : vector<128x128xf32>
    %c0_8 = arith.constant 0 : index
    %c0_9 = arith.constant 0 : index
    %24 = vector.load %arg5[%c0_8, %c0_9] : memref<128x128xf32, #tpu.memory_space<vmem>>, vector<128x128xf32>
    %25 = arith.addf %23, %24 : vector<128x128xf32>
    %26 = vector.extract_strided_slice %25 {offsets = [0, 0], sizes = [8, 128], strides = [1, 1]} : vector<128x128xf32> to vector<8x128xf32>
    %27 = vector.extract_strided_slice %25 {offsets = [8, 0], sizes = [8, 128], strides = [1, 1]} : vector<128x128xf32> to vector<8x128xf32>
    %28 = vector.extract_strided_slice %25 {offsets = [16, 0], sizes = [8, 128], strides = [1, 1]} : vector<128x128xf32> to vector<8x128xf32>
    %29 = vector.extract_strided_slice %25 {offsets = [24, 0], sizes = [8, 128], strides = [1, 1]} : vector<128x128xf32> to vector<8x128xf32>
    %30 = vector.extract_strided_slice %25 {offsets = [32, 0], sizes = [8, 128], strides = [1, 1]} : vector<128x128xf32> to vector<8x128xf32>
    %31 = vector.extract_strided_slice %25 {offsets = [40, 0], sizes = [8, 128], strides = [1, 1]} : vector<128x128xf32> to vector<8x128xf32>
    %32 = vector.extract_strided_slice %25 {offsets = [48, 0], sizes = [8, 128], strides = [1, 1]} : vector<128x128xf32> to vector<8x128xf32>
    %33 = vector.extract_strided_slice %25 {offsets = [56, 0], sizes = [8, 128], strides = [1, 1]} : vector<128x128xf32> to vector<8x128xf32>
    %34 = vector.extract_strided_slice %25 {offsets = [64, 0], sizes = [8, 128], strides = [1, 1]} : vector<128x128xf32> to vector<8x128xf32>
    %35 = vector.extract_strided_slice %25 {offsets = [72, 0], sizes = [8, 128], strides = [1, 1]} : vector<128x128xf32> to vector<8x128xf32>
    %36 = vector.extract_strided_slice %25 {offsets = [80, 0], sizes = [8, 128], strides = [1, 1]} : vector<128x128xf32> to vector<8x128xf32>
    %37 = vector.extract_strided_slice %25 {offsets = [88, 0], sizes = [8, 128], strides = [1, 1]} : vector<128x128xf32> to vector<8x128xf32>
    %38 = vector.extract_strided_slice %25 {offsets = [96, 0], sizes = [8, 128], strides = [1, 1]} : vector<128x128xf32> to vector<8x128xf32>
    %39 = vector.extract_strided_slice %25 {offsets = [104, 0], sizes = [8, 128], strides = [1, 1]} : vector<128x128xf32> to vector<8x128xf32>
    %40 = vector.extract_strided_slice %25 {offsets = [112, 0], sizes = [8, 128], strides = [1, 1]} : vector<128x128xf32> to vector<8x128xf32>
    %41 = vector.extract_strided_slice %25 {offsets = [120, 0], sizes = [8, 128], strides = [1, 1]} : vector<128x128xf32> to vector<8x128xf32>
    %42 = arith.maximumf %26, %27 : vector<8x128xf32>
    %43 = arith.maximumf %28, %29 : vector<8x128xf32>
    %44 = arith.maximumf %30, %31 : vector<8x128xf32>
    %45 = arith.maximumf %32, %33 : vector<8x128xf32>
    %46 = arith.maximumf %34, %35 : vector<8x128xf32>
    %47 = arith.maximumf %36, %37 : vector<8x128xf32>
    %48 = arith.maximumf %38, %39 : vector<8x128xf32>
    %49 = arith.maximumf %40, %41 : vector<8x128xf32>
    %50 = arith.maximumf %42, %43 : vector<8x128xf32>
    %51 = arith.maximumf %44, %45 : vector<8x128xf32>
    %52 = arith.maximumf %46, %47 : vector<8x128xf32>
    %53 = arith.maximumf %48, %49 : vector<8x128xf32>
    %54 = arith.maximumf %50, %51 : vector<8x128xf32>
    %55 = arith.maximumf %52, %53 : vector<8x128xf32>
    %56 = arith.maximumf %54, %55 : vector<8x128xf32>
    %c0_10 = arith.constant 0 : index
    %c0_11 = arith.constant 0 : index
    %57 = vector.load %arg6[%c0_10, %c0_11] : memref<128x256xf32, #tpu.memory_space<vmem>>, vector<128x256xf32>
    %cst_12 = arith.constant dense<0.000000e+00> : vector<8x256xf32>
    %58 = tpu.matmul %56, %57, %cst_12 {dimension_numbers = #tpu.dot_dimension_numbers<[1], [0], [0], [1], [0, 0, 1, 1], [], []>, precision = #tpu.contract_precision<fp32>} : vector<8x128xf32>, vector<128x256xf32>, vector<8x256xf32> -> vector<8x256xf32>
    %c0_13 = arith.constant 0 : index
    %c0_14 = arith.constant 0 : index
    %59 = vector.load %arg7[%c0_13, %c0_14] : memref<1x256xf32, #tpu.memory_space<vmem>>, vector<1x256xf32>
    %60 = vector.broadcast %59 : vector<1x256xf32> to vector<8x256xf32>
    %61 = arith.addf %58, %60 : vector<8x256xf32>
    %cst_15 = arith.constant 0.000000e+00 : f32
    %62 = vector.broadcast %cst_15 : f32 to vector<8x256xf32>
    %63 = arith.maximumf %61, %62 : vector<8x256xf32>
    %c0_16 = arith.constant 0 : index
    %c0_17 = arith.constant 0 : index
    %64 = vector.load %arg8[%c0_16, %c0_17] : memref<256x128xf32, #tpu.memory_space<vmem>>, vector<256x128xf32>
    %cst_18 = arith.constant dense<0.000000e+00> : vector<8x128xf32>
    %65 = tpu.matmul %63, %64, %cst_18 {dimension_numbers = #tpu.dot_dimension_numbers<[1], [0], [0], [1], [0, 0, 1, 1], [], []>, precision = #tpu.contract_precision<fp32>} : vector<8x256xf32>, vector<256x128xf32>, vector<8x128xf32> -> vector<8x128xf32>
    %c0_19 = arith.constant 0 : index
    %c0_20 = arith.constant 0 : index
    %66 = vector.load %arg9[%c0_19, %c0_20] : memref<1x128xf32, #tpu.memory_space<vmem>>, vector<1x128xf32>
    %67 = vector.broadcast %66 : vector<1x128xf32> to vector<8x128xf32>
    %68 = arith.addf %65, %67 : vector<8x128xf32>
    %c0_21 = arith.constant 0 : index
    %c0_22 = arith.constant 0 : index
    %69 = vector.load %arg10[%c0_21, %c0_22] : memref<8x128xf32, #tpu.memory_space<vmem>>, vector<8x128xf32>
    tpu.vector_store %arg10[%c0_21, %c0_22], %68 {strides = array<i32>} : memref<8x128xf32, #tpu.memory_space<vmem>>, vector<8x128xf32>,
    return
  }
  func.func @transform_0(%arg0: i32) -> (i32, i32) {
    %c0_i32 = arith.constant 0 : i32
    %c0_i32_0 = arith.constant 0 : i32
    return %arg0, %c0_i32 : i32, i32
  }
  func.func @transform_1(%arg0: i32) -> (i32, i32) {
    %c0_i32 = arith.constant 0 : i32
    %c0_i32_0 = arith.constant 0 : i32
    %c0_i32_1 = arith.constant 0 : i32
    return %c0_i32, %c0_i32_0 : i32, i32
  }
  func.func @transform_2(%arg0: i32) -> (i32, i32) {
    %c0_i32 = arith.constant 0 : i32
    %c0_i32_0 = arith.constant 0 : i32
    %c0_i32_1 = arith.constant 0 : i32
    return %c0_i32, %c0_i32_0 : i32, i32
  }
  func.func @transform_3(%arg0: i32) -> (i32, i32) {
    %c0_i32 = arith.constant 0 : i32
    %c0_i32_0 = arith.constant 0 : i32
    %c0_i32_1 = arith.constant 0 : i32
    return %c0_i32, %c0_i32_0 : i32, i32
  }
  func.func @transform_4(%arg0: i32) -> (i32, i32) {
    %c0_i32 = arith.constant 0 : i32
    %c0_i32_0 = arith.constant 0 : i32
    %c0_i32_1 = arith.constant 0 : i32
    return %c0_i32, %c0_i32_0 : i32, i32
  }
  func.func @transform_5(%arg0: i32) -> (i32, i32) {
    %c0_i32 = arith.constant 0 : i32
    %c0_i32_0 = arith.constant 0 : i32
    %c0_i32_1 = arith.constant 0 : i32
    return %c0_i32, %c0_i32_0 : i32, i32
  }
  func.func @transform_6(%arg0: i32) -> (i32, i32) {
    %c0_i32 = arith.constant 0 : i32
    %c0_i32_0 = arith.constant 0 : i32
    %c0_i32_1 = arith.constant 0 : i32
    return %c0_i32, %c0_i32_0 : i32, i32
  }
  func.func @transform_7(%arg0: i32) -> (i32, i32) {
    %c0_i32 = arith.constant 0 : i32
    %c0_i32_0 = arith.constant 0 : i32
    %c0_i32_1 = arith.constant 0 : i32
    return %c0_i32, %c0_i32_0 : i32, i32
  }
  func.func @transform_8(%arg0: i32) -> (i32, i32) {
    %c0_i32 = arith.constant 0 : i32
    %c0_i32_0 = arith.constant 0 : i32
    %c0_i32_1 = arith.constant 0 : i32
    return %c0_i32, %c0_i32_0 : i32, i32
  }
  func.func @transform_9(%arg0: i32) -> (i32, i32) {
    %c0_i32 = arith.constant 0 : i32
    %c0_i32_0 = arith.constant 0 : i32
    return %arg0, %c0_i32 : i32, i32
  }
}

</mosaic_0001>

<bundles_post_ra>
// kernel: tpu_custom_call.1
= control target key start
LH: loop header
LB: loop body
LE: loop exit
PB: predicated region body
PF: predicated region fallthrough
CT: control target
= control target key end

     0   :  { %14 = vsyncpa [#allocation3], 0  ;;  %s7984_s0 = inlined_call_operand.vmem [shape: f32[256,32], index: 0, kind: input, shape index: {}]   ;;  %s7985_s1 = inlined_call_operand.hbm [shape: f32[160,128], index: 1, kind: input, shape index: {}]   ;;  %s7986_s2 = inlined_call_operand.vmem [shape: f32[1,128], index: 2, kind: input, shape index: {}]   ;;  %s7987_s3 = inlined_call_operand.vmem [shape: f32[1,128], index: 3, kind: input, shape index: {}]   ;;  %s7988_s4 = inlined_call_operand.hbm [shape: f32[128,128], index: 4, kind: input, shape index: {}]   ;;  %s7989_s5 = inlined_call_operand.vmem [shape: f32[128,256], index: 5, kind: input, shape index: {}]   ;;  %s7990_s6 = inlined_call_operand.vmem [shape: f32[1,256], index: 6, kind: input, shape index: {}]   ;;  %s7991_s7 = inlined_call_operand.hbm [shape: f32[256,128], index: 7, kind: input, shape index: {}]   ;;  %s7992_s8 = inlined_call_operand.vmem [shape: f32[1,128], index: 8, kind: input, shape index: {}]   ;;  %s7993_s9 = inlined_call_operand.hbm [shape: f32[16,128], index: 9, kind: output, shape index: {}]  }
   0x1   :  { %15 = vsyncpa [#allocation6], 0 }
   0x2   :  { %16 = vsyncpa [#allocation4], 0 }
   0x3   :  { %18 = vsyncpa [#allocation4 + $0x1], 0  ;;  %s5478_s30 = smov 0   ;;  %s5480_s10 = smov 0  }
   0x4   :  { %s5482_s11 = smov 0   ;;  %s5484_s12 = smov 0  }
   0x5 LB: > { %8404 = sst [smem:[#allocation12_spill]] %s5403_s30  ;;  %s5499_s13 = sadd.s32 4294967295, %s5415_s12   ;;  %s5415_s12 = sphi %s5484_s12, %s8916_s12   ;;  %s5411_s11 = sphi %s5482_s11, %s8918_s11   ;;  %s5407_s10 = sphi %s5480_s10, %s8920_s10   ;;  %s5403_s30 = sphi %s5478_s30, %s8919_s30  }
   0x6   : > { %8405 = sst [smem:[#allocation13_spill]] %s5411_s11  ;;  %s4218_s14 = sadd.s32 4294967294, %s5415_s12  }
   0x7   : > { %s5503_s15 = sadd.s32 1, %s5415_s12   ;;  %s225_s16 = sadd.s32 1, %s5411_s11 }
   0x8   : > { %8406 = sst [smem:[#allocation14_spill]] %s5503_s15  ;;  %s222_s17 = ssub.s32 %s5415_s12, %s5503_s15 }
   0x9   : > { %p235_p0 = scmp.ne.s32.totalorder %s5411_s11, %s5407_s10  ;;  %p223_p1 = scmp.eq.s32.totalorder %s222_s17, 0 }
   0xa   : > { %p236_p2 = scmp.eq.s32.totalorder %s5499_s13, 1  ;;  %p241_p3 = scmp.ne.s32.totalorder %s5407_s10, %s5403_s30 }
   0xb   : > { %p242_p4 = scmp.eq.s32.totalorder %s4218_s14, 1  ;;  %p4219_p7 = scmp.ge.s32.totalorder %s5415_s12, 1 }
   0xc   : > { %s5514_s18 = scalar_select %p223_p1, %s5411_s11, %s225_s16  }
   0xd   : > { %p5516_p5 = por %p236_p2, %p235_p0  ;;  %p5520_p6 = por %p242_p4, %p241_p3 }
   0xe   : > { %8407 = sst [smem:[#allocation15_spill]] %s5514_s18  ;;  %p249_p8 = scmp.lt.s32.totalorder %s5415_s12, 3 }
   0xf   : > { %s8408_s19 = scalar_select %p5516_p5, 1, 0 }
  0x10   : > { %s8409_s20 = scalar_select %p5520_p6, 1, 0 }
  0x11   : > { %p7994_p9 = scmp.eq.s32.totalorder %s5499_s13, 0  ;;  %p5527_p10 = pnand %p4219_p7, %p249_p8 }
  0x12   : > { %8410 = sst [smem:[#allocation16_spill]] %s8409_s20  ;;  %s5417_s22 = smov [#allocation5]  }
  0x13   : > { %s8411_s21 = scalar_select %p5527_p10, 1, 0 }
  0x14   : > { %p5198_p11 = pneg %p5527_p10  ;;  %s280_s23 = sshll.u32 %s5417_s22, 4  ;;  %s5533_s23 = int_to_ptr.vmem [resolvable:$true] %s280_s23 }
  0x15   : > { %s5418_s25 = smov [#allocation2]   ;;  %s5419_s27 = smov [#allocation7]  }
  0x16   : > { %p5537_p12 = pnand %p7994_p9, %p5198_p11  ;;  %s261_s26 = sshll.u32 %s5418_s25, 4  ;;  %s5541_s26 = int_to_ptr.vmem [resolvable:$true] %s261_s26 }
  0x17   : > { %s5543_s28 = sshll.u32 %s5419_s27, 4  ;;  %s5261_s16 = scalar_lea.hbm %s7988_s4, 2048  ;;  %s300_s28 = int_to_ptr.vmem [resolvable:$true] %s5543_s28 }
  0x18   : > { %p5262_p13 = scmp.ne.s32.totalorder %s7988_s4, %s5261_s16  ;;  %p5553_p0 = pneg %p5537_p12 }
  0x19   : > { %p5268_p3 = scmp.lt.u32.totalorder %s5261_s16, %s7988_s4 }
  0x1a   : > { %p5264_p1 = pnand %p5553_p0, %p5262_p13 }
  0x1c   : > { %p5265_p2 = pneg %p5264_p1 }
  0x1e   : > { %p5270_p4 = pnand %p5268_p3, %p5265_p2 }
  0x20   : > { %5273 = shalt.err (!%p5270_p4)
}
  0x21   : > { %s5274_s29 = scalar_lea.vmem %s5533_s23, 2048  ;;  %p5282_p9 = scmp.lt.s32.totalorder %s5533_s23, %s5533_s23 }
  0x22   : > { %p5275_p7 = scmp.ne.s32.totalorder %s5533_s23, %s5274_s29  ;;  %p5283_p6 = scmp.lt.s32.totalorder %s5274_s29, %s5274_s29 }
  0x24   : > { %p5277_p8 = pnand %p5275_p7, %p5553_p0  ;;  %p5284_p13 = por %p5283_p6, %p5282_p9 }
  0x26   : > { %p5278_p11 = pneg %p5277_p8 }
  0x28   : > { %p5285_p1 = pnand %p5284_p13, %p5278_p11 }
  0x2a   : > { %5288 = shalt.err (!%p5285_p1)
}
  0x2b   : > { %s5420_s14 = smov 128   ;;  %s5421_s16 = smov 8  }
  0x2c   : > { %5204 = dma.hbm_to_vmem [thread:$0]  (!%p5537_p12), %s7988_s4, 2048, %s5533_s23, [#allocation6], %s5420_s14, %s5420_s14, %s5421_s16  }
  0x2d   : > { %s5289_s29 = scalar_lea.hbm %s7985_s1, 2560 }
  0x2e   : > { %p5290_p6 = scmp.ne.s32.totalorder %s7985_s1, %s5289_s29  ;;  %p5296_p3 = scmp.lt.u32.totalorder %s5289_s29, %s7985_s1 }
  0x30   : > { %p5292_p9 = pnand %p5290_p6, %p5553_p0 }
  0x32   : > { %p5293_p2 = pneg %p5292_p9 }
  0x34   : > { %p5298_p4 = pnand %p5296_p3, %p5293_p2 }
  0x36   : > { %5301 = shalt.err (!%p5298_p4)
}
  0x37   : > { %s5302_s23 = scalar_lea.vmem %s5541_s26, 2560  ;;  %p5310_p13 = scmp.lt.s32.totalorder %s5541_s26, %s5541_s26 }
  0x38   : > { %p5303_p7 = scmp.ne.s32.totalorder %s5541_s26, %s5302_s23  ;;  %p5311_p1 = scmp.lt.s32.totalorder %s5302_s23, %s5302_s23 }
  0x3a   : > { %p5305_p8 = pnand %p5303_p7, %p5553_p0  ;;  %p5312_p6 = por %p5311_p1, %p5310_p13 }
  0x3c   : > { %p5306_p11 = pneg %p5305_p8 }
  0x3e   : > { %p5313_p9 = pnand %p5312_p6, %p5306_p11 }
  0x40   : > { %5316 = shalt.err (!%p5313_p9)
}
  0x41   : > { %5201 = dma.hbm_to_vmem [thread:$0]  (!%p5537_p12), %s7985_s1, 2560, %s5541_s26, [#allocation3], %s5420_s14, %s5420_s14, %s5421_s16  }
  0x42   : > { %s5317_s17 = scalar_lea.hbm %s7991_s7, 4096 }
  0x43   : > { %p5318_p2 = scmp.ne.s32.totalorder %s7991_s7, %s5317_s17  ;;  %p5324_p7 = scmp.lt.u32.totalorder %s5317_s17, %s7991_s7 }
  0x45   : > { %p5320_p3 = pnand %p5318_p2, %p5553_p0 }
  0x47   : > { %p5321_p4 = pneg %p5320_p3 }
  0x49   : > { %p5326_p8 = pnand %p5324_p7, %p5321_p4 }
  0x4b   : > { %5329 = shalt.err (!%p5326_p8)
}
  0x4c   : > { %s5330_s23 = scalar_lea.vmem %s300_s28, 4096  ;;  %p5338_p6 = scmp.lt.s32.totalorder %s300_s28, %s300_s28 }
  0x4d   : > { %p5331_p11 = scmp.ne.s32.totalorder %s300_s28, %s5330_s23  ;;  %p5339_p9 = scmp.lt.s32.totalorder %s5330_s23, %s5330_s23 }
  0x4f   : > { %p5333_p13 = pnand %p5331_p11, %p5553_p0  ;;  %p5340_p5 = por %p5339_p9, %p5338_p6 }
  0x51   : > { %p5334_p1 = pneg %p5333_p13 }
  0x53   : > { %p5341_p10 = pnand %p5340_p5, %p5334_p1 }
  0x55   : > { %5344 = shalt.err (!%p5341_p10)
}
  0x56   : > { %5207 = dma.hbm_to_vmem [thread:$0]  (!%p5537_p12), %s7991_s7, 4096, %s300_s28, [#allocation6], %s5420_s14, %s5420_s14, %s5421_s16  }
  0x57   : > { %p8414_p2 = scmp.ne.s32.totalorder %s8411_s21, 0 }
  0x59   : > { %327 = sbr.rel (%p8414_p2) target bundleno = 1665 (0x681), region = 56 }
  0x60   : > { %p8415_p0 = scmp.eq.s32.totalorder %s5499_s13, 0 }
  0x62   : > { %5390 = dma.done.wait (%p8415_p0), [#allocation3], 2560   ;;  %p8416_p3 = pmov %p8415_p0 }
  0x63   : > { %p8417_p5 = pmov %p8415_p0 }
  0x64   : > { %5392 = vsyncadd (%p8416_p3), [#allocation3], 4294964736 }
  0x65   : > { %5394 = dma.done.wait (%p8417_p5), [#allocation6], 6144   ;;  %p8418_p10 = pmov %p8415_p0 }
  0x66   : > { %s4229_s18 = sshll.u32 %s5499_s13, 4  ;;  %v8017_v0 = vmov 0.0|0.0   ;;  %s5423_s16 = smov 32   ;;  %v604_v3 = vld [vmem:[#allocation2] sm:$0xff]  ;;  %vm553_vm0 = vcmask 261120   ;;  %v605_v9 = vld [vmem:[#allocation2 + $0x8] sm:$0xff] }
  0x67   : > { %5396 = vsyncadd (%p8418_p10), [#allocation6], 4294961152  ;;  %p372_p4 = scmp.lt.s32.totalorder %s4229_s18, 31  ;;  %4448 = vmatprep.subr.bf16.mxu0 %v8017_v0  ;;  %s5424_s11 = smov 96   ;;  %v657_v6 = vand.u32 4294901760, %v604_v3  ;;  %v660_v10 = vand.u32 4294901760, %v605_v9 }
  0x68   : > { %s5425_s15 = smov 64   ;;  %v606_v11 = vld [vmem:[#allocation2 + $0x10] sm:$0xff]  ;;  %v607_v12 = vld [vmem:[#allocation2 + $0x18] sm:$0xff]  ;;  %v608_v13 = vld [vmem:[#allocation2 + $0x20] sm:$0xff]  ;;  %vm570_vm1 = vcmask 523264   ;;  %vm587_vm2 = vcmask 785408  }
  0x69   : > { %s8922_s18 = smov (!%p372_p4, %s4229_s18), 31  ;;  %v5660_v8 = vsub.f32 %v604_v3, %v657_v6  ;;  %v663_v15 = vand.u32 4294901760, %v606_v11  ;;  %v666_v16 = vand.u32 4294901760, %v607_v12  ;;  %v609_v17 = vld [vmem:[#allocation2 + $0x28] sm:$0xff]  ;;  %v669_v18 = vand.u32 4294901760, %v608_v13  ;;  %v5668_v19 = vld [vmem:[#allocation2 + $0x30] sm:$0xff] }
  0x6a   : > { %s4230_s21 = sshll.u32 %s8922_s18, 3  ;;  %v611_v20 = vld [vmem:[#allocation2 + $0x38] sm:$0xff]  ;;  %v5670_v21 = vpack.c.bf16 %v660_v10, %v657_v6  ;;  %v5672_v22 = vsub.f32 %v605_v9, %v660_v10  ;;  %v672_v23 = vand.u32 4294901760, %v609_v17  ;;  %v675_v24 = vand.u32 4294901760, %v5668_v19  ;;  %v5675_v25 = vld [vmem:[#allocation2 + $0x40] sm:$0xff]  ;;  %v5677_v26 = vld [vmem:[#allocation2 + $0x48] sm:$0xff] }
  0x6b   : > { %s5640_s14 = scalar_lea.vmem %s7984_s0, %s4230_s21  ;;  %v5683_v27 = vsub.f32 %v606_v11, %v663_v15  ;;  %v5685_v28 = vsub.f32 %v607_v12, %v666_v16  ;;  %v678_v29 = vand.u32 4294901760, %v611_v20  ;;  %v5687_v30 = vld [vmem:[#allocation2 + $0x50] sm:$0xff]  ;;  %v5689_v31 = vld [vmem:[#allocation2 + $0x58] sm:$0xff]  ;;  %v5691_v32 = vld [vmem:[#allocation2 + $0x60] sm:$0xff]  ;;  %v5694_v33 = vpack.c.bf16 %v666_v16, %v663_v15  ;;  %s368_s27 = sand.u32 1, %s5407_s10  }
  0x6c   : > { %v5643_v1 = vld [vmem:[%s5640_s14 + $0x8] sm:$0xff]  ;;  %v5646_v2 = vld [vmem:[%s5640_s14 + $0x18] sm:$0xff]  ;;  %v5653_v4 = vld [vmem:[%s5640_s14 + $0x10] sm:$0xff]  ;;  %8419 = vst [vmem:[#allocation17_spill] sm:$0xff] %v5670_v21  ;;  %4450 = vmatpush1.bf16.msra.mxu0 %v5670_v21  ;;  %v5696_v34 = vsub.f32 %v608_v13, %v669_v18  ;;  %v5698_v35 = vsub.f32 %v609_v17, %v672_v23  ;;  %v5701_v36 = vsub.f32 %v5668_v19, %v675_v24  ;;  %v681_v40 = vand.u32 4294901760, %v5675_v25  ;;  %s4228_s29 = sshll.u32 %s368_s27, 3 }
  0x6d   : > { %409 = vrot.lane.b32.xlu0 %v5643_v1, %s5423_s16  ;;  %505 = vrot.lane.b32.xlu1 %v5646_v2, %s5424_s11  ;;  %v5656_v5 = vld [vmem:[%s5640_s14 + $0x20] sm:$0xff]  ;;  %8420 = vst [vmem:[#allocation18_spill] sm:$0xff] %v5694_v33  ;;  %v5703_v37 = vld [vmem:[#allocation2 + $0x68] sm:$0xff]  ;;  %v5705_v38 = vld [vmem:[#allocation2 + $0x70] sm:$0xff]  ;;  %v5708_v39 = vsub.f32 %v611_v20, %v678_v29  ;;  %v684_v41 = vand.u32 4294901760, %v5677_v26  ;;  %v687_v42 = vand.u32 4294901760, %v5687_v30  ;;  %v5734_v54 = vpack.c.bf16 %v672_v23, %v669_v18 }
  0x6e   : > { %v624_v7 = vsel %vm553_vm0, %v5656_v5, 0  ;;  %8421 = vst [vmem:[#allocation19_spill] sm:$0xff] %v5696_v34  ;;  %8422 = vst [vmem:[#allocation20_spill] sm:$0xff] %v5698_v35  ;;  %4451 = vmatprep.subr.bf16.mxu0 %v8017_v0  ;;  %v690_v43 = vand.u32 4294901760, %v5689_v31  ;;  %v693_v44 = vand.u32 4294901760, %v5691_v32  ;;  %v619_v45 = vld [vmem:[#allocation2 + $0x78] sm:$0xff]  ;;  %v5723_v47 = vsub.f32 %v5675_v25, %v681_v40 }
  0x6f   : > { %v5666_v14 = vand.u32 4294901760, %v624_v7  ;;  %8423 = vst [vmem:[#allocation21_spill] sm:$0xff] %v5701_v36  ;;  %8424 = vst [vmem:[#allocation22_spill] sm:$0xff] %v5708_v39  ;;  %v5726_v48 = vsub.f32 %v5677_v26, %v684_v41  ;;  %v696_v49 = vand.u32 4294901760, %v5703_v37  ;;  %v699_v50 = vand.u32 4294901760, %v5705_v38  ;;  %v620_v51 = vld [vmem:[#allocation2 + $0x80] sm:$0xff] }
  0x70   : > { %8426 = vst [vmem:[#allocation24_spill] sm:$0xff] %v5723_v47  ;;  %v621_v52 = vld [vmem:[#allocation2 + $0x88] sm:$0xff]  ;;  %4453 = vmatpush1.bf16.msra.mxu0 %v5694_v33  ;;  %8428 = vst [vmem:[#allocation26_spill] sm:$0xff] %v5734_v54  ;;  %v5737_v55 = vsub.f32 %v5687_v30, %v687_v42  ;;  %v5740_v56 = vsub.f32 %v5689_v31, %v690_v43  ;;  %v5742_v57 = vld [vmem:[#allocation2 + $0x90] sm:$0xff]  ;;  %v5748_v59 = vsub.f32 %v5691_v32, %v693_v44  ;;  %s4235_s23 = sshll.u32 %s5499_s13, 7  ;;  %s370_s26 = scalar_lea.vmem [#allocation8], %s4228_s29 }
  0x71   : > { %457 = vrot.lane.b32.xlu0 %v5653_v4, %s5425_s15  ;;  %411 = vrot.lane.b32.xlu1 %v5653_v4, %s5423_s16  ;;  %v5716_v46 = vsub.f32 %v624_v7, %v5666_v14  ;;  %8427 = vst [vmem:[#allocation25_spill] sm:$0xff] %v5726_v48  ;;  %v5731_v53 = vld [vmem:[%s5640_s14 + $0x28] sm:$0xff]  ;;  %v5744_v58 = vld [vmem:[#allocation2 + $0x98] sm:$0xff]  ;;  %v5751_v60 = vsub.f32 %v5703_v37, %v696_v49  ;;  %v702_v61 = vand.u32 4294901760, %v619_v45  ;;  %v705_v63 = vand.u32 4294901760, %v620_v51  ;;  %v5766_v11 = vld [vmem:[%s5640_s14 + $0x30] sm:$0xff]  ;;  %s7942_s24 = scalar_lea.hbm %s7993_s9, %s4235_s23 }
  0x72   : > { %4454 = vmatprep.subr.bf16.mxu0 %v8017_v0  ;;  %8429 = vst [vmem:[#allocation27_spill] sm:$0xff] %v5748_v59  ;;  %v5754_v62 = vsub.f32 %v5705_v38, %v699_v50  ;;  %v708_v3 = vand.u32 4294901760, %v621_v52  ;;  %v711_v7 = vand.u32 4294901760, %v5742_v57  ;;  %v714_v9 = vand.u32 4294901760, %v5744_v58  ;;  %v5798_v23 = vld [vmem:[%s5640_s14 + $0x38] sm:$0xff]  ;;  %v5809_v25 = vld [vmem:[%s5640_s14 + $0x40] sm:$0xff] }
  0x73   : > { %8425 = vst [vmem:[#allocation23_spill] sm:$0xff] %v5716_v46  ;;  %v5760_v6 = vsub.f32 %v619_v45, %v702_v61  ;;  %v8014_v10 = vand.u32 4294901760, %v5716_v46  ;;  %v5769_v12 = vpack.c.bf16 %v678_v29, %v675_v24  ;;  %v5771_v13 = vsub.f32 %v620_v51, %v705_v63  ;;  %v5830_v32 = vld [vmem:[%s5640_s14 + $0x48] sm:$0xff]  ;;  %s4128_s30 = sshll.u32 %s370_s26, 4  ;;  %s4115_s28 = scalar_lea.sflag [#allocation4], %s368_s27  ;;  %s7944_s30 = int_to_ptr.vmem [resolvable:$true] %s4128_s30 }
  0x74   : > { %4456 = vmatpush1.bf16.msra.mxu0 %v5734_v54  ;;  %v5773_v15 = vsub.f32 %v621_v52, %v708_v3  ;;  %v5777_v16 = vsub.f32 %v5742_v57, %v711_v7  ;;  %v5780_v17 = vsub.f32 %v5744_v58, %v714_v9  ;;  %v5790_v20 = vpack.c.bf16 %v684_v41, %v681_v40  ;;  %p8912_p7 = scmp.ne.s32.totalorder %s8408_s19, 0  ;;  %s5427_s13 = smov [#allocation8]  }
  0x75   : > { %459 = vrot.lane.b32.xlu0 %v5646_v2, %s5425_s15  ;;  %507 = vrot.lane.b32.xlu1 %v5656_v5, %s5424_s11  ;;  %8430 = vst [vmem:[#allocation28_spill] sm:$0xff] %v5769_v12  ;;  %8431 = vst [vmem:[#allocation29_spill] sm:$0xff] %v5771_v13  ;;  %v743_v18 = vsub.f32 %v5716_v46, %v8014_v10  ;;  %v5801_v24 = vpack.c.bf16 %v690_v43, %v687_v42  ;;  %v8013_v30 = vand.u32 4294901760, %v5660_v8  ;;  %v5847_v43 = vld [vmem:[%s5640_s14 + $0x50] sm:$0xff] }
  0x76   : > { %8432 = vst [vmem:[#allocation30_spill] sm:$0xff] %v5773_v15  ;;  %4457 = vmatprep.subr.bf16.mxu0 %v8017_v0  ;;  %8433 = vst [vmem:[#allocation31_spill] sm:$0xff] %v5780_v17  ;;  %v5812_v26 = vpack.c.bf16 %v696_v49, %v693_v44  ;;  %v5820_v29 = vpack.c.bf16 %v702_v61, %v699_v50  ;;  %v8012_v31 = vand.u32 4294901760, %v5672_v22  ;;  %v8009_v49 = vand.u32 4294901760, %v5683_v27 }
  0x77   : > { %v744_v19 = vand.u32 4294901760, %v743_v18  ;;  %8434 = vst [vmem:[#allocation32_spill] sm:$0xff] %v5790_v20  ;;  %8435 = vst [vmem:[#allocation33_spill] sm:$0xff] %v5801_v24  ;;  %v5833_v37 = vpack.c.bf16 %v708_v3, %v705_v63  ;;  %v985_v38 = vsub.f32 %v5660_v8, %v8013_v30  ;;  %v5850_v44 = vpack.c.bf16 %v714_v9, %v711_v7  ;;  %v5878_v7 = vld [vmem:[%s5640_s14 + $0x58] sm:$0xff]  ;;  %v5969_v30 = vld [vmem:[%s5640_s14] sm:$0xff] }
  0x78   : > { %4459 = vmatpush1.bf16.msra.mxu0 %v5769_v12  ;;  %8436 = vst [vmem:[#allocation34_spill] sm:$0xff] %v5812_v26  ;;  %8437 = vst [vmem:[#allocation35_spill] sm:$0xff] %v5820_v29  ;;  %v992_v40 = vsub.f32 %v5672_v22, %v8012_v31  ;;  %v8008_v50 = vand.u32 4294901760, %v5685_v28  ;;  %v999_v51 = vsub.f32 %v5683_v27, %v8009_v49  ;;  %v8005_v61 = vand.u32 4294901760, %v5696_v34 }
  0x79   : > { %413 = vrot.lane.b32.xlu0 %v5646_v2, %s5423_s16  ;;  %461 = vrot.lane.b32.xlu1 %v5656_v5, %s5425_s15  ;;  %8438 = vst [vmem:[#allocation36_spill] sm:$0xff] %v5833_v37  ;;  %v986_v41 = vand.u32 4294901760, %v985_v38  ;;  %8439 = vst [vmem:[#allocation37_spill] sm:$0xff] %v5850_v44  ;;  %v8004_v63 = vand.u32 4294901760, %v5698_v35 }
  0x7a   : > { %4460 = vmatprep.subr.bf16.mxu0 %v8017_v0  ;;  %745 = vmatprep.mubr.f32.mxu0 %v744_v19  ;;  %v993_v42 = vand.u32 4294901760, %v992_v40  ;;  %v1006_v52 = vsub.f32 %v5685_v28, %v8008_v50  ;;  %v1000_v57 = vand.u32 4294901760, %v999_v51  ;;  %v1013_v9 = vsub.f32 %v5696_v34, %v8005_v61  ;;  %v5891_v40 = vld [vmem:[%s5640_s14 + $0x60] sm:$0xff] }
  0x7b   : > { %v1020_v18 = vsub.f32 %v5698_v35, %v8004_v63  ;;  %v8003_v51 = vand.u32 4294901760, %v5708_v39  ;;  %v8010_v61 = vand.u32 4294901760, %v5737_v55  ;;  %v8015_v50 = vand.u32 4294901760, %v5751_v60 }
  0x7c   : > { %4462 = vmatpush1.bf16.msra.mxu0 %v5790_v20  ;;  %v5852_v45 = vpack.c.bf16 %v993_v42, %v986_v41  ;;  %v1007_v58 = vand.u32 4294901760, %v1006_v52  ;;  %v1014_v19 = vand.u32 4294901760, %v1013_v9  ;;  %v8002_v42 = vand.u32 4294901760, %v5701_v36 }
  0x7d   : > { %509 = vrot.lane.b32.xlu0 %v5731_v53, %s5424_s11  ;;  %415 = vrot.lane.b32.xlu1 %v5656_v5, %s5423_s16  ;;  %v1021_v38 = vand.u32 4294901760, %v1020_v18  ;;  %v8006_v18 = vand.u32 4294901760, %v5723_v47 }
  0x7e   : > { %4463 = vmatprep.subr.bf16.mxu0 %v8017_v0  ;;  %v5875_v3 = vpack.c.bf16 %v1007_v58, %v1000_v57  ;;  %v1027_v52 = vsub.f32 %v5701_v36, %v8002_v42  ;;  %v1034_v57 = vsub.f32 %v5708_v39, %v8003_v51  ;;  %v5916_v42 = vld [vmem:[%s5640_s14 + $0x68] sm:$0xff] }
  0x7f   : > { %v5893_v41 = vpack.c.bf16 %v1021_v38, %v1014_v19  ;;  %v8007_v19 = vand.u32 4294901760, %v5726_v48  ;;  %v1041_v51 = vsub.f32 %v5723_v47, %v8006_v18  ;;  %v8011_v18 = vand.u32 4294901760, %v5740_v56 }
  0x80   : > { %4465 = vmatpush1.bf16.msra.mxu0 %v5801_v24  ;;  %v1028_v58 = vand.u32 4294901760, %v1027_v52  ;;  %v1035_v9 = vand.u32 4294901760, %v1034_v57  ;;  %v630_v24 = vsel %vm553_vm0, %v5798_v23, 0  ;;  %v632_v47 = vsel %vm553_vm0, %v5809_v25, 0 }
  0x81   : > { %463 = vrot.lane.b32.xlu0 %v5731_v53, %s5425_s15  ;;  %511 = vrot.lane.b32.xlu1 %v5766_v11, %s5424_s11  ;;  %v1048_v52 = vsub.f32 %v5726_v48, %v8007_v19  ;;  %v1042_v57 = vand.u32 4294901760, %v1041_v51  ;;  %v1055_v51 = vsub.f32 %v5737_v55, %v8010_v61  ;;  %v8016_v19 = vand.u32 4294901760, %v5748_v59  ;;  %v5954_v61 = vld [vmem:[%s5640_s14 + $0x78] sm:$0xff] }
  0x82   : > { %4466 = vmatprep.subr.bf16.mxu0 %v8017_v0  ;;  %v5913_v38 = vpack.c.bf16 %v1035_v9, %v1028_v58  ;;  %v5929_v58 = vld [vmem:[%s5640_s14 + $0x70] sm:$0xff]  ;;  %s5345_s14 = scalar_lea.vmem %s7944_s30, 128 }
  0x83   : > { %v1049_v63 = vand.u32 4294901760, %v1048_v52  ;;  %v1062_v52 = vsub.f32 %v5740_v56, %v8011_v18  ;;  %p5346_p12 = scmp.ne.s32.totalorder %s7944_s30, %s5345_s14 }
  0x84   : > { %4468 = vmatpush1.bf16.msra.mxu0 %v5812_v26 }
  0x85   : > { %417 = vrot.lane.b32.xlu0 %v5731_v53, %s5423_s16  ;;  %465 = vrot.lane.b32.xlu1 %v5766_v11, %s5425_s15  ;;  %v5931_v9 = vpack.c.bf16 %v1049_v63, %v1042_v57  ;;  %v1056_v63 = vand.u32 4294901760, %v1055_v51  ;;  %v1063_v57 = vand.u32 4294901760, %v1062_v52  ;;  %v1069_v51 = vsub.f32 %v5748_v59, %v8016_v19  ;;  %p5347_p8 = pnand %p5346_p12, %p8912_p7 }
  0x86   : > { %4469 = vmatprep.subr.bf16.mxu0 %v8017_v0  ;;  %v1076_v52 = vsub.f32 %v5751_v60, %v8015_v50 }
  0x87   : > { %v5951_v49 = vpack.c.bf16 %v1063_v57, %v1056_v63  ;;  %v1070_v18 = vand.u32 4294901760, %v1069_v51  ;;  %v8020_v63 = vand.u32 4294901760, %v5754_v62  ;;  %v8019_v57 = vand.u32 4294901760, %v5760_v6  ;;  %p5348_p11 = pneg %p5347_p8 }
  0x88   : > { %4471 = vmatpush1.bf16.msra.mxu0 %v5820_v29  ;;  %v1077_v31 = vand.u32 4294901760, %v1076_v52 }
  0x89   : > { %513 = vrot.lane.b32.xlu0 %v5798_v23, %s5424_s11  ;;  %419 = vrot.lane.b32.xlu1 %v5766_v11, %s5423_s16  ;;  %v1083_v50 = vsub.f32 %v5754_v62, %v8020_v63  ;;  %v1090_v51 = vsub.f32 %v5760_v6, %v8019_v57 }
  0x8a   : > { %4472 = vmatprep.subr.bf16.mxu0 %v8017_v0  ;;  %v5971_v10 = vpack.c.bf16 %v1077_v31, %v1070_v18 }
  0x8b   : > { %v1084_v52 = vand.u32 4294901760, %v1083_v50  ;;  %v1091_v19 = vand.u32 4294901760, %v1090_v51 }
  0x8c   : > { %4474 = vmatpush1.bf16.msra.mxu0 %v5833_v37 }
  0x8d   : > { %467 = vrot.lane.b32.xlu0 %v5798_v23, %s5425_s15  ;;  %515 = vrot.lane.b32.xlu1 %v5809_v25, %s5424_s11 }
  0x8e   : > { %4475 = vmatprep.subr.bf16.mxu0 %v8017_v0 }
  0x90   : > { %4477 = vmatpush1.bf16.msra.mxu0 %v5850_v44 }
  0x91   : > { %421 = vrot.lane.b32.xlu0 %v5798_v23, %s5423_s16  ;;  %469 = vrot.lane.b32.xlu1 %v5809_v25, %s5425_s15 }
  0x92   : > { %4478 = vmatprep.subr.bf16.mxu0 %v8017_v0  ;;  %v5983_v0 = vpack.c.bf16 %v1091_v19, %v1084_v52  ;;  %v626_v19 = vsel %vm553_vm0, %v5731_v53, 0  ;;  %v628_v52 = vsel %vm553_vm0, %v5766_v11, 0 }
  0x93   : > { %v6005_v51 = vand.u32 4294901760, %v626_v19  ;;  %v6014_v50 = vand.u32 4294901760, %v628_v52 }
  0x95   : > { %517 = vrot.lane.b32.xlu0 %v5830_v32, %s5424_s11  ;;  %423 = vrot.lane.b32.xlu1 %v5809_v25, %s5423_s16  ;;  %8440 = vst [vmem:[#allocation38_spill] sm:$0xff] %v6005_v51  ;;  %v6012_v31 = vsub.f32 %v626_v19, %v6005_v51  ;;  %8442 = vst [vmem:[#allocation40_spill] sm:$0xff] %v6014_v50  ;;  %v6026_v12 = vsub.f32 %v628_v52, %v6014_v50 }
  0x97   : > { %8441 = vst [vmem:[#allocation39_spill] sm:$0xff] %v6012_v31  ;;  %v8049_v19 = vand.u32 4294901760, %v6012_v31  ;;  %8443 = vst [vmem:[#allocation41_spill] sm:$0xff] %v6026_v12  ;;  %v8061_v52 = vand.u32 4294901760, %v6026_v12 }
  0x99   : > { %471 = vrot.lane.b32.xlu0 %v5830_v32, %s5425_s15  ;;  %519 = vrot.lane.b32.xlu1 %v5847_v43, %s5424_s11 }
  0x9d   : > { %425 = vrot.lane.b32.xlu0 %v5830_v32, %s5423_s16  ;;  %473 = vrot.lane.b32.xlu1 %v5847_v43, %s5425_s15 }
  0xa1   : > { %521 = vrot.lane.b32.xlu0 %v5878_v7, %s5424_s11  ;;  %427 = vrot.lane.b32.xlu1 %v5847_v43, %s5423_s16 }
  0xa5   : > { %475 = vrot.lane.b32.xlu0 %v5878_v7, %s5425_s15  ;;  %523 = vrot.lane.b32.xlu1 %v5891_v40, %s5424_s11 }
  0xa9   : > { %429 = vrot.lane.b32.xlu0 %v5878_v7, %s5423_s16  ;;  %477 = vrot.lane.b32.xlu1 %v5891_v40, %s5425_s15 }
  0xad   : > { %525 = vrot.lane.b32.xlu0 %v5916_v42, %s5424_s11  ;;  %431 = vrot.lane.b32.xlu1 %v5891_v40, %s5423_s16 }
  0xb1   : > { %479 = vrot.lane.b32.xlu0 %v5916_v42, %s5425_s15  ;;  %527 = vrot.lane.b32.xlu1 %v5929_v58, %s5424_s11 }
  0xb5   : > { %433 = vrot.lane.b32.xlu0 %v5916_v42, %s5423_s16  ;;  %481 = vrot.lane.b32.xlu1 %v5929_v58, %s5425_s15 }
  0xb9   : > { %529 = vrot.lane.b32.xlu0 %v5954_v61, %s5424_s11  ;;  %435 = vrot.lane.b32.xlu1 %v5929_v58, %s5423_s16 }
  0xbd   : > { %483 = vrot.lane.b32.xlu0 %v5954_v61, %s5425_s15  ;;  %531 = vrot.lane.b32.xlu1 %v5969_v30, %s5424_s11 }
  0xc1   : > { %437 = vrot.lane.b32.xlu0 %v5954_v61, %s5423_s16  ;;  %485 = vrot.lane.b32.xlu1 %v5969_v30, %s5425_s15 }
  0xc5   : > { %533 = vrot.lane.b32.xlu0 %v5643_v1, %s5424_s11  ;;  %439 = vrot.lane.b32.xlu1 %v5969_v30, %s5423_s16  ;;  %s5349_s16 = sshll.u32 %s5427_s13, 4  ;;  %s5350_s16 = int_to_ptr.vmem [resolvable:$false] %s5349_s16 }
  0xc6   : > { %p5352_p13 = scmp.lt.s32.totalorder %s7944_s30, %s5350_s16 }
  0xc9   : > { %487 = vrot.lane.b32.xlu0 %v5643_v1, %s5425_s15  ;;  %535 = vrot.lane.b32.xlu1 %v5653_v4, %s5424_s11  ;;  %s5351_s11 = scalar_lea.vmem %s5350_s16, 256 }
  0xca   : > { %p5353_p1 = scmp.lt.s32.totalorder %s5351_s11, %s5345_s14 }
  0xcc   : > { %p5354_p6 = por %p5353_p1, %p5352_p13 }
  0xce   : > { %p5355_p9 = pnand %p5354_p6, %p5348_p11 }
  0xdf   : > { %v410_v57 = vpop.permute.xlu0 %409  ;;  %v506_v63 = vpop.permute.xlu1 %505 }
  0xe0   : > { %v554_v18 = vsel %vm553_vm0, %v5969_v30, %v410_v57 }
  0xe3   : > { %v458_v37 = vpop.permute.xlu0 %457  ;;  %v412_v29 = vpop.permute.xlu1 %411 }
  0xe4   : > { %v571_v26 = vsel %vm570_vm1, %v554_v18, %v458_v37  ;;  %v555_v57 = vsel %vm553_vm0, %v5643_v1, %v412_v29  ;;  %v6032_v18 = vand.u32 4294901760, %v630_v24 }
  0xe5   : > { %v588_v20 = vsel %vm587_vm2, %v571_v26, %v506_v63  ;;  %v758_v63 = vsub.f32 %v6012_v31, %v8049_v19  ;;  %v773_v31 = vsub.f32 %v6026_v12, %v8061_v52 }
  0xe6   : > { %v6028_v54 = vand.u32 4294901760, %v588_v20  ;;  %8444 = vst [vmem:[#allocation42_spill] sm:$0xff] %v6032_v18  ;;  %v6049_v36 = vsub.f32 %v630_v24, %v6032_v18  ;;  %v6064_v24 = vand.u32 4294901760, %v632_v47 }
  0xe7   : > { %v460_v33 = vpop.permute.xlu0 %459  ;;  %v508_v37 = vpop.permute.xlu1 %507  ;;  %v759_v19 = vand.u32 4294901760, %v758_v63 }
  0xe8   : > { %v6035_v21 = vsub.f32 %v588_v20, %v6028_v54  ;;  %v572_v44 = vsel %vm570_vm1, %v555_v57, %v460_v33  ;;  %8447 = vst [vmem:[#allocation45_spill] sm:$0xff] %v6049_v36  ;;  %8449 = vst [vmem:[#allocation47_spill] sm:$0xff] %v6064_v24 }
  0xe9   : > { %v589_v26 = vsel %vm587_vm2, %v572_v44, %v508_v37 }
  0xea   : > { %8445 = vst [vmem:[#allocation43_spill] sm:$0xff] %v6035_v21  ;;  %v6043_v46 = vand.u32 4294901760, %v589_v26  ;;  %v8058_v29 = vand.u32 4294901760, %v6035_v21 }
  0xeb   : > { %v414_v48 = vpop.permute.xlu0 %413  ;;  %v462_v20 = vpop.permute.xlu1 %461 }
  0xec   : > { %8446 = vst [vmem:[#allocation44_spill] sm:$0xff] %v6043_v46  ;;  %v6052_v33 = vsub.f32 %v589_v26, %v6043_v46  ;;  %v556_v44 = vsel %vm553_vm0, %v5653_v4, %v414_v48  ;;  %v749_v57 = vsub.f32 %v6035_v21, %v8058_v29  ;;  %v634_v29 = vsel %vm553_vm0, %v5830_v32, 0 }
  0xed   : > { %v573_v34 = vsel %vm570_vm1, %v556_v44, %v462_v20  ;;  %v6078_v20 = vsub.f32 %v632_v47, %v6064_v24 }
  0xee   : > { %8448 = vst [vmem:[#allocation46_spill] sm:$0xff] %v6052_v33  ;;  %v750_v39 = vand.u32 4294901760, %v749_v57  ;;  %v8062_v26 = vand.u32 4294901760, %v6052_v33  ;;  %v774_v57 = vand.u32 4294901760, %v773_v31 }
  0xef   : > { %v510_v48 = vpop.permute.xlu0 %509  ;;  %v416_v35 = vpop.permute.xlu1 %415  ;;  %8451 = vst [vmem:[#allocation49_spill] sm:$0xff] %v6078_v20 }
  0xf0   : > { %v590_v21 = vsel %vm587_vm2, %v573_v34, %v510_v48  ;;  %751 = vmatmul.mubr.f32.vlgmr.msra.gmra.mrb[0].mxu0 %v750_v39  ;;  %v764_v63 = vsub.f32 %v6052_v33, %v8062_v26  ;;  %v6083_v39 = vand.u32 4294901760, %v634_v29  ;;  %v8453_v48 = vmov 0.0|0.0  }
  0xf1   : > { %v6075_v37 = vand.u32 4294901760, %v590_v21  ;;  %760 = vmatprep.mubr.f32.mxu0 %v759_v19  ;;  %4480 = vmatpush1.bf16.msra.mxu0 %v5852_v45  ;;  %v557_v19 = vsel %vm553_vm0, %v5646_v2, %v416_v35  ;;  %v8455_v45 = vand.u32 4294901760, %v6049_v36 }
  0xf2   : > { %v765_v34 = vand.u32 4294901760, %v764_v63  ;;  %8452 = vst [vmem:[#allocation50_spill] sm:$0xff] %v6083_v39  ;;  %4481 = vmatprep.subr.bf16.mxu0 %v8453_v48  ;;  %v636_v63 = vsel %vm553_vm0, %v5847_v43, 0 }
  0xf3   : > { %8450 = vst [vmem:[#allocation48_spill] sm:$0xff] %v6075_v37  ;;  %v6087_v26 = vsub.f32 %v590_v21, %v6075_v37  ;;  %v464_v31 = vpop.permute.xlu0 %463  ;;  %v512_v52 = vpop.permute.xlu1 %511  ;;  %v788_v44 = vsub.f32 %v6049_v36, %v8455_v45  ;;  %v8460_v36 = vand.u32 4294901760, %v6078_v20 }
  0xf4   : > { %v574_v47 = vsel %vm570_vm1, %v557_v19, %v464_v31  ;;  %766 = vmatmul.mubr.f32.gmra.mrb[2].mxu0 %v765_v34  ;;  %v6104_v34 = vsub.f32 %v634_v29, %v6083_v39 }
  0xf5   : > { %8454 = vst [vmem:[#allocation51_spill] sm:$0xff] %v6087_v26  ;;  %v591_v12 = vsel %vm587_vm2, %v574_v47, %v512_v52  ;;  %775 = vmatprep.mubr.f32.mxu0 %v774_v57  ;;  %v8071_v21 = vand.u32 4294901760, %v6087_v26  ;;  %4483 = vmatpush1.bf16.msra.mxu0 %v5875_v3  ;;  %v6110_v57 = vand.u32 4294901760, %v636_v63  ;;  %v789_v45 = vand.u32 4294901760, %v788_v44 }
  0xf6   : > { %v6101_v35 = vand.u32 4294901760, %v591_v12  ;;  %8457 = vst [vmem:[#allocation53_spill] sm:$0xff] %v6104_v34  ;;  %4484 = vmatprep.subr.bf16.mxu0 %v8453_v48  ;;  %v803_v59 = vsub.f32 %v6078_v20, %v8460_v36 }
  0xf7   : > { %v418_v19 = vpop.permute.xlu0 %417  ;;  %v466_v31 = vpop.permute.xlu1 %465  ;;  %v779_v52 = vsub.f32 %v6087_v26, %v8071_v21  ;;  %8458 = vst [vmem:[#allocation54_spill] sm:$0xff] %v6110_v57 }
  0xf8   : > { %8456 = vst [vmem:[#allocation52_spill] sm:$0xff] %v6101_v35  ;;  %v6113_v47 = vsub.f32 %v591_v12, %v6101_v35  ;;  %v558_v3 = vsel %vm553_vm0, %v5656_v5, %v418_v19  ;;  %v6128_v19 = vsub.f32 %v636_v63, %v6110_v57  ;;  %v804_v26 = vand.u32 4294901760, %v803_v59 }
  0xf9   : > { %v780_v33 = vand.u32 4294901760, %v779_v52  ;;  %4486 = vmatpush1.bf16.msra.mxu0 %v5893_v41  ;;  %v575_v12 = vsel %vm570_vm1, %v558_v3, %v466_v31  ;;  %v638_v41 = vsel %vm553_vm0, %v5878_v7, 0  ;;  %v8463_v31 = vand.u32 4294901760, %v6104_v34 }
  0xfa   : > { %8459 = vst [vmem:[#allocation55_spill] sm:$0xff] %v6113_v47  ;;  %v8074_v21 = vand.u32 4294901760, %v6113_v47  ;;  %4487 = vmatprep.subr.bf16.mxu0 %v8453_v48  ;;  %8461 = vst [vmem:[#allocation56_spill] sm:$0xff] %v6128_v19  ;;  %v6149_v59 = vand.u32 4294901760, %v638_v41 }
  0xfb   : > { %v514_v5 = vpop.permute.xlu0 %513  ;;  %781 = vmatmul.mubr.f32.gmra.mrb[4].mxu0 %v780_v33  ;;  %v420_v44 = vpop.permute.xlu1 %419  ;;  %v818_v63 = vsub.f32 %v6104_v34, %v8463_v31  ;;  %v8084_v31 = vand.u32 4294901760, %v5771_v13 }
  0xfc   : > { %v592_v52 = vsel %vm587_vm2, %v575_v12, %v514_v5  ;;  %790 = vmatprep.mubr.f32.mxu0 %v789_v45  ;;  %v794_v36 = vsub.f32 %v6113_v47, %v8074_v21  ;;  %v559_v45 = vsel %vm553_vm0, %v5731_v53, %v420_v44  ;;  %8465 = vst [vmem:[#allocation59_spill] sm:$0xff] %v6149_v59 }
  0xfd   : > { %v6136_v29 = vand.u32 4294901760, %v592_v52  ;;  %4489 = vmatpush1.bf16.msra.mxu0 %v5913_v38  ;;  %v819_v21 = vand.u32 4294901760, %v818_v63  ;;  %v1097_v20 = vsub.f32 %v5771_v13, %v8084_v31 }
  0xfe   : > { %v795_v33 = vand.u32 4294901760, %v794_v36  ;;  %4490 = vmatprep.subr.bf16.mxu0 %v8453_v48  ;;  %v640_v36 = vsel %vm553_vm0, %v5891_v40, 0 }
  0xff   : > { %8462 = vst [vmem:[#allocation57_spill] sm:$0xff] %v6136_v29  ;;  %v6144_v3 = vsub.f32 %v592_v52, %v6136_v29  ;;  %v468_v12 = vpop.permute.xlu0 %467  ;;  %v516_v5 = vpop.permute.xlu1 %515  ;;  %v8467_v52 = vand.u32 4294901760, %v6128_v19 }
 0x100   : > { %v576_v38 = vsel %vm570_vm1, %v559_v45, %v468_v12  ;;  %796 = vmatmul.mubr.f32.gmra.mrb[6].mxu0 %v795_v33 }
 0x101   : > { %8464 = vst [vmem:[#allocation58_spill] sm:$0xff] %v6144_v3  ;;  %v593_v34 = vsel %vm587_vm2, %v576_v38, %v516_v5  ;;  %805 = vmatprep.mubr.f32.mxu0 %v804_v26  ;;  %v8079_v53 = vand.u32 4294901760, %v6144_v3  ;;  %4492 = vmatpush1.bf16.msra.mxu0 %v5931_v9  ;;  %v833_v5 = vsub.f32 %v6128_v19, %v8467_v52  ;;  %v6171_v38 = vand.u32 4294901760, %v640_v36 }
 0x102   : > { %v6159_v44 = vand.u32 4294901760, %v593_v34  ;;  %4493 = vmatprep.subr.bf16.mxu0 %v8453_v48  ;;  %v6169_v26 = vsub.f32 %v638_v41, %v6149_v59  ;;  %v1098_v19 = vand.u32 4294901760, %v1097_v20 }
 0x103   : > { %v422_v33 = vpop.permute.xlu0 %421  ;;  %v470_v45 = vpop.permute.xlu1 %469  ;;  %v809_v12 = vsub.f32 %v6144_v3, %v8079_v53  ;;  %8468 = vst [vmem:[#allocation61_spill] sm:$0xff] %v6171_v38  ;;  %v8470_v53 = vand.u32 4294901760, %v5773_v15  ;;  %v834_v47 = vand.u32 4294901760, %v833_v5  ;;  %v8473_v5 = vand.u32 4294901760, %v5777_v16 }
 0x104   : > { %8466 = vst [vmem:[#allocation60_spill] sm:$0xff] %v6159_v44  ;;  %v6174_v9 = vsub.f32 %v593_v34, %v6159_v44  ;;  %v560_v63 = vsel %vm553_vm0, %v5766_v11, %v422_v33  ;;  %v8096_v13 = vand.u32 4294901760, %v6169_v26 }
 0x105   : > { %v1104_v3 = vsub.f32 %v5773_v15, %v8470_v53  ;;  %v810_v52 = vand.u32 4294901760, %v809_v12  ;;  %4495 = vmatpush1.bf16.msra.mxu0 %v5951_v49  ;;  %v577_v11 = vsel %vm570_vm1, %v560_v63, %v470_v45  ;;  %v6192_v53 = vsub.f32 %v640_v36, %v6171_v38 }
 0x106   : > { %8469 = vst [vmem:[#allocation62_spill] sm:$0xff] %v6174_v9  ;;  %v8091_v34 = vand.u32 4294901760, %v6174_v9  ;;  %4496 = vmatprep.subr.bf16.mxu0 %v8453_v48  ;;  %v642_v45 = vsel %vm553_vm0, %v5916_v42, 0  ;;  %v1111_v36 = vsub.f32 %v5777_v16, %v8473_v5  ;;  %v8474_v63 = vand.u32 4294901760, %v5780_v17 }
 0x107   : > { %v518_v33 = vpop.permute.xlu0 %517  ;;  %811 = vmatmul.mubr.f32.gmra.mrb[8].mxu0 %v810_v52  ;;  %v424_v31 = vpop.permute.xlu1 %423  ;;  %8471 = vst [vmem:[#allocation63_spill] sm:$0xff] %v6192_v53  ;;  %v1105_v41 = vand.u32 4294901760, %v1104_v3 }
 0x108   : > { %v594_v49 = vsel %vm587_vm2, %v577_v11, %v518_v33  ;;  %820 = vmatprep.mubr.f32.mxu0 %v819_v21  ;;  %v824_v12 = vsub.f32 %v6174_v9, %v8091_v34  ;;  %v1118_v21 = vsub.f32 %v5780_v17, %v8474_v63  ;;  %v561_v3 = vsel %vm553_vm0, %v5798_v23, %v424_v31 }
 0x109   : > { %v6198_v15 = vand.u32 4294901760, %v594_v49  ;;  %4498 = vmatpush1.bf16.msra.mxu0 %v5971_v10  ;;  %v848_v10 = vsub.f32 %v6169_v26, %v8096_v13  ;;  %v8098_v63 = vand.u32 4294901760, %v6192_v53  ;;  %v4503_v34 = vpack.c.bf16 %v1105_v41, %v1098_v19 }
 0x10a   : > { %v825_v52 = vand.u32 4294901760, %v824_v12  ;;  %4499 = vmatprep.subr.bf16.mxu0 %v8453_v48  ;;  %v6220_v12 = vand.u32 4294901760, %v642_v45  ;;  %v1112_v23 = vand.u32 4294901760, %v1111_v36  ;;  %v1119_v31 = vand.u32 4294901760, %v1118_v21 }
 0x10b   : > { %8472 = vst [vmem:[#allocation64_spill] sm:$0xff] %v6198_v15  ;;  %v6211_v20 = vsub.f32 %v594_v49, %v6198_v15  ;;  %v472_v11 = vpop.permute.xlu0 %471  ;;  %v520_v33 = vpop.permute.xlu1 %519  ;;  %v849_v41 = vand.u32 4294901760, %v848_v10 }
 0x10c   : > { %v578_v5 = vsel %vm570_vm1, %v561_v3, %v472_v11  ;;  %826 = vmatmul.mubr.f32.gmra.mrb[10].mxu0 %v825_v52  ;;  %8475 = vst [vmem:[#allocation65_spill] sm:$0xff] %v6220_v12  ;;  %v644_v3 = vsel %vm553_vm0, %v5929_v58, 0  ;;  %v6239_v36 = vsub.f32 %v642_v45, %v6220_v12  ;;  %v4506_v13 = vpack.c.bf16 %v1119_v31, %v1112_v23 }
 0x10d   : > { %v595_v49 = vsel %vm587_vm2, %v578_v5, %v520_v33  ;;  %835 = vmatprep.mubr.f32.mxu0 %v834_v47  ;;  %v8097_v9 = vand.u32 4294901760, %v6211_v20  ;;  %4501 = vmatpush1.bf16.msra.mxu0 %v5983_v0  ;;  %v863_v33 = vsub.f32 %v6192_v53, %v8098_v63  ;;  %v6244_v5 = vand.u32 4294901760, %v644_v3 }
 0x10e   : > { %v6225_v17 = vand.u32 4294901760, %v595_v49  ;;  %4502 = vmatprep.subr.bf16.mxu0 %v8453_v48  ;;  %8477 = vst [vmem:[#allocation67_spill] sm:$0xff] %v6239_v36 }
 0x10f   : > { %v426_v52 = vpop.permute.xlu0 %425  ;;  %v474_v11 = vpop.permute.xlu1 %473  ;;  %v839_v19 = vsub.f32 %v6211_v20, %v8097_v9  ;;  %8478 = vst [vmem:[#allocation68_spill] sm:$0xff] %v6244_v5  ;;  %v864_v23 = vand.u32 4294901760, %v863_v33  ;;  %v6257_v31 = vsub.f32 %v644_v3, %v6244_v5 }
 0x110   : > { %8476 = vst [vmem:[#allocation66_spill] sm:$0xff] %v6225_v17  ;;  %v6234_v47 = vsub.f32 %v595_v49, %v6225_v17  ;;  %v562_v0 = vsel %vm553_vm0, %v5809_v25, %v426_v52 }
 0x111   : > { %v840_v21 = vand.u32 4294901760, %v839_v19  ;;  %4504 = vmatpush1.bf16.msra.mxu0 %v4503_v34  ;;  %v579_v49 = vsel %vm570_vm1, %v562_v0, %v474_v11  ;;  %v8100_v19 = vand.u32 4294901760, %v6239_v36  ;;  %8480 = vst [vmem:[#allocation70_spill] sm:$0xff] %v6257_v31  ;;  %v646_v11 = vsel %vm553_vm0, %v5954_v61, 0 }
 0x112   : > { %v8099_v9 = vand.u32 4294901760, %v6234_v47  ;;  %4505 = vmatprep.subr.bf16.mxu0 %v8453_v48  ;;  %v6271_v63 = vand.u32 4294901760, %v646_v11 }
 0x113   : > { %v522_v25 = vpop.permute.xlu0 %521  ;;  %841 = vmatmul.mubr.f32.gmra.mrb[12].mxu0 %v840_v21  ;;  %v428_v10 = vpop.permute.xlu1 %427  ;;  %v878_v3 = vsub.f32 %v6239_v36, %v8100_v19 }
 0x114   : > { %v596_v45 = vsel %vm587_vm2, %v579_v49, %v522_v25  ;;  %850 = vmatprep.mubr.f32.mxu0 %v849_v41  ;;  %v854_v52 = vsub.f32 %v6234_v47, %v8099_v9  ;;  %v563_v21 = vsel %vm553_vm0, %v5830_v32, %v428_v10  ;;  %8482 = vst [vmem:[#allocation72_spill] sm:$0xff] %v6271_v63  ;;  %v648_v32 = vsel %vm553_vm0, %v5969_v30, 0 }
 0x115   : > { %v6254_v34 = vand.u32 4294901760, %v596_v45  ;;  %4507 = vmatpush1.bf16.msra.mxu0 %v4506_v13  ;;  %v6294_v36 = vand.u32 4294901760, %v648_v32 }
 0x116   : > { %v855_v0 = vand.u32 4294901760, %v854_v52  ;;  %4508 = vmatprep.subr.bf16.mxu0 %v8453_v48  ;;  %v8108_v52 = vand.u32 4294901760, %v6257_v31 }
 0x117   : > { %8479 = vst [vmem:[#allocation69_spill] sm:$0xff] %v6254_v34  ;;  %v6263_v41 = vsub.f32 %v596_v45, %v6254_v34  ;;  %v476_v49 = vpop.permute.xlu0 %475  ;;  %v524_v25 = vpop.permute.xlu1 %523  ;;  %8486 = vst [vmem:[#allocation76_spill] sm:$0xff] %v6294_v36 }
 0x118   : > { %v580_v33 = vsel %vm570_vm1, %v563_v21, %v476_v49  ;;  %856 = vmatmul.mubr.f32.gmra.mrb[14].mxu0 %v855_v0  ;;  %v893_v30 = vsub.f32 %v6257_v31, %v8108_v52  ;;  %v6306_v52 = vsub.f32 %v648_v32, %v6294_v36 }
 0x119   : > { %8481 = vst [vmem:[#allocation71_spill] sm:$0xff] %v6263_v41  ;;  %v597_v13 = vsel %vm587_vm2, %v580_v33, %v524_v25  ;;  %865 = vmatprep.mubr.f32.mxu0 %v864_v23  ;;  %v8105_v45 = vand.u32 4294901760, %v6263_v41  ;;  %v879_v25 = vand.u32 4294901760, %v878_v3  ;;  %v6289_v33 = vsub.f32 %v646_v11, %v6271_v63 }
 0x11a   : > { %v6276_v9 = vand.u32 4294901760, %v597_v13  ;;  %8488 = vst [vmem:[#allocation78_spill] sm:$0xff] %v6306_v52 }
 0x11b   : > { %v430_v10 = vpop.permute.xlu0 %429  ;;  %v478_v0 = vpop.permute.xlu1 %477  ;;  %v869_v21 = vsub.f32 %v6263_v41, %v8105_v45  ;;  %8485 = vst [vmem:[#allocation75_spill] sm:$0xff] %v6289_v33  ;;  %v8112_v3 = vand.u32 4294901760, %v6289_v33 }
 0x11c   : > { %8483 = vst [vmem:[#allocation73_spill] sm:$0xff] %v6276_v9  ;;  %v6284_v49 = vsub.f32 %v597_v13, %v6276_v9  ;;  %v564_v23 = vsel %vm553_vm0, %v5847_v43, %v430_v10 }
 0x11d   : > { %v870_v19 = vand.u32 4294901760, %v869_v21  ;;  %v581_v45 = vsel %vm570_vm1, %v564_v23, %v478_v0  ;;  %v894_v21 = vand.u32 4294901760, %v893_v30  ;;  %v650_v0 = vsel %vm553_vm0, %v5643_v1, 0 }
 0x11e   : > { %8484 = vst [vmem:[#allocation74_spill] sm:$0xff] %v6284_v49  ;;  %v8109_v53 = vand.u32 4294901760, %v6284_v49  ;;  %v908_v32 = vsub.f32 %v6289_v33, %v8112_v3  ;;  %v6319_v30 = vand.u32 4294901760, %v650_v0 }
 0x11f   : > { %v526_v13 = vpop.permute.xlu0 %525  ;;  %871 = vmatmul.mubr.f32.gmra.mrb[16].mxu0 %v870_v19  ;;  %v432_v41 = vpop.permute.xlu1 %431 }
 0x120   : > { %v598_v43 = vsel %vm587_vm2, %v581_v45, %v526_v13  ;;  %880 = vmatprep.mubr.f32.mxu0 %v879_v25  ;;  %v884_v11 = vsub.f32 %v6284_v49, %v8109_v53  ;;  %v565_v45 = vsel %vm553_vm0, %v5878_v7, %v432_v41  ;;  %8490 = vst [vmem:[#allocation80_spill] sm:$0xff] %v6319_v30  ;;  %v652_v7 = vsel %vm553_vm0, %v5653_v4, 0 }
 0x121   : > { %v6303_v10 = vand.u32 4294901760, %v598_v43  ;;  %v6342_v33 = vand.u32 4294901760, %v652_v7 }
 0x122   : > { %v885_v19 = vand.u32 4294901760, %v884_v11  ;;  %v8120_v11 = vand.u32 4294901760, %v6306_v52 }
 0x123   : > { %8487 = vst [vmem:[#allocation77_spill] sm:$0xff] %v6303_v10  ;;  %v6311_v23 = vsub.f32 %v598_v43, %v6303_v10  ;;  %v480_v25 = vpop.permute.xlu0 %479  ;;  %v528_v13 = vpop.permute.xlu1 %527  ;;  %8494 = vst [vmem:[#allocation84_spill] sm:$0xff] %v6342_v33 }
 0x124   : > { %v582_v53 = vsel %vm570_vm1, %v565_v45, %v480_v25  ;;  %886 = vmatmul.mubr.f32.gmra.mrb[18].mxu0 %v885_v19  ;;  %v923_v4 = vsub.f32 %v6306_v52, %v8120_v11  ;;  %v6354_v11 = vsub.f32 %v652_v7, %v6342_v33 }
 0x125   : > { %8489 = vst [vmem:[#allocation79_spill] sm:$0xff] %v6311_v23  ;;  %v599_v1 = vsel %vm587_vm2, %v582_v53, %v528_v13  ;;  %895 = vmatprep.mubr.f32.mxu0 %v894_v21  ;;  %v8117_v43 = vand.u32 4294901760, %v6311_v23  ;;  %v909_v21 = vand.u32 4294901760, %v908_v32  ;;  %v6337_v13 = vsub.f32 %v650_v0, %v6319_v30 }
 0x126   : > { %v6324_v31 = vand.u32 4294901760, %v599_v1 }
 0x127   : > { %v434_v41 = vpop.permute.xlu0 %433  ;;  %v482_v19 = vpop.permute.xlu1 %481  ;;  %v899_v45 = vsub.f32 %v6311_v23, %v8117_v43  ;;  %8493 = vst [vmem:[#allocation83_spill] sm:$0xff] %v6337_v13  ;;  %v8124_v32 = vand.u32 4294901760, %v6337_v13 }
 0x128   : > { %8491 = vst [vmem:[#allocation81_spill] sm:$0xff] %v6324_v31  ;;  %v6332_v25 = vsub.f32 %v599_v1, %v6324_v31  ;;  %v566_v53 = vsel %vm553_vm0, %v5891_v40, %v434_v41 }
 0x129   : > { %v900_v3 = vand.u32 4294901760, %v899_v45  ;;  %v583_v43 = vsel %vm570_vm1, %v566_v53, %v482_v19  ;;  %v924_v45 = vand.u32 4294901760, %v923_v4  ;;  %v654_v19 = vsel %vm553_vm0, %v5646_v2, 0 }
 0x12a   : > { %8492 = vst [vmem:[#allocation82_spill] sm:$0xff] %v6332_v25  ;;  %v8121_v49 = vand.u32 4294901760, %v6332_v25  ;;  %v938_v7 = vsub.f32 %v6337_v13, %v8124_v32  ;;  %v6367_v4 = vand.u32 4294901760, %v654_v19 }
 0x12b   : > { %v530_v1 = vpop.permute.xlu0 %529  ;;  %901 = vmatmul.mubr.f32.gmra.mrb[20].mxu0 %v900_v3  ;;  %v436_v23 = vpop.permute.xlu1 %435 }
 0x12c   : > { %v600_v40 = vsel %vm587_vm2, %v583_v43, %v530_v1  ;;  %910 = vmatprep.mubr.f32.mxu0 %v909_v21  ;;  %v914_v0 = vsub.f32 %v6332_v25, %v8121_v49  ;;  %v567_v43 = vsel %vm553_vm0, %v5916_v42, %v436_v23  ;;  %8497 = vst [vmem:[#allocation87_spill] sm:$0xff] %v6367_v4 }
 0x12d   : > { %v6351_v41 = vand.u32 4294901760, %v600_v40 }
 0x12e   : > { %v915_v3 = vand.u32 4294901760, %v914_v0  ;;  %v8132_v0 = vand.u32 4294901760, %v6354_v11 }
 0x12f   : > { %8495 = vst [vmem:[#allocation85_spill] sm:$0xff] %v6351_v41  ;;  %v6359_v53 = vsub.f32 %v600_v40, %v6351_v41  ;;  %v484_v21 = vpop.permute.xlu0 %483  ;;  %v532_v1 = vpop.permute.xlu1 %531 }
 0x130   : > { %v584_v49 = vsel %vm570_vm1, %v567_v43, %v484_v21  ;;  %916 = vmatmul.mubr.f32.gmra.mrb[22].mxu0 %v915_v3  ;;  %v953_v32 = vsub.f32 %v6354_v11, %v8132_v0 }
 0x131   : > { %8496 = vst [vmem:[#allocation86_spill] sm:$0xff] %v6359_v53  ;;  %v601_v2 = vsel %vm587_vm2, %v584_v49, %v532_v1  ;;  %925 = vmatprep.mubr.f32.mxu0 %v924_v45  ;;  %v8129_v40 = vand.u32 4294901760, %v6359_v53  ;;  %v939_v49 = vand.u32 4294901760, %v938_v7  ;;  %v6383_v45 = vsub.f32 %v654_v19, %v6367_v4 }
 0x132   : > { %v6372_v52 = vand.u32 4294901760, %v601_v2 }
 0x133   : > { %v438_v42 = vpop.permute.xlu0 %437  ;;  %v486_v23 = vpop.permute.xlu1 %485  ;;  %v929_v3 = vsub.f32 %v6359_v53, %v8129_v40  ;;  %v8134_v19 = vand.u32 4294901760, %v6383_v45 }
 0x134   : > { %8498 = vst [vmem:[#allocation88_spill] sm:$0xff] %v6372_v52  ;;  %v6378_v43 = vsub.f32 %v601_v2, %v6372_v52  ;;  %v568_v21 = vsel %vm553_vm0, %v5929_v58, %v438_v42  ;;  %v954_v42 = vand.u32 4294901760, %v953_v32 }
 0x135   : > { %v930_v1 = vand.u32 4294901760, %v929_v3  ;;  %v585_v25 = vsel %vm570_vm1, %v568_v21, %v486_v23 }
 0x136   : > { %v8136_v13 = vand.u32 4294901760, %v6378_v43 }
 0x137   : > { %v534_v40 = vpop.permute.xlu0 %533  ;;  %931 = vmatmul.mubr.f32.gmra.mrb[24].mxu0 %v930_v1  ;;  %v440_v2 = vpop.permute.xlu1 %439 }
 0x138   : > { %v602_v53 = vsel %vm587_vm2, %v585_v25, %v534_v40  ;;  %940 = vmatprep.mubr.f32.mxu0 %v939_v49  ;;  %v944_v58 = vsub.f32 %v6378_v43, %v8136_v13  ;;  %v569_v23 = vsel %vm553_vm0, %v5954_v61, %v440_v2  ;;  %v968_v40 = vsub.f32 %v6383_v45, %v8134_v19  ;;  %v8517_v19 = vld [vmem:[#allocation30_spill] sm:$0xff] }
 0x139   : > { %v6395_v7 = vand.u32 4294901760, %v602_v53 }
 0x13a   : > { %v945_v3 = vand.u32 4294901760, %v944_v58  ;;  %v969_v2 = vand.u32 4294901760, %v968_v40  ;;  %v8503_v40 = vld [vmem:[#allocation20_spill] sm:$0xff] }
 0x13b   : > { %8499 = vst [vmem:[#allocation89_spill] sm:$0xff] %v6395_v7  ;;  %v6398_v0 = vsub.f32 %v602_v53, %v6395_v7  ;;  %v488_v21 = vpop.permute.xlu0 %487  ;;  %v536_v1 = vpop.permute.xlu1 %535 }
 0x13c   : > { %v586_v25 = vsel %vm570_vm1, %v569_v23, %v488_v21  ;;  %946 = vmatmul.mubr.f32.gmra.mrb[26].mxu0 %v945_v3 }
 0x13d   : > { %v603_v49 = vsel %vm587_vm2, %v586_v25, %v536_v1  ;;  %955 = vmatprep.mubr.f32.mxu0 %v954_v42  ;;  %v8135_v32 = vand.u32 4294901760, %v6398_v0  ;;  %v8501_v1 = vpack.c.bf16 %v5672_v22, %v5660_v8  ;;  %v8502_v25 = vpack.c.bf16 %v5685_v28, %v5683_v27 }
 0x13e   : > { %v6408_v58 = vand.u32 4294901760, %v603_v49 }
 0x13f   : > { %v959_v61 = vsub.f32 %v6398_v0, %v8135_v32 }
 0x140   : > { %8500 = vst [vmem:[#allocation90_spill] sm:$0xff] %v6408_v58  ;;  %v6414_v53 = vsub.f32 %v603_v49, %v6408_v58  ;;  %v8504_v49 = vld [vmem:[#allocation19_spill] sm:$0xff] }
 0x141   : > { %v960_v3 = vand.u32 4294901760, %v959_v61  ;;  %v8505_v61 = vpack.c.bf16 %v8503_v40, %v8504_v49 }
 0x142   : > { %v8133_v23 = vand.u32 4294901760, %v6414_v53 }
 0x143   : > { %961 = vmatmul.mubr.f32.gmra.mrb[28].mxu0 %v960_v3  ;;  %v8507_v3 = vld [vmem:[#allocation21_spill] sm:$0xff] }
 0x144   : > { %970 = vmatprep.mubr.f32.mxu0 %v969_v2  ;;  %v974_v42 = vsub.f32 %v6414_v53, %v8133_v23  ;;  %v8506_v2 = vld [vmem:[#allocation22_spill] sm:$0xff] }
 0x146   : > { %v975_v21 = vand.u32 4294901760, %v974_v42  ;;  %v8508_v42 = vpack.c.bf16 %v8506_v2, %v8507_v3 }
 0x148   : > { %976 = vmatmul.mubr.f32.gmra.mrb[30].mxu0 %v975_v21  ;;  %v8509_v21 = vld [vmem:[#allocation25_spill] sm:$0xff] }
 0x149   : > { %1146 = vmatprep.mubr.f32.mxu0 %v5666_v14 }
 0x14c   : > { %1148 = vmatmul.mubr.f32.vlgmr.msra.gmra.mrb[0].mxu0 %v6028_v54 }
 0x14d   : > { %4510 = vmatpush1.bf16.msra.mxu0 %v8501_v1  ;;  %1153 = vmatprep.mubr.f32.mxu0 %v6005_v51  ;;  %v8510_v1 = vld [vmem:[#allocation24_spill] sm:$0xff]  ;;  %v8559_v51 = vand.u32 4294901760, %v5685_v28 }
 0x14e   : > { %4511 = vmatprep.subr.bf16.mxu0 %v8453_v48 }
 0x150   : > { %1155 = vmatmul.mubr.f32.gmra.mrb[2].mxu0 %v6043_v46  ;;  %v8558_v46 = vand.u32 4294901760, %v5683_v27 }
 0x151   : > { %1160 = vmatprep.mubr.f32.mxu0 %v6014_v50  ;;  %4513 = vmatpush1.bf16.msra.mxu0 %v8502_v25  ;;  %v8511_v25 = vpack.c.bf16 %v8509_v21, %v8510_v1 }
 0x152   : > { %4514 = vmatprep.subr.bf16.mxu0 %v8453_v48 }
 0x154   : > { %1162 = vmatmul.mubr.f32.gmra.mrb[4].mxu0 %v6075_v37 }
 0x155   : > { %1167 = vmatprep.mubr.f32.mxu0 %v6032_v18  ;;  %4516 = vmatpush1.bf16.msra.mxu0 %v8505_v61  ;;  %v8512_v61 = vpack.c.bf16 %v5740_v56, %v5737_v55  ;;  %v8555_v18 = vand.u32 4294901760, %v5672_v22  ;;  %v8562_v22 = vand.u32 4294901760, %v8504_v49 }
 0x156   : > { %4517 = vmatprep.subr.bf16.mxu0 %v8453_v48 }
 0x158   : > { %1169 = vmatmul.mubr.f32.gmra.mrb[6].mxu0 %v6101_v35  ;;  %v8551_v35 = vld [vmem:[#allocation86_spill] sm:$0xff] }
 0x159   : > { %1174 = vmatprep.mubr.f32.mxu0 %v6064_v24  ;;  %4519 = vmatpush1.bf16.msra.mxu0 %v8508_v42  ;;  %v8513_v42 = vld [vmem:[#allocation27_spill] sm:$0xff]  ;;  %v8550_v24 = vld [vmem:[#allocation78_spill] sm:$0xff] }
 0x15a   : > { %4520 = vmatprep.subr.bf16.mxu0 %v8453_v48  ;;  %v8514_v23 = vpack.c.bf16 %v5751_v60, %v8513_v42 }
 0x15c   : > { %1176 = vmatmul.mubr.f32.gmra.mrb[8].mxu0 %v6136_v29  ;;  %v8547_v29 = vld [vmem:[#allocation79_spill] sm:$0xff] }
 0x15d   : > { %1181 = vmatprep.mubr.f32.mxu0 %v6083_v39  ;;  %4522 = vmatpush1.bf16.msra.mxu0 %v8511_v25  ;;  %v8515_v25 = vpack.c.bf16 %v5760_v6, %v5754_v62  ;;  %v8546_v39 = vld [vmem:[#allocation37_spill] sm:$0xff] }
 0x15e   : > { %4523 = vmatprep.subr.bf16.mxu0 %v8453_v48 }
 0x160   : > { %1183 = vmatmul.mubr.f32.gmra.mrb[10].mxu0 %v6159_v44  ;;  %v8543_v44 = vld [vmem:[#allocation36_spill] sm:$0xff] }
 0x161   : > { %1188 = vmatprep.mubr.f32.mxu0 %v6110_v57  ;;  %4525 = vmatpush1.bf16.msra.mxu0 %v8512_v61  ;;  %v8516_v61 = vld [vmem:[#allocation29_spill] sm:$0xff]  ;;  %v8541_v57 = vld [vmem:[#allocation71_spill] sm:$0xff] }
 0x162   : > { %4526 = vmatprep.subr.bf16.mxu0 %v8453_v48  ;;  %v4533_v32 = vpack.c.bf16 %v8517_v19, %v8516_v61 }
 0x164   : > { %1190 = vmatmul.mubr.f32.gmra.mrb[12].mxu0 %v6198_v15  ;;  %v8540_v15 = vld [vmem:[#allocation35_spill] sm:$0xff] }
 0x165   : > { %1195 = vmatprep.mubr.f32.mxu0 %v6149_v59  ;;  %4528 = vmatpush1.bf16.msra.mxu0 %v8514_v23  ;;  %v8518_v23 = vld [vmem:[#allocation31_spill] sm:$0xff] }
 0x166   : > { %4529 = vmatprep.subr.bf16.mxu0 %v8453_v48  ;;  %v4536_v13 = vpack.c.bf16 %v8518_v23, %v5777_v16  ;;  %v8539_v59 = vld [vmem:[#allocation63_spill] sm:$0xff] }
 0x168   : > { %1197 = vmatmul.mubr.f32.gmra.mrb[14].mxu0 %v6225_v17  ;;  %v8538_v17 = vld [vmem:[#allocation34_spill] sm:$0xff] }
 0x169   : > { %1202 = vmatprep.mubr.f32.mxu0 %v6171_v38  ;;  %4531 = vmatpush1.bf16.msra.mxu0 %v8515_v25  ;;  %v8521_v25 = vld [vmem:[#allocation17_spill] sm:$0xff] }
 0x16a   : > { %4532 = vmatprep.subr.bf16.mxu0 %v8453_v48  ;;  %v8537_v38 = vld [vmem:[#allocation33_spill] sm:$0xff] }
 0x16c   : > { %1204 = vmatmul.mubr.f32.gmra.mrb[16].mxu0 %v6254_v34  ;;  %v8536_v34 = vld [vmem:[#allocation56_spill] sm:$0xff] }
 0x16d   : > { %1209 = vmatprep.mubr.f32.mxu0 %v6220_v12  ;;  %4534 = vmatpush1.bf16.msra.mxu0 %v4533_v32  ;;  %v8520_v32 = vld [vmem:[#allocation43_spill] sm:$0xff]  ;;  %v8535_v12 = vld [vmem:[#allocation62_spill] sm:$0xff] }
 0x16e   : > { %4535 = vmatprep.subr.bf16.mxu0 %v8453_v48  ;;  %v8576_v49 = vand.u32 4294901760, %v8535_v12 }
 0x170   : > { %1211 = vmatmul.mubr.f32.gmra.mrb[18].mxu0 %v6276_v9  ;;  %v8534_v9 = vld [vmem:[#allocation32_spill] sm:$0xff] }
 0x171   : > { %1216 = vmatprep.mubr.f32.mxu0 %v6244_v5  ;;  %4537 = vmatpush1.bf16.msra.mxu0 %v4536_v13  ;;  %v8519_v13 = vld [vmem:[#allocation23_spill] sm:$0xff]  ;;  %v8533_v5 = vld [vmem:[#allocation53_spill] sm:$0xff] }
 0x172   : > { %4538 = vmatprep.subr.bf16.mxu0 %v8453_v48 }
 0x174   : > { %1218 = vmatmul.mubr.f32.gmra.mrb[20].mxu0 %v6303_v10  ;;  %v8532_v10 = vld [vmem:[#allocation58_spill] sm:$0xff] }
 0x175   : > { %1223 = vmatprep.mubr.f32.mxu0 %v6271_v63  ;;  %v8531_v63 = vld [vmem:[#allocation28_spill] sm:$0xff] }
 0x178   : > { %1225 = vmatmul.mubr.f32.gmra.mrb[22].mxu0 %v6324_v31  ;;  %v8530_v31 = vld [vmem:[#allocation49_spill] sm:$0xff] }
 0x179   : > { %1230 = vmatprep.mubr.f32.mxu0 %v6294_v36  ;;  %v8522_v36 = vld [vmem:[#allocation39_spill] sm:$0xff] }
 0x17a   : > { %v8557_v50 = vand.u32 4294901760, %v8522_v36 }
 0x17c   : > { %1232 = vmatmul.mubr.f32.gmra.mrb[24].mxu0 %v6351_v41  ;;  %v8529_v41 = vld [vmem:[#allocation55_spill] sm:$0xff] }
 0x17d   : > { %1237 = vmatprep.mubr.f32.mxu0 %v6319_v30  ;;  %v8523_v30 = vld [vmem:[#allocation46_spill] sm:$0xff] }
 0x180   : > { %1239 = vmatmul.mubr.f32.gmra.mrb[26].mxu0 %v6372_v52  ;;  %v8524_v52 = vld [vmem:[#allocation41_spill] sm:$0xff] }
 0x181   : > { %1244 = vmatprep.mubr.f32.mxu0 %v6342_v33  ;;  %v8525_v33 = vld [vmem:[#allocation18_spill] sm:$0xff] }
 0x184   : > { %1246 = vmatmul.mubr.f32.gmra.mrb[28].mxu0 %v6395_v7  ;;  %v8528_v7 = vld [vmem:[#allocation26_spill] sm:$0xff] }
 0x185   : > { %1251 = vmatprep.mubr.f32.mxu0 %v6367_v4  ;;  %v8526_v4 = vld [vmem:[#allocation51_spill] sm:$0xff] }
 0x186   : > { %v8564_v27 = vand.u32 4294901760, %v8526_v4 }
 0x188   : > { %1253 = vmatmul.mubr.f32.gmra.mrb[30].mxu0 %v6408_v58  ;;  %v8527_v58 = vld [vmem:[#allocation45_spill] sm:$0xff] }
 0x189   : > { %1364 = vmatprep.mubr.f32.mxu0 %v8519_v13  ;;  %v8565_v28 = vand.u32 4294901760, %v8527_v58 }
 0x18c   : > { %1367 = vmatmul.mubr.f32.vlgmr.msra.gmra.mrb[0].mxu0 %v8520_v32 }
 0x18d   : > { %4540 = vmatpush1.bf16.msra.mxu0 %v8521_v25  ;;  %1373 = vmatprep.mubr.f32.mxu0 %v8522_v36  ;;  %v4572_v25 = vpack.c.bf16 %v8559_v51, %v8558_v46  ;;  %v8566_v46 = vand.u32 4294901760, %v8507_v3  ;;  %v8568_v36 = vand.u32 4294901760, %v8529_v41 }
 0x18e   : > { %4541 = vmatprep.subr.bf16.mxu0 %v8453_v48 }
 0x190   : > { %1376 = vmatmul.mubr.f32.gmra.mrb[2].mxu0 %v8523_v30 }
 0x191   : > { %1382 = vmatprep.mubr.f32.mxu0 %v8524_v52  ;;  %4543 = vmatpush1.bf16.msra.mxu0 %v8525_v33  ;;  %v8556_v33 = vand.u32 4294901760, %v8520_v32  ;;  %v8600_v32 = vand.u32 4294901760, %v6378_v43 }
 0x192   : > { %4544 = vmatprep.subr.bf16.mxu0 %v8453_v48 }
 0x194   : > { %1385 = vmatmul.mubr.f32.gmra.mrb[4].mxu0 %v8526_v4 }
 0x195   : > { %1391 = vmatprep.mubr.f32.mxu0 %v8527_v58  ;;  %4546 = vmatpush1.bf16.msra.mxu0 %v8528_v7  ;;  %v8554_v7 = vand.u32 4294901760, %v5660_v8  ;;  %v8561_v8 = vand.u32 4294901760, %v8524_v52  ;;  %v8569_v52 = vand.u32 4294901760, %v8530_v31  ;;  %v8573_v58 = vand.u32 4294901760, %v8533_v5 }
 0x196   : > { %4547 = vmatprep.subr.bf16.mxu0 %v8453_v48 }
 0x197   : > { %v4569_v37 = vpack.c.bf16 %v8555_v18, %v8554_v7  ;;  %v8563_v18 = vand.u32 4294901760, %v8503_v40  ;;  %v8572_v7 = vand.u32 4294901760, %v8532_v10 }
 0x198   : > { %1394 = vmatmul.mubr.f32.gmra.mrb[6].mxu0 %v8529_v41  ;;  %v8574_v41 = vand.u32 4294901760, %v5737_v55  ;;  %v8580_v55 = vand.u32 4294901760, %v6211_v20 }
 0x199   : > { %1400 = vmatprep.mubr.f32.mxu0 %v8530_v31  ;;  %4549 = vmatpush1.bf16.msra.mxu0 %v8531_v63  ;;  %v8549_v63 = vld [vmem:[#allocation82_spill] sm:$0xff]  ;;  %v8575_v31 = vand.u32 4294901760, %v5740_v56  ;;  %v8581_v56 = vand.u32 4294901760, %v6169_v26 }
 0x19a   : > { %4550 = vmatprep.subr.bf16.mxu0 %v8453_v48 }
 0x19b   : > { %v4584_v40 = vpack.c.bf16 %v8575_v31, %v8574_v41  ;;  %v8630_v41 = vld [vmem:[#allocation36_spill] sm:$0xff]  ;;  %v8631_v31 = vld [vmem:[#allocation73_spill] sm:$0xff] }
 0x19c   : > { %1403 = vmatmul.mubr.f32.gmra.mrb[8].mxu0 %v8532_v10  ;;  %v8578_v10 = vand.u32 4294901760, %v8513_v42 }
 0x19d   : > { %1409 = vmatprep.mubr.f32.mxu0 %v8533_v5  ;;  %4552 = vmatpush1.bf16.msra.mxu0 %v8534_v9  ;;  %v8544_v9 = vld [vmem:[#allocation74_spill] sm:$0xff]  ;;  %v8579_v5 = vand.u32 4294901760, %v5751_v60  ;;  %v8585_v60 = vand.u32 4294901760, %v8539_v59 }
 0x19e   : > { %4553 = vmatprep.subr.bf16.mxu0 %v8453_v48 }
 0x19f   : > { %v4587_v3 = vpack.c.bf16 %v8579_v5, %v8578_v10  ;;  %v8635_v10 = vld [vmem:[#allocation72_spill] sm:$0xff]  ;;  %v8636_v5 = vld [vmem:[#allocation81_spill] sm:$0xff] }
 0x1a0   : > { %1412 = vmatmul.mubr.f32.gmra.mrb[10].mxu0 %v8535_v12  ;;  %v8582_v12 = vand.u32 4294901760, %v5754_v62  ;;  %v8588_v62 = vand.u32 4294901760, %v8541_v57 }
 0x1a1   : > { %1418 = vmatprep.mubr.f32.mxu0 %v8536_v34  ;;  %4555 = vmatpush1.bf16.msra.mxu0 %v8537_v38  ;;  %v8542_v38 = vld [vmem:[#allocation67_spill] sm:$0xff] }
 0x1a2   : > { %4556 = vmatprep.subr.bf16.mxu0 %v8453_v48 }
 0x1a4   : > { %1421 = vmatmul.mubr.f32.gmra.mrb[12].mxu0 %v6211_v20  ;;  %v8586_v20 = vand.u32 4294901760, %v8516_v61  ;;  %v8592_v61 = vand.u32 4294901760, %v8544_v9 }
 0x1a5   : > { %1427 = vmatprep.mubr.f32.mxu0 %v6169_v26  ;;  %4558 = vmatpush1.bf16.msra.mxu0 %v8538_v17  ;;  %v8545_v17 = vld [vmem:[#allocation70_spill] sm:$0xff]  ;;  %v8587_v26 = vand.u32 4294901760, %v8517_v19 }
 0x1a6   : > { %4559 = vmatprep.subr.bf16.mxu0 %v8453_v48  ;;  %v8593_v19 = vand.u32 4294901760, %v8545_v17 }
 0x1a7   : > { %v4593_v42 = vpack.c.bf16 %v8587_v26, %v8586_v20  ;;  %v2311_v26 = vld [vmem:[%s7989_s5] sm:$0xff] }
 0x1a8   : > { %1430 = vmatmul.mubr.f32.gmra.mrb[14].mxu0 %v6234_v47 }
 0x1a9   : > { %1436 = vmatprep.mubr.f32.mxu0 %v8539_v59  ;;  %4561 = vmatpush1.bf16.msra.mxu0 %v8540_v15  ;;  %v8548_v15 = vld [vmem:[#allocation75_spill] sm:$0xff]  ;;  %v8591_v59 = vand.u32 4294901760, %v8518_v23  ;;  %v8597_v23 = vand.u32 4294901760, %v8550_v24 }
 0x1aa   : > { %4562 = vmatprep.subr.bf16.mxu0 %v8453_v48 }
 0x1ac   : > { %1439 = vmatmul.mubr.f32.gmra.mrb[16].mxu0 %v8541_v57  ;;  %v8594_v57 = vand.u32 4294901760, %v8547_v29 }
 0x1ad   : > { %1445 = vmatprep.mubr.f32.mxu0 %v8542_v38  ;;  %4564 = vmatpush1.bf16.msra.mxu0 %v8543_v44  ;;  %v8552_v44 = vld [vmem:[#allocation83_spill] sm:$0xff] }
 0x1ae   : > { %4565 = vmatprep.subr.bf16.mxu0 %v8453_v48 }
 0x1b0   : > { %1448 = vmatmul.mubr.f32.gmra.mrb[18].mxu0 %v8544_v9  ;;  %v8598_v9 = vand.u32 4294901760, %v8551_v35 }
 0x1b1   : > { %1454 = vmatprep.mubr.f32.mxu0 %v8545_v17  ;;  %4567 = vmatpush1.bf16.msra.mxu0 %v8546_v39  ;;  %v8553_v39 = vand.u32 4294901760, %v8519_v13  ;;  %v8599_v17 = vand.u32 4294901760, %v8552_v44 }
 0x1b2   : > { %4568 = vmatprep.subr.bf16.mxu0 %v8453_v48 }
 0x1b4   : > { %1457 = vmatmul.mubr.f32.gmra.mrb[20].mxu0 %v8547_v29  ;;  %v8601_v29 = vand.u32 4294901760, %v6354_v11 }
 0x1b5   : > { %1463 = vmatprep.mubr.f32.mxu0 %v8548_v15 }
 0x1b8   : > { %1466 = vmatmul.mubr.f32.gmra.mrb[22].mxu0 %v8549_v63 }
 0x1b9   : > { %1472 = vmatprep.mubr.f32.mxu0 %v8550_v24  ;;  %v8604_v24 = vand.u32 4294901760, %v6414_v53 }
 0x1bc   : > { %1475 = vmatmul.mubr.f32.gmra.mrb[24].mxu0 %v8551_v35  ;;  %v8605_v35 = vld [vmem:[#allocation17_spill] sm:$0xff] }
 0x1bd   : > { %1481 = vmatprep.mubr.f32.mxu0 %v8552_v44  ;;  %v8606_v44 = vld [vmem:[#allocation38_spill] sm:$0xff] }
 0x1c0   : > { %1484 = vmatmul.mubr.f32.gmra.mrb[26].mxu0 %v6378_v43  ;;  %v8609_v43 = vld [vmem:[#allocation18_spill] sm:$0xff] }
 0x1c1   : > { %1490 = vmatprep.mubr.f32.mxu0 %v6354_v11  ;;  %v8607_v11 = vld [vmem:[#allocation44_spill] sm:$0xff] }
 0x1c4   : > { %1493 = vmatmul.mubr.f32.gmra.mrb[28].mxu0 %v6398_v0 }
 0x1c5   : > { %1499 = vmatprep.mubr.f32.mxu0 %v6383_v45 }
 0x1c8   : > { %1502 = vmatmul.mubr.f32.gmra.mrb[30].mxu0 %v6414_v53  ;;  %v8611_v53 = vld [vmem:[#allocation42_spill] sm:$0xff] }
 0x1c9   : > { %1594 = vmatprep.mubr.f32.mxu0 %v8553_v39  ;;  %v8560_v39 = vand.u32 4294901760, %v8523_v30  ;;  %v8571_v30 = vand.u32 4294901760, %v8509_v21 }
 0x1cc   : > { %1598 = vmatmul.mubr.f32.vlgmr.msra.gmra.mrb[0].mxu0 %v8556_v33  ;;  %v8570_v33 = vand.u32 4294901760, %v8510_v1  ;;  %v8584_v1 = vand.u32 4294901760, %v6234_v47  ;;  %v8590_v47 = vand.u32 4294901760, %v5777_v16  ;;  %v8596_v16 = vand.u32 4294901760, %v8549_v63 }
 0x1cd   : > { %4570 = vmatpush1.bf16.msra.mxu0 %v4569_v37  ;;  %1605 = vmatprep.mubr.f32.mxu0 %v8557_v50  ;;  %v4575_v37 = vpack.c.bf16 %v8563_v18, %v8562_v22  ;;  %v8567_v50 = vand.u32 4294901760, %v8506_v2  ;;  %v8577_v2 = vand.u32 4294901760, %v8536_v34  ;;  %v8583_v34 = vand.u32 4294901760, %v5760_v6  ;;  %v8615_v22 = vld [vmem:[#allocation28_spill] sm:$0xff]  ;;  %v8616_v18 = vld [vmem:[#allocation57_spill] sm:$0xff] }
 0x1ce   : > { %4571 = vmatprep.subr.bf16.mxu0 %v8453_v48  ;;  %v4581_v4 = vpack.c.bf16 %v8571_v30, %v8570_v33  ;;  %v8589_v6 = vand.u32 4294901760, %v8542_v38  ;;  %v4596_v13 = vpack.c.bf16 %v8591_v59, %v8590_v47  ;;  %v8595_v38 = vand.u32 4294901760, %v8548_v15  ;;  %v8625_v33 = vld [vmem:[#allocation66_spill] sm:$0xff]  ;;  %v8626_v30 = vld [vmem:[#allocation61_spill] sm:$0xff] }
 0x1cf   : > { %v4578_v51 = vpack.c.bf16 %v8567_v50, %v8566_v46  ;;  %v4590_v21 = vpack.c.bf16 %v8583_v34, %v8582_v12  ;;  %v8602_v15 = vand.u32 4294901760, %v6398_v0  ;;  %v8603_v63 = vand.u32 4294901760, %v6383_v45  ;;  %v8608_v0 = vld [vmem:[#allocation40_spill] sm:$0xff]  ;;  %v8620_v46 = vld [vmem:[#allocation54_spill] sm:$0xff]  ;;  %v8621_v50 = vld [vmem:[#allocation33_spill] sm:$0xff] }
 0x1d0   : > { %1609 = vmatmul.mubr.f32.gmra.mrb[2].mxu0 %v8560_v39  ;;  %v8610_v45 = vld [vmem:[#allocation48_spill] sm:$0xff]  ;;  %v8642_v34 = vld [vmem:[#allocation89_spill] sm:$0xff] }
 0x1d1   : > { %1616 = vmatprep.mubr.f32.mxu0 %v8561_v8  ;;  %4573 = vmatpush1.bf16.msra.mxu0 %v4572_v25  ;;  %v8612_v25 = vld [vmem:[#allocation26_spill] sm:$0xff]  ;;  %v8613_v39 = vld [vmem:[#allocation52_spill] sm:$0xff]  ;;  %v8614_v8 = vld [vmem:[#allocation47_spill] sm:$0xff] }
 0x1d2   : > { %4574 = vmatprep.subr.bf16.mxu0 %v8453_v48  ;;  %v8640_v12 = vld [vmem:[#allocation88_spill] sm:$0xff] }
 0x1d4   : > { %1620 = vmatmul.mubr.f32.gmra.mrb[4].mxu0 %v8564_v27  ;;  %v8618_v27 = vld [vmem:[#allocation32_spill] sm:$0xff] }
 0x1d5   : > { %1627 = vmatprep.mubr.f32.mxu0 %v8565_v28  ;;  %4576 = vmatpush1.bf16.msra.mxu0 %v4575_v37  ;;  %v8617_v37 = vld [vmem:[#allocation50_spill] sm:$0xff]  ;;  %v8619_v28 = vld [vmem:[#allocation60_spill] sm:$0xff] }
 0x1d6   : > { %4577 = vmatprep.subr.bf16.mxu0 %v8453_v48 }
 0x1d8   : > { %1631 = vmatmul.mubr.f32.gmra.mrb[6].mxu0 %v8568_v36  ;;  %v8623_v36 = vld [vmem:[#allocation59_spill] sm:$0xff] }
 0x1d9   : > { %1638 = vmatprep.mubr.f32.mxu0 %v8569_v52  ;;  %4579 = vmatpush1.bf16.msra.mxu0 %v4578_v51  ;;  %v8622_v51 = vld [vmem:[#allocation64_spill] sm:$0xff]  ;;  %v8624_v52 = vld [vmem:[#allocation34_spill] sm:$0xff] }
 0x1da   : > { %4580 = vmatprep.subr.bf16.mxu0 %v8453_v48 }
 0x1dc   : > { %1642 = vmatmul.mubr.f32.gmra.mrb[8].mxu0 %v8572_v7  ;;  %v8628_v7 = vld [vmem:[#allocation69_spill] sm:$0xff] }
 0x1dd   : > { %1649 = vmatprep.mubr.f32.mxu0 %v8573_v58  ;;  %4582 = vmatpush1.bf16.msra.mxu0 %v4581_v4  ;;  %v8627_v4 = vld [vmem:[#allocation35_spill] sm:$0xff]  ;;  %v8629_v58 = vld [vmem:[#allocation65_spill] sm:$0xff] }
 0x1de   : > { %4583 = vmatprep.subr.bf16.mxu0 %v8453_v48 }
 0x1e0   : > { %1653 = vmatmul.mubr.f32.gmra.mrb[10].mxu0 %v8576_v49  ;;  %v8633_v49 = vld [vmem:[#allocation37_spill] sm:$0xff] }
 0x1e1   : > { %1660 = vmatprep.mubr.f32.mxu0 %v8577_v2  ;;  %4585 = vmatpush1.bf16.msra.mxu0 %v4584_v40  ;;  %v8632_v40 = vld [vmem:[#allocation68_spill] sm:$0xff]  ;;  %v8634_v2 = vld [vmem:[#allocation77_spill] sm:$0xff] }
 0x1e2   : > { %4586 = vmatprep.subr.bf16.mxu0 %v8453_v48 }
 0x1e4   : > { %1664 = vmatmul.mubr.f32.gmra.mrb[12].mxu0 %v8580_v55  ;;  %v8638_v55 = vld [vmem:[#allocation85_spill] sm:$0xff] }
 0x1e5   : > { %1671 = vmatprep.mubr.f32.mxu0 %v8581_v56  ;;  %4588 = vmatpush1.bf16.msra.mxu0 %v4587_v3  ;;  %v8637_v3 = vld [vmem:[#allocation76_spill] sm:$0xff] }
 0x1e6   : > { %4589 = vmatprep.subr.bf16.mxu0 %v8453_v48  ;;  %v8639_v56 = vld [vmem:[#allocation80_spill] sm:$0xff] }
 0x1e8   : > { %1675 = vmatmul.mubr.f32.gmra.mrb[14].mxu0 %v8584_v1  ;;  %v8644_v1 = vld [vmem:[#allocation90_spill] sm:$0xff] }
 0x1e9   : > { %1682 = vmatprep.mubr.f32.mxu0 %v8585_v60  ;;  %4591 = vmatpush1.bf16.msra.mxu0 %v4590_v21  ;;  %v8643_v21 = vld [vmem:[#allocation87_spill] sm:$0xff] }
 0x1ea   : > { %4592 = vmatprep.subr.bf16.mxu0 %v8453_v48 }
 0x1ec   : > { %1686 = vmatmul.mubr.f32.gmra.mrb[16].mxu0 %v8588_v62  ;;  %v2357_v62 = vand.u32 4294901760, %v2311_v26 }
 0x1ed   : > { %1693 = vmatprep.mubr.f32.mxu0 %v8589_v6  ;;  %4594 = vmatpush1.bf16.msra.mxu0 %v4593_v42  ;;  %v2313_v42 = vld [vmem:[%s7989_s5 + $0x10] sm:$0xff] }
 0x1ee   : > { %4595 = vmatprep.subr.bf16.mxu0 %v8453_v48  ;;  %v2361_v6 = vand.u32 4294901760, %v2313_v42 }
 0x1f0   : > { %1697 = vmatmul.mubr.f32.gmra.mrb[18].mxu0 %v8592_v61  ;;  %v6763_v59 = vpack.c.bf16 %v2361_v6, %v2357_v62  ;;  %v2318_v61 = vld [vmem:[%s7989_s5 + $0x38] sm:$0xff] }
 0x1f1   : > { %1704 = vmatprep.mubr.f32.mxu0 %v8593_v19  ;;  %4597 = vmatpush1.bf16.msra.mxu0 %v4596_v13  ;;  %v2316_v13 = vld [vmem:[%s7989_s5 + $0x28] sm:$0xff] }
 0x1f2   : > { %4598 = vmatprep.subr.bf16.mxu0 %v8453_v48  ;;  %8646 = vst [vmem:[#allocation19_spill] sm:$0xff] %v6763_v59  ;;  %v2363_v19 = vand.u32 4294901760, %v2316_v13 }
 0x1f4   : > { %1708 = vmatmul.mubr.f32.gmra.mrb[20].mxu0 %v8594_v57  ;;  %v2367_v57 = vand.u32 4294901760, %v2318_v61 }
 0x1f5   : > { %1715 = vmatprep.mubr.f32.mxu0 %v8595_v38  ;;  %v2315_v38 = vld [vmem:[%s7989_s5 + $0x20] sm:$0xff] }
 0x1f8   : > { %1719 = vmatmul.mubr.f32.gmra.mrb[22].mxu0 %v8596_v16  ;;  %v2317_v16 = vld [vmem:[%s7989_s5 + $0x30] sm:$0xff] }
 0x1f9   : > { %1726 = vmatprep.mubr.f32.mxu0 %v8597_v23  ;;  %v2365_v23 = vand.u32 4294901760, %v2315_v38 }
 0x1fc   : > { %1730 = vmatmul.mubr.f32.gmra.mrb[24].mxu0 %v8598_v9  ;;  %v2369_v9 = vand.u32 4294901760, %v2317_v16 }
 0x1fd   : > { %1737 = vmatprep.mubr.f32.mxu0 %v8599_v17  ;;  %v6779_v17 = vpack.c.bf16 %v2367_v57, %v2363_v19 }
 0x1ff   : > { %8647 = vst [vmem:[#allocation22_spill] sm:$0xff] %v6779_v17 }
 0x200   : > { %1741 = vmatmul.mubr.f32.gmra.mrb[26].mxu0 %v8600_v32  ;;  %v6781_v32 = vpack.c.bf16 %v2369_v9, %v2365_v23 }
 0x201   : > { %1748 = vmatprep.mubr.f32.mxu0 %v8601_v29  ;;  %v2320_v29 = vld [vmem:[%s7989_s5 + $0x48] sm:$0xff] }
 0x202   : > { %8648 = vst [vmem:[#allocation21_spill] sm:$0xff] %v6781_v32 }
 0x204   : > { %1752 = vmatmul.mubr.f32.gmra.mrb[28].mxu0 %v8602_v15  ;;  %v2322_v15 = vld [vmem:[%s7989_s5 + $0x58] sm:$0xff] }
 0x205   : > { %1759 = vmatprep.mubr.f32.mxu0 %v8603_v63  ;;  %v2371_v63 = vand.u32 4294901760, %v2320_v29 }
 0x208   : > { %1763 = vmatmul.mubr.f32.gmra.mrb[30].mxu0 %v8604_v24  ;;  %v2375_v24 = vand.u32 4294901760, %v2322_v15 }
 0x209   : > { %1893 = vmatprep.mubr.f32.mxu0 %v5666_v14 }
 0x20c   : > { %1895 = vmatmul.mubr.f32.vlgmr.msra.gmra.mrb[0].mxu0 %v6028_v54 }
 0x20d   : > { %4600 = vmatpush1.bf16.msra.mxu0 %v8605_v35  ;;  %1900 = vmatprep.mubr.f32.mxu0 %v8606_v44  ;;  %v2319_v35 = vld [vmem:[%s7989_s5 + $0x40] sm:$0xff] }
 0x20e   : > { %4601 = vmatprep.subr.bf16.mxu0 %v8453_v48 }
 0x210   : > { %1902 = vmatmul.mubr.f32.gmra.mrb[2].mxu0 %v8607_v11 }
 0x211   : > { %1907 = vmatprep.mubr.f32.mxu0 %v8608_v0  ;;  %4603 = vmatpush1.bf16.msra.mxu0 %v8609_v43  ;;  %v6797_v43 = vpack.c.bf16 %v2375_v24, %v2371_v63 }
 0x212   : > { %4604 = vmatprep.subr.bf16.mxu0 %v8453_v48 }
 0x213   : > { %8649 = vst [vmem:[#allocation25_spill] sm:$0xff] %v6797_v43 }
 0x214   : > { %1909 = vmatmul.mubr.f32.gmra.mrb[4].mxu0 %v8610_v45 }
 0x215   : > { %1914 = vmatprep.mubr.f32.mxu0 %v8611_v53  ;;  %4606 = vmatpush1.bf16.msra.mxu0 %v8612_v25  ;;  %v2324_v25 = vld [vmem:[%s7989_s5 + $0x68] sm:$0xff] }
 0x216   : > { %4607 = vmatprep.subr.bf16.mxu0 %v8453_v48 }
 0x218   : > { %1916 = vmatmul.mubr.f32.gmra.mrb[6].mxu0 %v8613_v39 }
 0x219   : > { %1921 = vmatprep.mubr.f32.mxu0 %v8614_v8  ;;  %4609 = vmatpush1.bf16.msra.mxu0 %v8615_v22  ;;  %v2379_v22 = vand.u32 4294901760, %v2324_v25 }
 0x21a   : > { %4610 = vmatprep.subr.bf16.mxu0 %v8453_v48 }
 0x21c   : > { %1923 = vmatmul.mubr.f32.gmra.mrb[8].mxu0 %v8616_v18 }
 0x21d   : > { %1928 = vmatprep.mubr.f32.mxu0 %v8617_v37  ;;  %4612 = vmatpush1.bf16.msra.mxu0 %v8618_v27  ;;  %v2325_v27 = vld [vmem:[%s7989_s5 + $0x70] sm:$0xff] }
 0x21e   : > { %4613 = vmatprep.subr.bf16.mxu0 %v8453_v48 }
 0x220   : > { %1930 = vmatmul.mubr.f32.gmra.mrb[10].mxu0 %v8619_v28 }
 0x221   : > { %1935 = vmatprep.mubr.f32.mxu0 %v8620_v46  ;;  %4615 = vmatpush1.bf16.msra.mxu0 %v8621_v50  ;;  %v6822_v50 = vsub.f32 %v2315_v38, %v2365_v23  ;;  %v2338_v38 = vld [vmem:[%s7989_s5 + $0xd8] sm:$0xff]  ;;  %v2337_v23 = vld [vmem:[%s7989_s5 + $0xd0] sm:$0xff] }
 0x222   : > { %4616 = vmatprep.subr.bf16.mxu0 %v8453_v48 }
 0x224   : > { %1937 = vmatmul.mubr.f32.gmra.mrb[12].mxu0 %v8622_v51 }
 0x225   : > { %1942 = vmatprep.mubr.f32.mxu0 %v8623_v36  ;;  %4618 = vmatpush1.bf16.msra.mxu0 %v8624_v52 }
 0x226   : > { %4619 = vmatprep.subr.bf16.mxu0 %v8453_v48 }
 0x228   : > { %1944 = vmatmul.mubr.f32.gmra.mrb[14].mxu0 %v8625_v33 }
 0x229   : > { %1949 = vmatprep.mubr.f32.mxu0 %v8626_v30  ;;  %4621 = vmatpush1.bf16.msra.mxu0 %v8627_v4  ;;  %v2330_v4 = vld [vmem:[%s7989_s5 + $0x98] sm:$0xff] }
 0x22a   : > { %4622 = vmatprep.subr.bf16.mxu0 %v8453_v48 }
 0x22c   : > { %1951 = vmatmul.mubr.f32.gmra.mrb[16].mxu0 %v8628_v7 }
 0x22d   : > { %1956 = vmatprep.mubr.f32.mxu0 %v8629_v58  ;;  %4624 = vmatpush1.bf16.msra.mxu0 %v8630_v41  ;;  %v2391_v41 = vand.u32 4294901760, %v2330_v4 }
 0x22e   : > { %4625 = vmatprep.subr.bf16.mxu0 %v8453_v48  ;;  %v8641_v48 = vld [vmem:[#allocation84_spill] sm:$0xff] }
 0x230   : > { %1958 = vmatmul.mubr.f32.gmra.mrb[18].mxu0 %v8631_v31 }
 0x231   : > { %1963 = vmatprep.mubr.f32.mxu0 %v8632_v40  ;;  %4627 = vmatpush1.bf16.msra.mxu0 %v8633_v49 }
 0x234   : > { %1965 = vmatmul.mubr.f32.gmra.mrb[20].mxu0 %v8634_v2 }
 0x235   : > { %1970 = vmatprep.mubr.f32.mxu0 %v8635_v10 }
 0x238   : > { %1972 = vmatmul.mubr.f32.gmra.mrb[22].mxu0 %v8636_v5 }
 0x239   : > { %1977 = vmatprep.mubr.f32.mxu0 %v8637_v3 }
 0x23c   : > { %1979 = vmatmul.mubr.f32.gmra.mrb[24].mxu0 %v8638_v55 }
 0x23d   : > { %1984 = vmatprep.mubr.f32.mxu0 %v8639_v56 }
 0x240   : > { %1986 = vmatmul.mubr.f32.gmra.mrb[26].mxu0 %v8640_v12 }
 0x241   : > { %1991 = vmatprep.mubr.f32.mxu0 %v8641_v48 }
 0x244   : > { %1993 = vmatmul.mubr.f32.gmra.mrb[28].mxu0 %v8642_v34 }
 0x245   : > { %1998 = vmatprep.mubr.f32.mxu0 %v8643_v21 }
 0x248   : > { %2000 = vmatmul.mubr.f32.gmra.mrb[30].mxu0 %v8644_v1 }
 0x249   : > { %2090 = vmatprep.mubr.f32.mxu0 %v5666_v14  ;;  %v6742_v14 = vld [vmem:[%s7989_s5 + $0x8] sm:$0xff] }
 0x24a   : > { %v2355_v60 = vand.u32 4294901760, %v6742_v14 }
 0x24c   : > { %2092 = vmatmul.mubr.f32.vlgmr.msra.gmra.mrb[0].mxu0 %v6028_v54  ;;  %v6747_v54 = vld [vmem:[%s7989_s5 + $0x18] sm:$0xff] }
 0x24d   : > { %2097 = vmatprep.mubr.f32.mxu0 %v8606_v44  ;;  %v2359_v20 = vand.u32 4294901760, %v6747_v54  ;;  %v2321_v44 = vld [vmem:[%s7989_s5 + $0x50] sm:$0xff] }
 0x24f   : > { %v6761_v47 = vpack.c.bf16 %v2359_v20, %v2355_v60 }
 0x250   : > { %2099 = vmatmul.mubr.f32.gmra.mrb[2].mxu0 %v8607_v11  ;;  %v2373_v11 = vand.u32 4294901760, %v2319_v35 }
 0x251   : > { %2104 = vmatprep.mubr.f32.mxu0 %v8608_v0  ;;  %8645 = vst [vmem:[#allocation20_spill] sm:$0xff] %v6761_v47  ;;  %4629 = vmatprep.subr.bf16.mxu1 %v6761_v47  ;;  %v2377_v0 = vand.u32 4294901760, %v2321_v44 }
 0x252   : > { %4631 = vmatpush1.bf16.msra.mxu1 %v6763_v59 }
 0x253   : > { %4633 = vmatprep.subr.bf16.mxu1 %v6779_v17 }
 0x254   : > { %2106 = vmatmul.mubr.f32.gmra.mrb[4].mxu0 %v8610_v45  ;;  %v6799_v45 = vsub.f32 %v2311_v26, %v2357_v62 }
 0x255   : > { %2111 = vmatprep.mubr.f32.mxu0 %v8611_v53  ;;  %v6801_v53 = vsub.f32 %v2313_v42, %v2361_v6  ;;  %v6875_v6 = vsub.f32 %v2320_v29, %v2371_v63  ;;  %v6906_v29 = vsub.f32 %v2330_v4, %v2391_v41  ;;  %v2341_v4 = vld [vmem:[%s7989_s5 + $0xf0] sm:$0xff] }
 0x256   : > { %4635 = vmatpush1.bf16.msra.mxu1 %v6781_v32 }
 0x257   : > { %4637 = vmatprep.subr.bf16.mxu1 %v6797_v43 }
 0x258   : > { %2113 = vmatmul.mubr.f32.gmra.mrb[6].mxu0 %v8613_v39  ;;  %v2326_v39 = vld [vmem:[%s7989_s5 + $0x78] sm:$0xff] }
 0x259   : > { %2118 = vmatprep.mubr.f32.mxu0 %v8614_v8  ;;  %v6810_v8 = vpack.c.bf16 %v2377_v0, %v2373_v11 }
 0x25b   : > { %8650 = vst [vmem:[#allocation24_spill] sm:$0xff] %v6810_v8  ;;  %4639 = vmatpush1.bf16.msra.mxu1 %v6810_v8 }
 0x25c   : > { %2120 = vmatmul.mubr.f32.gmra.mrb[8].mxu0 %v8616_v18  ;;  %v2383_v18 = vand.u32 4294901760, %v2326_v39 }
 0x25d   : > { %2125 = vmatprep.mubr.f32.mxu0 %v8617_v37  ;;  %v2323_v37 = vld [vmem:[%s7989_s5 + $0x60] sm:$0xff] }
 0x25e   : > { %v2381_v52 = vand.u32 4294901760, %v2323_v37 }
 0x260   : > { %2127 = vmatmul.mubr.f32.gmra.mrb[10].mxu0 %v8619_v28  ;;  %v6818_v28 = vsub.f32 %v2316_v13, %v2363_v19  ;;  %v6877_v13 = vsub.f32 %v2322_v15, %v2375_v24  ;;  %v6881_v19 = vsub.f32 %v2321_v44, %v2377_v0  ;;  %v2340_v24 = vld [vmem:[%s7989_s5 + $0xe8] sm:$0xff]  ;;  %v2339_v44 = vld [vmem:[%s7989_s5 + $0xe0] sm:$0xff] }
 0x261   : > { %2132 = vmatprep.mubr.f32.mxu0 %v8620_v46  ;;  %v6820_v46 = vsub.f32 %v2318_v61, %v2367_v57  ;;  %v6879_v61 = vsub.f32 %v2319_v35, %v2373_v11  ;;  %v2342_v35 = vld [vmem:[%s7989_s5 + $0xf8] sm:$0xff] }
 0x264   : > { %2134 = vmatmul.mubr.f32.gmra.mrb[12].mxu0 %v8622_v51  ;;  %v6824_v51 = vsub.f32 %v2317_v16, %v2369_v9  ;;  %v2335_v16 = vld [vmem:[%s7989_s5 + $0xc0] sm:$0xff] }
 0x265   : > { %2139 = vmatprep.mubr.f32.mxu0 %v8623_v36  ;;  %v6827_v36 = vpack.c.bf16 %v2383_v18, %v2379_v22 }
 0x267   : > { %8651 = vst [vmem:[#allocation27_spill] sm:$0xff] %v6827_v36  ;;  %4641 = vmatprep.subr.bf16.mxu1 %v6827_v36 }
 0x268   : > { %2141 = vmatmul.mubr.f32.gmra.mrb[14].mxu0 %v8625_v33  ;;  %v2385_v33 = vand.u32 4294901760, %v2325_v27 }
 0x269   : > { %2146 = vmatprep.mubr.f32.mxu0 %v8626_v30  ;;  %v2328_v30 = vld [vmem:[%s7989_s5 + $0x88] sm:$0xff] }
 0x26a   : > { %v6892_v57 = vsub.f32 %v2325_v27, %v2385_v33  ;;  %v2405_v27 = vand.u32 4294901760, %v2335_v16 }
 0x26c   : > { %2148 = vmatmul.mubr.f32.gmra.mrb[16].mxu0 %v8628_v7  ;;  %v6836_v7 = vpack.c.bf16 %v2385_v33, %v2381_v52  ;;  %v2411_v33 = vand.u32 4294901760, %v2340_v24 }
 0x26d   : > { %2153 = vmatprep.mubr.f32.mxu0 %v8629_v58  ;;  %v2387_v58 = vand.u32 4294901760, %v2328_v30 }
 0x26e   : > { %8652 = vst [vmem:[#allocation29_spill] sm:$0xff] %v6836_v7  ;;  %4643 = vmatpush1.bf16.msra.mxu1 %v6836_v7 }
 0x26f   : > { %v6904_v9 = vsub.f32 %v2328_v30, %v2387_v58  ;;  %v2415_v30 = vand.u32 4294901760, %v2342_v35 }
 0x270   : > { %2155 = vmatmul.mubr.f32.gmra.mrb[18].mxu0 %v8631_v31  ;;  %v2327_v31 = vld [vmem:[%s7989_s5 + $0x80] sm:$0xff] }
 0x271   : > { %2160 = vmatprep.mubr.f32.mxu0 %v8632_v40  ;;  %v2329_v40 = vld [vmem:[%s7989_s5 + $0x90] sm:$0xff]  ;;  %v2389_v49 = vand.u32 4294901760, %v2327_v31  ;;  %8656 = vst [vmem:[#allocation43_spill] sm:$0xff] %v6904_v9 }
 0x273   : > { %v6908_v15 = vsub.f32 %v2327_v31, %v2389_v49 }
 0x274   : > { %2162 = vmatmul.mubr.f32.gmra.mrb[20].mxu0 %v8634_v2  ;;  %v2393_v2 = vand.u32 4294901760, %v2329_v40 }
 0x275   : > { %2167 = vmatprep.mubr.f32.mxu0 %v8635_v10  ;;  %v6845_v10 = vpack.c.bf16 %v2391_v41, %v2387_v58  ;;  %8657 = vst [vmem:[#allocation39_spill] sm:$0xff] %v6908_v15  ;;  %v2413_v58 = vand.u32 4294901760, %v2339_v44 }
 0x276   : > { %v6910_v63 = vsub.f32 %v2329_v40, %v2393_v2 }
 0x277   : > { %8653 = vst [vmem:[#allocation30_spill] sm:$0xff] %v6845_v10  ;;  %4645 = vmatprep.subr.bf16.mxu1 %v6845_v10 }
 0x278   : > { %2169 = vmatmul.mubr.f32.gmra.mrb[22].mxu0 %v8636_v5  ;;  %v6847_v5 = vpack.c.bf16 %v2393_v2, %v2389_v49  ;;  %8658 = vst [vmem:[#allocation46_spill] sm:$0xff] %v6910_v63  ;;  %v6941_v49 = vsub.f32 %v2335_v16, %v2405_v27  ;;  %v8202_v16 = vand.u32 4294901760, %v6801_v53 }
 0x279   : > { %2174 = vmatprep.mubr.f32.mxu0 %v8637_v3  ;;  %v2332_v3 = vld [vmem:[%s7989_s5 + $0xa8] sm:$0xff] }
 0x27a   : > { %8654 = vst [vmem:[#allocation31_spill] sm:$0xff] %v6847_v5  ;;  %4647 = vmatpush1.bf16.msra.mxu1 %v6847_v5  ;;  %8661 = vst [vmem:[#allocation45_spill] sm:$0xff] %v6941_v49  ;;  %v8245_v10 = vand.u32 4294901760, %v6941_v49 }
 0x27c   : > { %2176 = vmatmul.mubr.f32.gmra.mrb[24].mxu0 %v8638_v55  ;;  %v2334_v55 = vld [vmem:[%s7989_s5 + $0xb8] sm:$0xff] }
 0x27d   : > { %2181 = vmatprep.mubr.f32.mxu0 %v8639_v56  ;;  %v2395_v56 = vand.u32 4294901760, %v2332_v3 }
 0x27f   : > { %v6921_v11 = vsub.f32 %v2332_v3, %v2395_v56 }
 0x280   : > { %2183 = vmatmul.mubr.f32.gmra.mrb[26].mxu0 %v8640_v12  ;;  %v2399_v12 = vand.u32 4294901760, %v2334_v55 }
 0x281   : > { %2188 = vmatprep.mubr.f32.mxu0 %v8641_v48  ;;  %v2331_v48 = vld [vmem:[%s7989_s5 + $0xa0] sm:$0xff] }
 0x282   : > { %v6873_v26 = vpack.c.bf16 %v2399_v12, %v2395_v56  ;;  %v2397_v42 = vand.u32 4294901760, %v2331_v48  ;;  %v6923_v0 = vsub.f32 %v2334_v55, %v2399_v12  ;;  %v6947_v55 = vpack.c.bf16 %v2415_v30, %v2411_v33 }
 0x283   : > { %v6949_v56 = vsub.f32 %v2340_v24, %v2411_v33  ;;  %v6952_v12 = vsub.f32 %v2342_v35, %v2415_v30  ;;  %v8203_v35 = vand.u32 4294901760, %v6818_v28 }
 0x284   : > { %2190 = vmatmul.mubr.f32.gmra.mrb[28].mxu0 %v8642_v34  ;;  %v2333_v34 = vld [vmem:[%s7989_s5 + $0xb0] sm:$0xff]  ;;  %8655 = vst [vmem:[#allocation23_spill] sm:$0xff] %v6873_v26  ;;  %4649 = vmatprep.subr.bf16.mxu1 %v6873_v26  ;;  %8664 = vst [vmem:[#allocation58_spill] sm:$0xff] %v6947_v55 }
 0x285   : > { %2195 = vmatprep.mubr.f32.mxu0 %v8643_v21  ;;  %v6865_v21 = vsub.f32 %v6742_v14, %v2355_v60  ;;  %v2401_v62 = vand.u32 4294901760, %v2333_v34  ;;  %v2336_v14 = vld [vmem:[%s7989_s5 + $0xc8] sm:$0xff]  ;;  %v6888_v60 = vsub.f32 %v2326_v39, %v2383_v18  ;;  %v6927_v39 = vsub.f32 %v2331_v48, %v2397_v42  ;;  %8665 = vst [vmem:[#allocation53_spill] sm:$0xff] %v6949_v56 }
 0x286   : > { %v2403_v18 = vand.u32 4294901760, %v2336_v14  ;;  %8666 = vst [vmem:[#allocation62_spill] sm:$0xff] %v6952_v12  ;;  %v2417_v48 = vand.u32 4294901760, %v2341_v4  ;;  %v2490_v33 = vsub.f32 %v6818_v28, %v8203_v35 }
 0x287   : > { %v8237_v26 = vand.u32 4294901760, %v6927_v39 }
 0x288   : > { %2197 = vmatmul.mubr.f32.gmra.mrb[30].mxu0 %v8644_v1  ;;  %v6870_v1 = vsub.f32 %v6747_v54, %v2359_v20  ;;  %v6886_v54 = vsub.f32 %v2324_v25, %v2379_v22  ;;  %v6890_v20 = vsub.f32 %v2323_v37, %v2381_v52  ;;  %v6925_v25 = vpack.c.bf16 %v2401_v62, %v2397_v42 }
 0x289   : > { %v6929_v22 = vsub.f32 %v2333_v34, %v2401_v62  ;;  %v2407_v37 = vand.u32 4294901760, %v2338_v38  ;;  %v2409_v52 = vand.u32 4294901760, %v2337_v23  ;;  %v6937_v31 = vsub.f32 %v2336_v14, %v2403_v18 }
 0x28a   : > { %8659 = vst [vmem:[#allocation41_spill] sm:$0xff] %v6925_v25  ;;  %4651 = vmatpush1.bf16.msra.mxu1 %v6925_v25  ;;  %v6954_v34 = vsub.f32 %v2339_v44, %v2413_v58  ;;  %v8200_v42 = vmov 0.0   ;;  %v8199_v62 = vand.u32 4294901760, %v6865_v21  ;;  %v8198_v14 = vand.u32 4294901760, %v6870_v1 }
 0x28b   : > { %v6935_v41 = vpack.c.bf16 %v2407_v37, %v2403_v18  ;;  %v6939_v40 = vsub.f32 %v2338_v38, %v2407_v37  ;;  %v6943_v2 = vpack.c.bf16 %v2409_v52, %v2405_v27  ;;  %v6945_v3 = vsub.f32 %v2337_v23, %v2409_v52  ;;  %2451 = vmatprep.mubr.f32.mxu1 %v8200_v42 }
 0x28c   : > { %8667 = vst [vmem:[#allocation56_spill] sm:$0xff] %v6954_v34  ;;  %v8197_v38 = vand.u32 4294901760, %v6799_v45  ;;  %v6963_v23 = vpack.c.bf16 %v2417_v48, %v2413_v58  ;;  %v6965_v24 = vsub.f32 %v2341_v4, %v2417_v48  ;;  %v8204_v44 = vand.u32 4294901760, %v6820_v46 }
 0x28d   : > { %8660 = vst [vmem:[#allocation51_spill] sm:$0xff] %v6935_v41  ;;  %8662 = vst [vmem:[#allocation55_spill] sm:$0xff] %v6943_v2  ;;  %4653 = vmatprep.subr.bf16.mxu1 %v6935_v41  ;;  %v2466_v18 = vsub.f32 %v6865_v21, %v8199_v62  ;;  %v2478_v37 = vsub.f32 %v6870_v1, %v8198_v14  ;;  %v2484_v52 = vsub.f32 %v6801_v53, %v8202_v16 }
 0x28e   : > { %8663 = vst [vmem:[#allocation49_spill] sm:$0xff] %v6945_v3  ;;  %4655 = vmatpush1.bf16.msra.mxu1 %v6943_v2  ;;  %8668 = vst [vmem:[#allocation63_spill] sm:$0xff] %v6963_v23  ;;  %v2472_v27 = vsub.f32 %v6799_v45, %v8197_v38  ;;  %v2502_v30 = vsub.f32 %v6820_v46, %v8204_v44  ;;  %v8216_v4 = vand.u32 4294901760, %v6822_v50  ;;  %v8214_v58 = vand.u32 4294901760, %v6824_v51 }
 0x28f   : > { %4657 = vmatprep.subr.bf16.mxu1 %v6947_v55  ;;  %8669 = vst [vmem:[#allocation71_spill] sm:$0xff] %v6965_v24  ;;  %v2467_v48 = vand.u32 4294901760, %v2466_v18  ;;  %v2479_v38 = vand.u32 4294901760, %v2478_v37  ;;  %v2485_v62 = vand.u32 4294901760, %v2484_v52  ;;  %v2491_v42 = vand.u32 4294901760, %v2490_v33 }
 0x290   : > { %v2473_v14 = vand.u32 4294901760, %v2472_v27  ;;  %v2503_v16 = vand.u32 4294901760, %v2502_v30  ;;  %v2496_v35 = vsub.f32 %v6822_v50, %v8216_v4  ;;  %v2508_v44 = vsub.f32 %v6824_v51, %v8214_v58 }
 0x291   : > { %v4660_v55 = vpack.c.bf16 %v2479_v38, %v2467_v48  ;;  %v8212_v41 = vand.u32 4294901760, %v6875_v6  ;;  %v8211_v18 = vand.u32 4294901760, %v6877_v13  ;;  %v8213_v33 = vand.u32 4294901760, %v6879_v61 }
 0x292   : > { %4659 = vmatpush1.bf16.msra.mxu1 %v6963_v23  ;;  %v6996_v2 = vpack.c.bf16 %v2485_v62, %v2473_v14  ;;  %v7000_v37 = vpack.c.bf16 %v2503_v16, %v2491_v42  ;;  %v2497_v27 = vand.u32 4294901760, %v2496_v35  ;;  %v2509_v52 = vand.u32 4294901760, %v2508_v44 }
 0x293   : > { %4661 = vmatprep.subr.bf16.mxu1 %v4660_v55  ;;  %v2514_v30 = vsub.f32 %v6875_v6, %v8212_v41  ;;  %v2526_v62 = vsub.f32 %v6877_v13, %v8211_v18  ;;  %v8215_v14 = vand.u32 4294901760, %v6881_v19  ;;  %v2520_v42 = vsub.f32 %v6879_v61, %v8213_v33 }
 0x294   : > { %v7010_v38 = vpack.c.bf16 %v2509_v52, %v2497_v27  ;;  %v8217_v16 = vand.u32 4294901760, %v6886_v54  ;;  %v8220_v55 = vand.u32 4294901760, %v6888_v60  ;;  %v8225_v18 = vand.u32 4294901760, %v6890_v20 }
 0x295   : > { %v2515_v35 = vand.u32 4294901760, %v2514_v30  ;;  %v2527_v44 = vand.u32 4294901760, %v2526_v62  ;;  %v2532_v48 = vsub.f32 %v6881_v19, %v8215_v14  ;;  %v2521_v41 = vand.u32 4294901760, %v2520_v42 }
 0x296   : > { %v2538_v27 = vsub.f32 %v6886_v54, %v8217_v16  ;;  %v2550_v52 = vsub.f32 %v6888_v60, %v8220_v55  ;;  %v8223_v33 = vand.u32 4294901760, %v6892_v57  ;;  %v2544_v62 = vsub.f32 %v6890_v20, %v8225_v18 }
 0x297   : > { %v7028_v58 = vpack.c.bf16 %v2527_v44, %v2515_v35  ;;  %v2533_v30 = vand.u32 4294901760, %v2532_v48  ;;  %v8224_v16 = vand.u32 4294901760, %v6904_v9  ;;  %v8228_v25 = vand.u32 4294901760, %v6906_v29 }
 0x298   : > { %v2539_v14 = vand.u32 4294901760, %v2538_v27  ;;  %v2551_v4 = vand.u32 4294901760, %v2550_v52  ;;  %v2556_v42 = vsub.f32 %v6892_v57, %v8223_v33  ;;  %v2545_v55 = vand.u32 4294901760, %v2544_v62 }
 0x299   : > { %v7037_v23 = vpack.c.bf16 %v2533_v30, %v2521_v41  ;;  %v8229_v35 = vand.u32 4294901760, %v6908_v15  ;;  %v2562_v27 = vsub.f32 %v6904_v9, %v8224_v16  ;;  %v8230_v52 = vand.u32 4294901760, %v6910_v63 }
 0x29a   : > { %v7041_v44 = vpack.c.bf16 %v2551_v4, %v2539_v14  ;;  %v2557_v48 = vand.u32 4294901760, %v2556_v42  ;;  %v2574_v33 = vsub.f32 %v6906_v29, %v8228_v25  ;;  %v8231_v14 = vand.u32 4294901760, %v6921_v11 }
 0x29b   : > { %v2568_v41 = vsub.f32 %v6908_v15, %v8229_v35  ;;  %v2563_v62 = vand.u32 4294901760, %v2562_v27  ;;  %v2580_v4 = vsub.f32 %v6910_v63, %v8230_v52  ;;  %v8236_v18 = vand.u32 4294901760, %v6923_v0 }
 0x29c   : > { %v7053_v30 = vpack.c.bf16 %v2557_v48, %v2545_v55  ;;  %v2575_v42 = vand.u32 4294901760, %v2574_v33  ;;  %v2586_v35 = vsub.f32 %v6921_v11, %v8231_v14  ;;  %v8238_v55 = vand.u32 4294901760, %v6929_v22 }
 0x29d   : > { %v2569_v16 = vand.u32 4294901760, %v2568_v41  ;;  %v2581_v25 = vand.u32 4294901760, %v2580_v4  ;;  %v2598_v27 = vsub.f32 %v6923_v0, %v8236_v18  ;;  %v2592_v33 = vsub.f32 %v6927_v39, %v8237_v26 }
 0x29e   : > { %v7065_v48 = vpack.c.bf16 %v2575_v42, %v2563_v62  ;;  %v2587_v52 = vand.u32 4294901760, %v2586_v35  ;;  %v2604_v4 = vsub.f32 %v6929_v22, %v8238_v55  ;;  %v8239_v14 = vand.u32 4294901760, %v6937_v31 }
 0x29f   : > { %v7073_v41 = vpack.c.bf16 %v2581_v25, %v2569_v16  ;;  %v2599_v5 = vand.u32 4294901760, %v2598_v27  ;;  %v2593_v62 = vand.u32 4294901760, %v2592_v33  ;;  %v8244_v42 = vand.u32 4294901760, %v6939_v40 }
 0x2a0   : > { %v2605_v18 = vand.u32 4294901760, %v2604_v4  ;;  %v2610_v26 = vsub.f32 %v6937_v31, %v8239_v14  ;;  %v8246_v25 = vand.u32 4294901760, %v6945_v3  ;;  %v2616_v27 = vsub.f32 %v6941_v49, %v8245_v10 }
 0x2a1   : > { %v7085_v16 = vpack.c.bf16 %v2599_v5, %v2587_v52  ;;  %v2622_v35 = vsub.f32 %v6939_v40, %v8244_v42  ;;  %v8247_v14 = vand.u32 4294901760, %v6949_v56  ;;  %v8252_v52 = vand.u32 4294901760, %v6952_v12 }
 0x2a2   : > { %v7093_v33 = vpack.c.bf16 %v2605_v18, %v2593_v62  ;;  %v2611_v55 = vand.u32 4294901760, %v2610_v26  ;;  %v2628_v4 = vsub.f32 %v6945_v3, %v8246_v25  ;;  %v2617_v5 = vand.u32 4294901760, %v2616_v27 }
 0x2a3   : > { %v2623_v7 = vand.u32 4294901760, %v2622_v35  ;;  %v8253_v36 = vand.u32 4294901760, %v6954_v34  ;;  %v2634_v10 = vsub.f32 %v6949_v56, %v8247_v14  ;;  %v8254_v18 = vand.u32 4294901760, %v6965_v24 }
 0x2a4   : > { %v2629_v42 = vand.u32 4294901760, %v2628_v4  ;;  %v2646_v62 = vsub.f32 %v6952_v12, %v8252_v52 }
 0x2a5   : > { %v7105_v26 = vpack.c.bf16 %v2623_v7, %v2611_v55  ;;  %v2640_v35 = vsub.f32 %v6954_v34, %v8253_v36  ;;  %v2635_v25 = vand.u32 4294901760, %v2634_v10  ;;  %v2652_v4 = vsub.f32 %v6965_v24, %v8254_v18  ;;  %v2266_v18 = vld [vmem:[#allocation5 + $0x10] sm:$0xff] }
 0x2a6   : > { %v7113_v27 = vpack.c.bf16 %v2629_v42, %v2617_v5  ;;  %v2647_v14 = vand.u32 4294901760, %v2646_v62 }
 0x2a7   : > { %v2641_v8 = vand.u32 4294901760, %v2640_v35  ;;  %v2653_v43 = vand.u32 4294901760, %v2652_v4 }
 0x2a8   : > { %v7118_v7 = vpack.c.bf16 %v2647_v14, %v2635_v25  ;;  %v7142_v25 = vld [vmem:[%s7987_s3] ss:$0 sm:$0xff] }
 0x2a9   : > { %v7120_v55 = vpack.c.bf16 %v2653_v43, %v2641_v8  ;;  %v7137_v43 = vld [vmem:[%s7986_s2] ss:$0 sm:$0xff] }
 0x31f   : > { %v2093_v8 = vpop.f32.mrb[0].mxu0 }
 0x320   : > { %v2209_v35 = vmul.f32 %v7137_v43, %v2093_v8  ;;  %v2095_v4 = vpop.f32.mrb[1].mxu0  ;;  %v2264_v8 = vld [vmem:[#allocation5] sm:$0xff] }
 0x321   : > { %v2265_v4 = vld [vmem:[#allocation5 + $0x8] sm:$0xff] }
 0x322   : > { %v2232_v14 = vadd.f32 %v7142_v25, %v2209_v35 }
 0x323   : > { %v2100_v5 = vpop.f32.mrb[2].mxu0 }
 0x324   : > { %v2210_v10 = vmul.f32 %v7137_v43, %v2100_v5  ;;  %v2102_v36 = vpop.f32.mrb[3].mxu0  ;;  %v2248_v32 = vmax.f32 %v2232_v14, 0.0  ;;  %v2267_v5 = vld [vmem:[#allocation5 + $0x18] sm:$0xff] }
 0x326   : > { %v2233_v62 = vadd.f32 %v7142_v25, %v2210_v10  ;;  %v2280_v36 = vadd.f32 %v2264_v8, %v2248_v32 }
 0x327   : > { %v2107_v17 = vpop.f32.mrb[4].mxu0 }
 0x328   : > { %v2249_v35 = vmax.f32 %v2233_v62, 0.0  ;;  %v2211_v59 = vmul.f32 %v7137_v43, %v2107_v17  ;;  %v2109_v47 = vpop.f32.mrb[5].mxu0 }
 0x32a   : > { %v2281_v42 = vadd.f32 %v2265_v4, %v2249_v35  ;;  %v2234_v52 = vadd.f32 %v7142_v25, %v2211_v59  ;;  %v2268_v59 = vld [vmem:[#allocation5 + $0x20] sm:$0xff] }
 0x32b   : > { %v2114_v14 = vpop.f32.mrb[6].mxu0 }
 0x32c   : > { %v2296_v15 = vmax.f32 %v2280_v36, %v2281_v42  ;;  %v2212_v63 = vmul.f32 %v7137_v43, %v2114_v14  ;;  %v2116_v9 = vpop.f32.mrb[7].mxu0  ;;  %v2250_v17 = vmax.f32 %v2234_v52, 0.0 }
 0x32e   : > { %v2235_v47 = vadd.f32 %v7142_v25, %v2212_v63  ;;  %v2282_v9 = vadd.f32 %v2266_v18, %v2250_v17 }
 0x32f   : > { %v2121_v32 = vpop.f32.mrb[8].mxu0 }
 0x330   : > { %v2251_v8 = vmax.f32 %v2235_v47, 0.0  ;;  %v2213_v4 = vmul.f32 %v7137_v43, %v2121_v32  ;;  %v2123_v35 = vpop.f32.mrb[9].mxu0  ;;  %v2269_v32 = vld [vmem:[#allocation5 + $0x28] sm:$0xff] }
 0x332   : > { %v2283_v36 = vadd.f32 %v2267_v5, %v2251_v8  ;;  %v2236_v14 = vadd.f32 %v7142_v25, %v2213_v4 }
 0x333   : > { %v2128_v52 = vpop.f32.mrb[10].mxu0 }
 0x334   : > { %v2297_v62 = vmax.f32 %v2282_v9, %v2283_v36  ;;  %v2214_v63 = vmul.f32 %v7137_v43, %v2128_v52  ;;  %v2130_v10 = vpop.f32.mrb[11].mxu0  ;;  %v2252_v3 = vmax.f32 %v2236_v14, 0.0  ;;  %v2270_v14 = vld [vmem:[#allocation5 + $0x30] sm:$0xff]  ;;  %v2271_v52 = vld [vmem:[#allocation5 + $0x38] sm:$0xff] }
 0x336   : > { %v7175_v49 = vmax.f32 %v2296_v15, %v2297_v62  ;;  %v2237_v47 = vadd.f32 %v7142_v25, %v2214_v63  ;;  %v2284_v5 = vadd.f32 %v2268_v59, %v2252_v3 }
 0x337   : > { %v2135_v35 = vpop.f32.mrb[12].mxu0 }
 0x338   : > { %v2253_v56 = vmax.f32 %v2237_v47, 0.0  ;;  %v2215_v42 = vmul.f32 %v7137_v43, %v2135_v35  ;;  %v2137_v18 = vpop.f32.mrb[13].mxu0 }
 0x33a   : > { %v2285_v17 = vadd.f32 %v2269_v32, %v2253_v56  ;;  %v2238_v8 = vadd.f32 %v7142_v25, %v2215_v42 }
 0x33b   : > { %v2142_v4 = vpop.f32.mrb[14].mxu0 }
 0x33c   : > { %v2298_v9 = vmax.f32 %v2284_v5, %v2285_v17  ;;  %v2216_v10 = vmul.f32 %v7137_v43, %v2142_v4  ;;  %v2144_v15 = vpop.f32.mrb[15].mxu0  ;;  %v2254_v62 = vmax.f32 %v2238_v8, 0.0 }
 0x33d   : > { %v2273_v15 = vld [vmem:[#allocation5 + $0x48] sm:$0xff] }
 0x33e   : > { %v2239_v36 = vadd.f32 %v7142_v25, %v2216_v10  ;;  %v2286_v18 = vadd.f32 %v2270_v14, %v2254_v62  ;;  %v2272_v10 = vld [vmem:[#allocation5 + $0x40] sm:$0xff] }
 0x33f   : > { %v2149_v63 = vpop.f32.mrb[16].mxu0 }
 0x340   : > { %v2255_v34 = vmax.f32 %v2239_v36, 0.0  ;;  %v2217_v47 = vmul.f32 %v7137_v43, %v2149_v63  ;;  %v2151_v35 = vpop.f32.mrb[17].mxu0 }
 0x342   : > { %v2287_v3 = vadd.f32 %v2271_v52, %v2255_v34  ;;  %v2240_v56 = vadd.f32 %v7142_v25, %v2217_v47 }
 0x343   : > { %v2156_v59 = vpop.f32.mrb[18].mxu0 }
 0x344   : > { %v2299_v42 = vmax.f32 %v2286_v18, %v2287_v3  ;;  %v2218_v32 = vmul.f32 %v7137_v43, %v2156_v59  ;;  %v2158_v5 = vpop.f32.mrb[19].mxu0  ;;  %v2256_v8 = vmax.f32 %v2240_v56, 0.0 }
 0x346   : > { %v2305_v17 = vmax.f32 %v2298_v9, %v2299_v42  ;;  %v2241_v4 = vadd.f32 %v7142_v25, %v2218_v32  ;;  %v2288_v14 = vadd.f32 %v2272_v10, %v2256_v8  ;;  %v2274_v42 = vld [vmem:[#allocation5 + $0x50] sm:$0xff]  ;;  %v2275_v32 = vld [vmem:[#allocation5 + $0x58] sm:$0xff] }
 0x347   : > { %v2163_v24 = vpop.f32.mrb[20].mxu0 }
 0x348   : > { %v2308_v36 = vmax.f32 %v7175_v49, %v2305_v17  ;;  %v2257_v63 = vmax.f32 %v2241_v4, 0.0  ;;  %v2219_v62 = vmul.f32 %v7137_v43, %v2163_v24  ;;  %v2165_v34 = vpop.f32.mrb[21].mxu0 }
 0x34a   : > { %v2289_v52 = vadd.f32 %v2273_v15, %v2257_v63  ;;  %v2242_v47 = vadd.f32 %v7142_v25, %v2219_v62 }
 0x34b   : > { %v2170_v35 = vpop.f32.mrb[22].mxu0 }
 0x34c   : > { %v2300_v18 = vmax.f32 %v2288_v14, %v2289_v52  ;;  %v2220_v9 = vmul.f32 %v7137_v43, %v2170_v35  ;;  %v2172_v3 = vpop.f32.mrb[23].mxu0  ;;  %v2258_v56 = vmax.f32 %v2242_v47, 0.0  ;;  %v2276_v35 = vld [vmem:[#allocation5 + $0x60] sm:$0xff] }
 0x34e   : > { %v2243_v59 = vadd.f32 %v7142_v25, %v2220_v9  ;;  %v2290_v4 = vadd.f32 %v2274_v42, %v2258_v56  ;;  %v2277_v9 = vld [vmem:[#allocation5 + $0x68] sm:$0xff] }
 0x34f   : > { %v2177_v5 = vpop.f32.mrb[24].mxu0 }
 0x350   : > { %v2259_v49 = vmax.f32 %v2243_v59, 0.0  ;;  %v2221_v17 = vmul.f32 %v7137_v43, %v2177_v5  ;;  %v2179_v24 = vpop.f32.mrb[25].mxu0 }
 0x352   : > { %v2291_v8 = vadd.f32 %v2275_v32, %v2259_v49  ;;  %v2244_v10 = vadd.f32 %v7142_v25, %v2221_v17 }
 0x353   : > { %v2184_v15 = vpop.f32.mrb[26].mxu0 }
 0x354   : > { %v2301_v63 = vmax.f32 %v2290_v4, %v2291_v8  ;;  %v2222_v62 = vmul.f32 %v7137_v43, %v2184_v15  ;;  %v2186_v34 = vpop.f32.mrb[27].mxu0  ;;  %v2260_v52 = vmax.f32 %v2244_v10, 0.0  ;;  %v2278_v15 = vld [vmem:[#allocation5 + $0x70] sm:$0xff] }
 0x356   : > { %v2306_v14 = vmax.f32 %v2300_v18, %v2301_v63  ;;  %v2245_v47 = vadd.f32 %v7142_v25, %v2222_v62  ;;  %v2292_v56 = vadd.f32 %v2276_v35, %v2260_v52  ;;  %v2279_v63 = vld [vmem:[#allocation5 + $0x78] sm:$0xff] }
 0x357   : > { %v2191_v3 = vpop.f32.mrb[28].mxu0 }
 0x358   : > { %v2261_v59 = vmax.f32 %v2245_v47, 0.0  ;;  %v2223_v5 = vmul.f32 %v7137_v43, %v2191_v3  ;;  %v2193_v24 = vpop.f32.mrb[29].mxu0 }
 0x35a   : > { %v2293_v42 = vadd.f32 %v2277_v9, %v2261_v59  ;;  %v2246_v32 = vadd.f32 %v7142_v25, %v2223_v5  ;;  %v8670_v5 = vmov 0.0  }
 0x35b   : > { %v2198_v49 = vpop.f32.mrb[30].mxu0 }
 0x35c   : > { %v2302_v17 = vmax.f32 %v2292_v56, %v2293_v42  ;;  %v2224_v4 = vmul.f32 %v7137_v43, %v2198_v49  ;;  %v2200_v8 = vpop.f32.mrb[31].mxu0  ;;  %v2262_v18 = vmax.f32 %v2246_v32, 0.0 }
 0x35e   : > { %v2247_v10 = vadd.f32 %v7142_v25, %v2224_v4  ;;  %v2294_v34 = vadd.f32 %v2278_v15, %v2262_v18  ;;  %v7294_v15 = vld [vmem:[#allocation7 + $0xa8] sm:$0xff] }
 0x35f   : > { %8687 = vst [vmem:[#allocation40_spill] sm:$0xff] %v7294_v15 }
 0x360   : > { %v2263_v62 = vmax.f32 %v2247_v10, 0.0  ;;  %v7292_v10 = vld [vmem:[#allocation7 + $0xa0] sm:$0xff] }
 0x361   : > { %8686 = vst [vmem:[#allocation44_spill] sm:$0xff] %v7292_v10 }
 0x362   : > { %v2295_v47 = vadd.f32 %v2279_v63, %v2263_v62  ;;  %v8688_v63 = vpack.c.bf16 %v6877_v13, %v6875_v6  ;;  %v8281_v62 = vand.u32 4294901760, %v7292_v10 }
 0x364   : > { %v2303_v12 = vmax.f32 %v2294_v34, %v2295_v47  ;;  %v8283_v34 = vand.u32 4294901760, %v7294_v15  ;;  %v7301_v47 = vld [vmem:[#allocation7 + $0x20] sm:$0xff] }
 0x365   : > { %8689 = vst [vmem:[#allocation18_spill] sm:$0xff] %v7301_v47 }
 0x366   : > { %v2307_v3 = vmax.f32 %v2302_v17, %v2303_v12  ;;  %v7228_v12 = vld [vmem:[#allocation7 + $0x80] sm:$0xff]  ;;  %v8684_v17 = vpack.c.bf16 %v6824_v51, %v6822_v50 }
 0x368   : > { %v2309_v24 = vmax.f32 %v2306_v14, %v2307_v3  ;;  %v7303_v3 = vld [vmem:[#allocation7 + $0x28] sm:$0xff] }
 0x369   : > { %8690 = vst [vmem:[#allocation48_spill] sm:$0xff] %v7303_v3 }
 0x36a   : > { %v2310_v52 = vmax.f32 %v2308_v36, %v2309_v24 }
 0x36c   : > { %v7199_v35 = vand.u32 4294901760, %v2310_v52 }
 0x36e   : > { %v7202_v9 = vsub.f32 %v2310_v52, %v7199_v35 }
 0x370   : > { %v8294_v43 = vand.u32 4294901760, %v7202_v9 }
 0x372   : > { %v2455_v25 = vsub.f32 %v7202_v9, %v8294_v43 }
 0x374   : > { %v2456_v59 = vand.u32 4294901760, %v2455_v25  ;;  %v8286_v25 = vand.u32 4294901760, %v7301_v47 }
 0x376   : > { %2457 = vmatmul.mubr.f32.vlgmr.msra.gmra.mrb[0].mxu1 %v2456_v59  ;;  %v7319_v59 = vsub.f32 %v7292_v10, %v8281_v62  ;;  %v7337_v62 = vld [vmem:[#allocation7 + $0xb8] sm:$0xff]  ;;  %v8744_v10 = vand.u32 4294901760, %v6801_v53 }
 0x377   : > { %4663 = vmatpush1.bf16.msra.mxu1 %v6996_v2  ;;  %2687 = vmatprep.mubr.f32.mxu1 %v8670_v5  ;;  %v8671_v2 = vpack.c.bf16 %v6870_v1, %v6865_v21  ;;  %8698 = vst [vmem:[#allocation50_spill] sm:$0xff] %v7337_v62 }
 0x378   : > { %4665 = vmatprep.subr.bf16.mxu1 %v7000_v37  ;;  %v8672_v37 = vpack.c.bf16 %v6801_v53, %v6799_v45  ;;  %8693 = vst [vmem:[#allocation52_spill] sm:$0xff] %v7319_v59  ;;  %v8723_v59 = vld [vmem:[#allocation56_spill] sm:$0xff]  ;;  %v8751_v53 = vand.u32 4294901760, %v6877_v13 }
 0x37b   : > { %4667 = vmatpush1.bf16.msra.mxu1 %v7010_v38  ;;  %v8292_v38 = vand.u32 4294901760, %v7228_v12 }
 0x37c   : > { %4669 = vmatprep.subr.bf16.mxu1 %v7028_v58  ;;  %v7232_v58 = vld [vmem:[#allocation7] sm:$0xff] }
 0x37d   : > { %v7259_v36 = vsub.f32 %v7228_v12, %v8292_v38 }
 0x37f   : > { %4671 = vmatpush1.bf16.msra.mxu1 %v7037_v23  ;;  %v7230_v23 = vld [vmem:[#allocation7 + $0x88] sm:$0xff]  ;;  %8679 = vst [vmem:[#allocation82_spill] sm:$0xff] %v7259_v36  ;;  %v8737_v36 = vld [vmem:[#allocation51_spill] sm:$0xff] }
 0x380   : > { %4673 = vmatprep.subr.bf16.mxu1 %v7041_v44  ;;  %v8291_v44 = vand.u32 4294901760, %v7230_v23 }
 0x382   : > { %v7264_v14 = vsub.f32 %v7230_v23, %v8291_v44 }
 0x383   : > { %4675 = vmatpush1.bf16.msra.mxu1 %v7053_v30  ;;  %v7240_v30 = vld [vmem:[#allocation7 + $0x8] sm:$0xff] }
 0x384   : > { %4677 = vmatprep.subr.bf16.mxu1 %v7065_v48  ;;  %8673 = vst [vmem:[#allocation67_spill] sm:$0xff] %v7240_v30  ;;  %v8290_v48 = vand.u32 4294901760, %v7232_v58  ;;  %8680 = vst [vmem:[#allocation78_spill] sm:$0xff] %v7264_v14  ;;  %v8736_v14 = vld [vmem:[#allocation41_spill] sm:$0xff] }
 0x386   : > { %v7269_v56 = vsub.f32 %v7232_v58, %v8290_v48  ;;  %v8705_v48 = vpack.c.bf16 %v6892_v57, %v6890_v20 }
 0x387   : > { %4679 = vmatpush1.bf16.msra.mxu1 %v7073_v41  ;;  %v7243_v41 = vld [vmem:[#allocation7 + $0x90] sm:$0xff] }
 0x388   : > { %4681 = vmatprep.subr.bf16.mxu1 %v7085_v16  ;;  %8674 = vst [vmem:[#allocation74_spill] sm:$0xff] %v7243_v41  ;;  %v7245_v16 = vld [vmem:[#allocation7 + $0x98] sm:$0xff]  ;;  %8681 = vst [vmem:[#allocation86_spill] sm:$0xff] %v7269_v56  ;;  %v8735_v56 = vld [vmem:[#allocation23_spill] sm:$0xff] }
 0x389   : > { %8675 = vst [vmem:[#allocation70_spill] sm:$0xff] %v7245_v16  ;;  %v8285_v42 = vand.u32 4294901760, %v7245_v16 }
 0x38b   : > { %4683 = vmatpush1.bf16.msra.mxu1 %v7093_v33  ;;  %v8676_v33 = vpack.c.bf16 %v6820_v46, %v6818_v28  ;;  %v7288_v4 = vsub.f32 %v7245_v16, %v8285_v42  ;;  %v7349_v42 = vld [vmem:[#allocation7 + $0x30] sm:$0xff]  ;;  %v8746_v16 = vand.u32 4294901760, %v6820_v46  ;;  %v8752_v46 = vand.u32 4294901760, %v6879_v61 }
 0x38c   : > { %4685 = vmatprep.subr.bf16.mxu1 %v7105_v26  ;;  %v8288_v26 = vand.u32 4294901760, %v7240_v30  ;;  %8701 = vst [vmem:[#allocation60_spill] sm:$0xff] %v7349_v42 }
 0x38d   : > { %8685 = vst [vmem:[#allocation38_spill] sm:$0xff] %v7288_v4  ;;  %v8730_v4 = vld [vmem:[#allocation24_spill] sm:$0xff] }
 0x38e   : > { %v7275_v32 = vsub.f32 %v7240_v30, %v8288_v26  ;;  %v8747_v30 = vand.u32 4294901760, %v7202_v9 }
 0x38f   : > { %4687 = vmatpush1.bf16.msra.mxu1 %v7113_v27  ;;  %v8287_v27 = vand.u32 4294901760, %v7243_v41 }
 0x390   : > { %4689 = vmatprep.subr.bf16.mxu1 %v7118_v7  ;;  %v7252_v7 = vld [vmem:[#allocation7 + $0x10] sm:$0xff]  ;;  %8682 = vst [vmem:[#allocation83_spill] sm:$0xff] %v7275_v32  ;;  %v8734_v32 = vld [vmem:[#allocation31_spill] sm:$0xff] }
 0x391   : > { %8677 = vst [vmem:[#allocation79_spill] sm:$0xff] %v7252_v7  ;;  %v7280_v49 = vsub.f32 %v7243_v41, %v8287_v27  ;;  %v8284_v8 = vand.u32 4294901760, %v7252_v7  ;;  %v8298_v27 = vand.u32 4294901760, %v7349_v42 }
 0x393   : > { %4691 = vmatpush1.bf16.msra.mxu1 %v7120_v55  ;;  %v7254_v55 = vld [vmem:[#allocation7 + $0x18] sm:$0xff]  ;;  %8683 = vst [vmem:[#allocation17_spill] sm:$0xff] %v7280_v49  ;;  %v7308_v24 = vsub.f32 %v7252_v7, %v8284_v8  ;;  %v8295_v8 = vand.u32 4294901760, %v7337_v62  ;;  %v7371_v44 = vsub.f32 %v7349_v42, %v8298_v27  ;;  %v8714_v27 = vpack.c.bf16 %v6929_v22, %v6927_v39  ;;  %v8732_v49 = vld [vmem:[#allocation29_spill] sm:$0xff] }
 0x394   : > { %4693 = vmatprep.subr.bf16.mxu1 %v8671_v2  ;;  %8678 = vst [vmem:[#allocation75_spill] sm:$0xff] %v7254_v55  ;;  %v8282_v18 = vand.u32 4294901760, %v7254_v55  ;;  %v7324_v2 = vsub.f32 %v7294_v15, %v8283_v34  ;;  %v8739_v42 = vld [vmem:[#allocation58_spill] sm:$0xff]  ;;  %v8743_v15 = vand.u32 4294901760, %v6799_v45  ;;  %v8745_v7 = vand.u32 4294901760, %v6818_v28 }
 0x395   : > { %8691 = vst [vmem:[#allocation42_spill] sm:$0xff] %v7308_v24  ;;  %8706 = vst [vmem:[#allocation59_spill] sm:$0xff] %v7371_v44  ;;  %v8717_v44 = vld [vmem:[#allocation45_spill] sm:$0xff]  ;;  %v8750_v45 = vand.u32 4294901760, %v6875_v6  ;;  %v8757_v6 = vand.u32 4294901760, %v6892_v57  ;;  %v8764_v57 = vand.u32 4294901760, %v6927_v39 }
 0x396   : > { %2689 = vmatmul.mubr.f32.vlgmr.msra.gmra.mrb[0].mxu1 %v7199_v35  ;;  %v7313_v52 = vsub.f32 %v7254_v55, %v8282_v18  ;;  %8694 = vst [vmem:[#allocation47_spill] sm:$0xff] %v7324_v2  ;;  %v8699_v18 = vpack.c.bf16 %v6888_v60, %v6886_v54  ;;  %v8728_v24 = vld [vmem:[#allocation21_spill] sm:$0xff]  ;;  %v4758_v55 = vpack.c.bf16 %v8744_v10, %v8743_v15 }
 0x397   : > { %4695 = vmatpush1.bf16.msra.mxu1 %v8672_v37  ;;  %2823 = vmatprep.mubr.f32.mxu1 %v8670_v5  ;;  %v8289_v37 = vand.u32 4294901760, %v7303_v3  ;;  %v4760_v41 = vpack.c.bf16 %v8746_v16, %v8745_v7  ;;  %v4764_v28 = vpack.c.bf16 %v8751_v53, %v8750_v45  ;;  %v8800_v53 = vld [vmem:[#allocation50_spill] sm:$0xff] }
 0x398   : > { %4697 = vmatprep.subr.bf16.mxu1 %v8676_v33  ;;  %8692 = vst [vmem:[#allocation26_spill] sm:$0xff] %v7313_v52  ;;  %v8695_v33 = vpack.c.bf16 %v6881_v19, %v6879_v61  ;;  %v8759_v61 = vand.u32 4294901760, %v6906_v29 }
 0x399   : > { %v7345_v34 = vsub.f32 %v7303_v3, %v8289_v37  ;;  %v7363_v37 = vsub.f32 %v7337_v62, %v8295_v8  ;;  %v8710_v8 = vld [vmem:[#allocation46_spill] sm:$0xff]  ;;  %v8740_v62 = vand.u32 4294901760, %v6865_v21  ;;  %v8748_v21 = vand.u32 4294901760, %v6822_v50 }
 0x39a   : > { %v8754_v50 = vand.u32 4294901760, %v6886_v54  ;;  %v8761_v54 = vand.u32 4294901760, %v8710_v8 }
 0x39b   : > { %4699 = vmatpush1.bf16.msra.mxu1 %v8684_v17  ;;  %v7333_v17 = vsub.f32 %v7301_v47, %v8286_v25  ;;  %8700 = vst [vmem:[#allocation32_spill] sm:$0xff] %v7345_v34  ;;  %v7351_v25 = vld [vmem:[#allocation7 + $0x38] sm:$0xff]  ;;  %8704 = vst [vmem:[#allocation64_spill] sm:$0xff] %v7363_v37  ;;  %v8711_v37 = vld [vmem:[#allocation39_spill] sm:$0xff] }
 0x39c   : > { %4701 = vmatprep.subr.bf16.mxu1 %v8688_v63  ;;  %v7335_v63 = vld [vmem:[#allocation7 + $0xb0] sm:$0xff]  ;;  %8702 = vst [vmem:[#allocation54_spill] sm:$0xff] %v7351_v25  ;;  %v8299_v26 = vand.u32 4294901760, %v7351_v25  ;;  %v8742_v47 = vld [vmem:[#allocation63_spill] sm:$0xff] }
 0x39d   : > { %8696 = vst [vmem:[#allocation28_spill] sm:$0xff] %v7333_v17  ;;  %8697 = vst [vmem:[#allocation57_spill] sm:$0xff] %v7335_v63  ;;  %v8720_v17 = vld [vmem:[#allocation53_spill] sm:$0xff] }
 0x39e   : > { %v7376_v38 = vsub.f32 %v7351_v25, %v8299_v26  ;;  %v8715_v26 = vpack.c.bf16 %v6939_v40, %v6937_v31  ;;  %v8738_v25 = vld [vmem:[#allocation55_spill] sm:$0xff] }
 0x39f   : > { %4703 = vmatpush1.bf16.msra.mxu1 %v8695_v33  ;;  %v8293_v33 = vand.u32 4294901760, %v7335_v63 }
 0x3a0   : > { %4705 = vmatprep.subr.bf16.mxu1 %v8699_v18  ;;  %8707 = vst [vmem:[#allocation34_spill] sm:$0xff] %v7376_v38  ;;  %v8716_v38 = vld [vmem:[#allocation49_spill] sm:$0xff] }
 0x3a1   : > { %v7358_v18 = vsub.f32 %v7335_v63, %v8293_v33  ;;  %v8708_v33 = vld [vmem:[#allocation43_spill] sm:$0xff]  ;;  %v8718_v34 = vpack.c.bf16 %v8716_v38, %v8717_v44  ;;  %v8741_v63 = vand.u32 4294901760, %v6870_v1  ;;  %v8749_v1 = vand.u32 4294901760, %v6824_v51 }
 0x3a2   : > { %v8709_v43 = vpack.c.bf16 %v6906_v29, %v8708_v33  ;;  %v8755_v51 = vand.u32 4294901760, %v6888_v60  ;;  %v8758_v13 = vand.u32 4294901760, %v8708_v33  ;;  %v8762_v60 = vand.u32 4294901760, %v6921_v11 }
 0x3a3   : > { %8703 = vst [vmem:[#allocation33_spill] sm:$0xff] %v7358_v18  ;;  %4707 = vmatpush1.bf16.msra.mxu1 %v8705_v48  ;;  %v8712_v18 = vpack.c.bf16 %v8710_v8, %v8711_v37  ;;  %v8713_v48 = vpack.c.bf16 %v6923_v0, %v6921_v11  ;;  %v4756_v3 = vpack.c.bf16 %v8741_v63, %v8740_v62  ;;  %v8766_v29 = vand.u32 4294901760, %v6937_v31 }
 0x3a4   : > { %4709 = vmatprep.subr.bf16.mxu1 %v8709_v43  ;;  %v8719_v43 = vld [vmem:[#allocation62_spill] sm:$0xff]  ;;  %v4762_v62 = vpack.c.bf16 %v8749_v1, %v8748_v21  ;;  %v4768_v16 = vpack.c.bf16 %v8755_v51, %v8754_v50  ;;  %v8768_v8 = vand.u32 4294901760, %v8717_v44  ;;  %v8769_v11 = vand.u32 4294901760, %v8716_v38 }
 0x3a5   : > { %v8721_v2 = vpack.c.bf16 %v8719_v43, %v8720_v17  ;;  %v8771_v39 = vand.u32 4294901760, %v8719_v43  ;;  %v8776_v44 = vand.u32 4294901760, %v7232_v58  ;;  %v8790_v43 = vld [vmem:[#allocation40_spill] sm:$0xff]  ;;  %v8805_v50 = vld [vmem:[#allocation54_spill] sm:$0xff] }
 0x3a6   : > { %v4782_v21 = vpack.c.bf16 %v8769_v11, %v8768_v8  ;;  %v8806_v51 = vand.u32 4294901760, %v8805_v50 }
 0x3a7   : > { %4711 = vmatpush1.bf16.msra.mxu1 %v8712_v18  ;;  %v8722_v18 = vld [vmem:[#allocation71_spill] sm:$0xff] }
 0x3a8   : > { %4713 = vmatprep.subr.bf16.mxu1 %v8713_v48  ;;  %v8724_v52 = vpack.c.bf16 %v8722_v18, %v8723_v59  ;;  %v8725_v48 = vld [vmem:[#allocation20_spill] sm:$0xff]  ;;  %v8773_v31 = vand.u32 4294901760, %v8722_v18  ;;  %v8791_v18 = vand.u32 4294901760, %v8790_v43  ;;  %v8816_v43 = vld [vmem:[#allocation86_spill] sm:$0xff] }
 0x3ab   : > { %4715 = vmatpush1.bf16.msra.mxu1 %v8714_v27  ;;  %v8726_v27 = vld [vmem:[#allocation19_spill] sm:$0xff] }
 0x3ac   : > { %4717 = vmatprep.subr.bf16.mxu1 %v8715_v26  ;;  %v8727_v26 = vld [vmem:[#allocation22_spill] sm:$0xff] }
 0x3af   : > { %4719 = vmatpush1.bf16.msra.mxu1 %v8718_v34  ;;  %v8729_v34 = vld [vmem:[#allocation25_spill] sm:$0xff] }
 0x3b0   : > { %4721 = vmatprep.subr.bf16.mxu1 %v8721_v2  ;;  %v8731_v2 = vld [vmem:[#allocation27_spill] sm:$0xff] }
 0x3b3   : > { %4723 = vmatpush1.bf16.msra.mxu1 %v8724_v52  ;;  %v8733_v52 = vld [vmem:[#allocation30_spill] sm:$0xff] }
 0x3b4   : > { %4725 = vmatprep.subr.bf16.mxu1 %v8725_v48 }
 0x3b6   : > { %2826 = vmatmul.mubr.f32.vlgmr.msra.gmra.mrb[0].mxu1 %v7202_v9  ;;  %v8753_v9 = vand.u32 4294901760, %v6881_v19  ;;  %v8760_v19 = vand.u32 4294901760, %v8711_v37  ;;  %v8767_v37 = vand.u32 4294901760, %v6939_v40  ;;  %v8774_v40 = vand.u32 4294901760, %v7228_v12  ;;  %v8783_v12 = vld [vmem:[#allocation79_spill] sm:$0xff] }
 0x3b7   : > { %4727 = vmatpush1.bf16.msra.mxu1 %v8726_v27  ;;  %2928 = vmatprep.mubr.f32.mxu1 %v8670_v5 }
 0x3b8   : > { %4729 = vmatprep.subr.bf16.mxu1 %v8727_v26  ;;  %v4774_v10 = vpack.c.bf16 %v8761_v54, %v8760_v19  ;;  %v4780_v33 = vpack.c.bf16 %v8767_v37, %v8766_v29  ;;  %v3223_v29 = vld [vmem:[#allocation7 + $0x58] sm:$0xff] }
 0x3bb   : > { %4731 = vmatpush1.bf16.msra.mxu1 %v8728_v24 }
 0x3bc   : > { %4733 = vmatprep.subr.bf16.mxu1 %v8729_v34 }
 0x3bf   : > { %4735 = vmatpush1.bf16.msra.mxu1 %v8730_v4 }
 0x3c0   : > { %4737 = vmatprep.subr.bf16.mxu1 %v8731_v2 }
 0x3c3   : > { %4739 = vmatpush1.bf16.msra.mxu1 %v8732_v49 }
 0x3c4   : > { %4741 = vmatprep.subr.bf16.mxu1 %v8733_v52 }
 0x3c7   : > { %4743 = vmatpush1.bf16.msra.mxu1 %v8734_v32 }
 0x3c8   : > { %4745 = vmatprep.subr.bf16.mxu1 %v8735_v56 }
 0x3cb   : > { %4747 = vmatpush1.bf16.msra.mxu1 %v8736_v14 }
 0x3cc   : > { %4749 = vmatprep.subr.bf16.mxu1 %v8737_v36 }
 0x3cf   : > { %4751 = vmatpush1.bf16.msra.mxu1 %v8738_v25 }
 0x3d0   : > { %4753 = vmatprep.subr.bf16.mxu1 %v8739_v42 }
 0x3d3   : > { %4755 = vmatpush1.bf16.msra.mxu1 %v8742_v47 }
 0x3d4   : > { %4757 = vmatprep.subr.bf16.mxu1 %v4756_v3  ;;  %v8765_v3 = vand.u32 4294901760, %v6929_v22  ;;  %v8772_v22 = vand.u32 4294901760, %v8723_v59  ;;  %v8788_v59 = vld [vmem:[#allocation44_spill] sm:$0xff] }
 0x3d6   : > { %2932 = vmatmul.mubr.f32.vlgmr.msra.gmra.mrb[0].mxu1 %v8747_v30  ;;  %v4766_v30 = vpack.c.bf16 %v8753_v9, %v8752_v46  ;;  %v4778_v63 = vpack.c.bf16 %v8765_v3, %v8764_v57  ;;  %v8803_v9 = vld [vmem:[#allocation60_spill] sm:$0xff] }
 0x3d7   : > { %4759 = vmatpush1.bf16.msra.mxu1 %v4758_v55  ;;  %3098 = vmatprep.mubr.f32.mxu1 %v8670_v5  ;;  %v4772_v55 = vpack.c.bf16 %v8759_v61, %v8758_v13  ;;  %v3220_v61 = vld [vmem:[#allocation7 + $0x40] sm:$0xff] }
 0x3d8   : > { %4761 = vmatprep.subr.bf16.mxu1 %v4760_v41  ;;  %v8756_v41 = vand.u32 4294901760, %v6890_v20  ;;  %v8763_v20 = vand.u32 4294901760, %v6923_v0  ;;  %v8770_v0 = vand.u32 4294901760, %v8720_v17  ;;  %v8789_v17 = vand.u32 4294901760, %v8788_v59 }
 0x3d9   : > { %v3276_v19 = vand.u32 4294901760, %v3220_v61 }
 0x3da   : > { %v4770_v7 = vpack.c.bf16 %v8757_v6, %v8756_v41  ;;  %v4776_v15 = vpack.c.bf16 %v8763_v20, %v8762_v60  ;;  %v4784_v1 = vpack.c.bf16 %v8771_v39, %v8770_v0  ;;  %v3236_v41 = vld [vmem:[#allocation7 + $0xc0] sm:$0xff]  ;;  %v3237_v6 = vld [vmem:[#allocation7 + $0xc8] sm:$0xff]  ;;  %v3238_v20 = vld [vmem:[#allocation7 + $0xd0] sm:$0xff] }
 0x3db   : > { %4763 = vmatpush1.bf16.msra.mxu1 %v4762_v62  ;;  %v4786_v62 = vpack.c.bf16 %v8773_v31, %v8772_v22  ;;  %v3327_v13 = vand.u32 4294901760, %v3237_v6  ;;  %v3330_v57 = vand.u32 4294901760, %v3238_v20  ;;  %v3241_v0 = vld [vmem:[#allocation7 + $0xe8] sm:$0xff]  ;;  %v3224_v22 = vld [vmem:[#allocation7 + $0x60] sm:$0xff] }
 0x3dc   : > { %4765 = vmatprep.subr.bf16.mxu1 %v4764_v28  ;;  %v8801_v28 = vand.u32 4294901760, %v8800_v53  ;;  %v3225_v31 = vld [vmem:[#allocation7 + $0x68] sm:$0xff] }
 0x3dd   : > { %v7594_v53 = vsub.f32 %v3237_v6, %v3327_v13 }
 0x3df   : > { %4767 = vmatpush1.bf16.msra.mxu1 %v4766_v30  ;;  %v8804_v30 = vand.u32 4294901760, %v8803_v9  ;;  %8820 = vst [vmem:[#allocation85_spill] sm:$0xff] %v7594_v53 }
 0x3e0   : > { %4769 = vmatprep.subr.bf16.mxu1 %v4768_v16 }
 0x3e1   : > { %v7558_v16 = vpack.c.bf16 %v8806_v51, %v8804_v30  ;;  %v7600_v30 = vsub.f32 %v3238_v20, %v3330_v57 }
 0x3e3   : > { %4771 = vmatpush1.bf16.msra.mxu1 %v4770_v7  ;;  %8807 = vst [vmem:[#allocation65_spill] sm:$0xff] %v7558_v16  ;;  %v3324_v7 = vand.u32 4294901760, %v3236_v41  ;;  %8823 = vst [vmem:[#allocation84_spill] sm:$0xff] %v7600_v30 }
 0x3e4   : > { %4773 = vmatprep.subr.bf16.mxu1 %v4772_v55  ;;  %v3221_v55 = vld [vmem:[#allocation7 + $0x48] sm:$0xff] }
 0x3e5   : > { %v3279_v54 = vand.u32 4294901760, %v3221_v55 }
 0x3e7   : > { %4775 = vmatpush1.bf16.msra.mxu1 %v4774_v10  ;;  %v7562_v10 = vpack.c.bf16 %v3327_v13, %v3324_v7  ;;  %v7564_v60 = vpack.c.bf16 %v3279_v54, %v3276_v19  ;;  %v7598_v9 = vsub.f32 %v3221_v55, %v3279_v54 }
 0x3e8   : > { %4777 = vmatprep.subr.bf16.mxu1 %v4776_v15  ;;  %v3239_v15 = vld [vmem:[#allocation7 + $0xd8] sm:$0xff] }
 0x3e9   : > { %8808 = vst [vmem:[#allocation36_spill] sm:$0xff] %v7562_v10  ;;  %8809 = vst [vmem:[#allocation73_spill] sm:$0xff] %v7564_v60  ;;  %v3333_v3 = vand.u32 4294901760, %v3239_v15 }
 0x3ea   : > { %8822 = vst [vmem:[#allocation88_spill] sm:$0xff] %v7598_v9 }
 0x3eb   : > { %4779 = vmatpush1.bf16.msra.mxu1 %v4778_v63  ;;  %v3222_v63 = vld [vmem:[#allocation7 + $0x50] sm:$0xff]  ;;  %v7568_v8 = vpack.c.bf16 %v3333_v3, %v3330_v57  ;;  %v7602_v50 = vsub.f32 %v3239_v15, %v3333_v3 }
 0x3ec   : > { %4781 = vmatprep.subr.bf16.mxu1 %v4780_v33  ;;  %v3282_v37 = vand.u32 4294901760, %v3222_v63  ;;  %v3285_v33 = vand.u32 4294901760, %v3223_v29 }
 0x3ed   : > { %8810 = vst [vmem:[#allocation68_spill] sm:$0xff] %v7568_v8  ;;  %8824 = vst [vmem:[#allocation89_spill] sm:$0xff] %v7602_v50 }
 0x3ee   : > { %v7570_v11 = vpack.c.bf16 %v3285_v33, %v3282_v37  ;;  %v7604_v51 = vsub.f32 %v3222_v63, %v3282_v37  ;;  %v8836_v63 = vld [vmem:[#allocation17_spill] sm:$0xff]  ;;  %v8837_v37 = vld [vmem:[#allocation38_spill] sm:$0xff] }
 0x3ef   : > { %4783 = vmatpush1.bf16.msra.mxu1 %v4782_v21  ;;  %v3240_v21 = vld [vmem:[#allocation7 + $0xe0] sm:$0xff] }
 0x3f0   : > { %4785 = vmatprep.subr.bf16.mxu1 %v4784_v1  ;;  %8811 = vst [vmem:[#allocation37_spill] sm:$0xff] %v7570_v11  ;;  %v3336_v39 = vand.u32 4294901760, %v3240_v21  ;;  %v3339_v1 = vand.u32 4294901760, %v3241_v0  ;;  %8825 = vst [vmem:[#allocation87_spill] sm:$0xff] %v7604_v51 }
 0x3f3   : > { %4787 = vmatpush1.bf16.msra.mxu1 %v4786_v62  ;;  %v3288_v62 = vand.u32 4294901760, %v3224_v22 }
 0x3f4   : > { %4789 = vmatprep.subr.bf16.mxu1 %v8725_v48  ;;  %v7537_v48 = vpack.c.bf16 %v8791_v18, %v8789_v17  ;;  %v8335_v18 = vand.u32 4294901760, %v8816_v43 }
 0x3f5   : > { %v7613_v6 = vsub.f32 %v3224_v22, %v3288_v62  ;;  %v8839_v22 = vld [vmem:[#allocation26_spill] sm:$0xff] }
 0x3f6   : > { %3100 = vmatmul.mubr.f32.vlgmr.msra.gmra.mrb[0].mxu1 %v7199_v35  ;;  %8792 = vst [vmem:[#allocation61_spill] sm:$0xff] %v7537_v48  ;;  %v3367_v57 = vsub.f32 %v8816_v43, %v8335_v18  ;;  %v8844_v18 = vld [vmem:[#allocation33_spill] sm:$0xff] }
 0x3f7   : > { %4791 = vmatpush1.bf16.msra.mxu1 %v8726_v27  ;;  %3202 = vmatprep.mubr.f32.mxu1 %v8670_v5  ;;  %v8775_v5 = vand.u32 4294901760, %v7230_v23  ;;  %v8784_v23 = vand.u32 4294901760, %v8783_v12  ;;  %v8793_v27 = vld [vmem:[#allocation18_spill] sm:$0xff]  ;;  %8829 = vst [vmem:[#allocation39_spill] sm:$0xff] %v7613_v6 }
 0x3f8   : > { %4793 = vmatprep.subr.bf16.mxu1 %v8727_v26  ;;  %v8795_v26 = vld [vmem:[#allocation48_spill] sm:$0xff]  ;;  %v8814_v12 = vld [vmem:[#allocation82_spill] sm:$0xff] }
 0x3f9   : > { %v7508_v38 = vpack.c.bf16 %v8775_v5, %v8774_v40  ;;  %v3291_v40 = vand.u32 4294901760, %v3225_v31  ;;  %v7574_v5 = vpack.c.bf16 %v3339_v1, %v3336_v39 }
 0x3fb   : > { %4795 = vmatpush1.bf16.msra.mxu1 %v8728_v24  ;;  %8812 = vst [vmem:[#allocation77_spill] sm:$0xff] %v7574_v5 }
 0x3fc   : > { %4797 = vmatprep.subr.bf16.mxu1 %v8729_v34  ;;  %v8796_v34 = vand.u32 4294901760, %v8795_v26 }
 0x3ff   : > { %4799 = vmatpush1.bf16.msra.mxu1 %v8730_v4  ;;  %v8781_v4 = vld [vmem:[#allocation70_spill] sm:$0xff] }
 0x400   : > { %4801 = vmatprep.subr.bf16.mxu1 %v8731_v2 }
 0x403   : > { %4803 = vmatpush1.bf16.msra.mxu1 %v8732_v49 }
 0x404   : > { %4805 = vmatprep.subr.bf16.mxu1 %v8733_v52  ;;  %v8798_v52 = vld [vmem:[#allocation57_spill] sm:$0xff] }
 0x405   : > { %v8799_v45 = vand.u32 4294901760, %v8798_v52 }
 0x407   : > { %4807 = vmatpush1.bf16.msra.mxu1 %v8734_v32  ;;  %v8777_v32 = vld [vmem:[#allocation67_spill] sm:$0xff]  ;;  %v7551_v46 = vpack.c.bf16 %v8801_v28, %v8799_v45  ;;  %v7592_v45 = vsub.f32 %v3236_v41, %v3324_v7  ;;  %v7596_v28 = vsub.f32 %v3220_v61, %v3276_v19  ;;  %v7611_v41 = vsub.f32 %v3241_v0, %v3339_v1 }
 0x408   : > { %4809 = vmatprep.subr.bf16.mxu1 %v8735_v56  ;;  %v8778_v56 = vand.u32 4294901760, %v8777_v32  ;;  %v3242_v32 = vld [vmem:[#allocation7 + $0xf0] sm:$0xff]  ;;  %v7615_v7 = vsub.f32 %v3225_v31, %v3291_v40  ;;  %v3368_v1 = vand.u32 4294901760, %v3367_v57  ;;  %v8331_v31 = vand.u32 4294901760, %v8839_v22 }
 0x409   : > { %8802 = vst [vmem:[#allocation69_spill] sm:$0xff] %v7551_v46  ;;  %8819 = vst [vmem:[#allocation76_spill] sm:$0xff] %v7592_v45 }
 0x40a   : > { %v7515_v49 = vpack.c.bf16 %v8778_v56, %v8776_v44  ;;  %v7576_v44 = vpack.c.bf16 %v3291_v40, %v3288_v62  ;;  %v3243_v56 = vld [vmem:[#allocation7 + $0xf8] sm:$0xff]  ;;  %8821 = vst [vmem:[#allocation80_spill] sm:$0xff] %v7596_v28  ;;  %8828 = vst [vmem:[#allocation46_spill] sm:$0xff] %v7611_v41  ;;  %v8840_v62 = vld [vmem:[#allocation52_spill] sm:$0xff] }
 0x40b   : > { %4811 = vmatpush1.bf16.msra.mxu1 %v8736_v14  ;;  %8830 = vst [vmem:[#allocation49_spill] sm:$0xff] %v7615_v7  ;;  %v8332_v40 = vand.u32 4294901760, %v8840_v62 }
 0x40c   : > { %4813 = vmatprep.subr.bf16.mxu1 %v8737_v36  ;;  %v8779_v36 = vld [vmem:[#allocation74_spill] sm:$0xff]  ;;  %8813 = vst [vmem:[#allocation72_spill] sm:$0xff] %v7576_v44 }
 0x40d   : > { %v8780_v14 = vand.u32 4294901760, %v8779_v36  ;;  %v3342_v36 = vand.u32 4294901760, %v3242_v32 }
 0x40f   : > { %4815 = vmatpush1.bf16.msra.mxu1 %v8738_v25  ;;  %v7617_v13 = vsub.f32 %v3242_v32, %v3342_v36 }
 0x410   : > { %4817 = vmatprep.subr.bf16.mxu1 %v8739_v42  ;;  %v8782_v42 = vand.u32 4294901760, %v8781_v4  ;;  %v3226_v4 = vld [vmem:[#allocation7 + $0x70] sm:$0xff] }
 0x411   : > { %v3294_v59 = vand.u32 4294901760, %v3226_v4  ;;  %8831 = vst [vmem:[#allocation45_spill] sm:$0xff] %v7617_v13 }
 0x412   : > { %v7522_v24 = vpack.c.bf16 %v8782_v42, %v8780_v14  ;;  %v3345_v14 = vand.u32 4294901760, %v3243_v56  ;;  %v3227_v42 = vld [vmem:[#allocation7 + $0x78] sm:$0xff] }
 0x413   : > { %4819 = vmatpush1.bf16.msra.mxu1 %v8742_v47  ;;  %v8785_v47 = vld [vmem:[#allocation75_spill] sm:$0xff]  ;;  %v3297_v17 = vand.u32 4294901760, %v3227_v42  ;;  %v7623_v19 = vsub.f32 %v3226_v4, %v3294_v59  ;;  %v3388_v4 = vsub.f32 %v8839_v22, %v8331_v31 }
 0x414   : > { %4821 = vmatprep.subr.bf16.mxu1 %v7508_v38  ;;  %v8786_v58 = vand.u32 4294901760, %v8785_v47  ;;  %v8815_v47 = vld [vmem:[#allocation78_spill] sm:$0xff]  ;;  %v7619_v61 = vsub.f32 %v3243_v56, %v3345_v14 }
 0x415   : > { %v7621_v55 = vpack.c.bf16 %v3297_v17, %v3294_v59  ;;  %8834 = vst [vmem:[#allocation71_spill] sm:$0xff] %v7623_v19  ;;  %v7625_v54 = vsub.f32 %v3227_v42, %v3297_v17  ;;  %v3507_v42 = vsub.f32 %v8840_v62, %v8332_v40  ;;  %v8841_v59 = vld [vmem:[#allocation47_spill] sm:$0xff] }
 0x416   : > { %3204 = vmatmul.mubr.f32.vlgmr.msra.gmra.mrb[0].mxu1 %v7199_v35  ;;  %v7530_v25 = vpack.c.bf16 %v8786_v58, %v8784_v23  ;;  %v8794_v35 = vand.u32 4294901760, %v8793_v27  ;;  %v8327_v23 = vand.u32 4294901760, %v8814_v12  ;;  %v8328_v58 = vand.u32 4294901760, %v8815_v47  ;;  %8832 = vst [vmem:[#allocation62_spill] sm:$0xff] %v7619_v61 }
 0x417   : > { %4823 = vmatpush3.bf16.msra.mxu1 %v7515_v49  ;;  %v7583_v27 = vpack.c.bf16 %v3345_v14, %v3342_v36  ;;  %8833 = vst [vmem:[#allocation53_spill] sm:$0xff] %v7621_v55  ;;  %8835 = vst [vmem:[#allocation56_spill] sm:$0xff] %v7625_v54  ;;  %v8338_v17 = vand.u32 4294901760, %v8841_v59 }
 0x418   : > { %8787 = vst [vmem:[#allocation66_spill] sm:$0xff] %v7530_v25  ;;  %4825 = vmatprep.subr.bf16.mxu1 %v7522_v24  ;;  %v7544_v2 = vpack.c.bf16 %v8796_v34, %v8794_v35  ;;  %v3479_v35 = vsub.f32 %v8814_v12, %v8327_v23  ;;  %v3486_v26 = vsub.f32 %v8815_v47, %v8328_v58  ;;  %v8818_v34 = vld [vmem:[#allocation83_spill] sm:$0xff] }
 0x419   : > { %8817 = vst [vmem:[#allocation81_spill] sm:$0xff] %v7583_v27  ;;  %v8334_v52 = vand.u32 4294901760, %v8818_v34  ;;  %v7606_v23 = vsub.f32 %v3223_v29, %v3285_v33  ;;  %v7609_v58 = vsub.f32 %v3240_v21, %v3336_v39  ;;  %v8333_v29 = vand.u32 4294901760, %v8836_v63  ;;  %v8838_v21 = vld [vmem:[#allocation42_spill] sm:$0xff] }
 0x41a   : > { %8797 = vst [vmem:[#allocation35_spill] sm:$0xff] %v7544_v2  ;;  %v3480_v20 = vand.u32 4294901760, %v3479_v35  ;;  %v3487_v15 = vand.u32 4294901760, %v3486_v26  ;;  %v8329_v33 = vand.u32 4294901760, %v8837_v37  ;;  %v8330_v0 = vand.u32 4294901760, %v8838_v21  ;;  %v8842_v35 = vld [vmem:[#allocation28_spill] sm:$0xff] }
 0x41b   : > { %4827 = vmatpush3.bf16.msra.mxu1 %v7530_v25  ;;  %8826 = vst [vmem:[#allocation90_spill] sm:$0xff] %v7606_v23  ;;  %8827 = vst [vmem:[#allocation43_spill] sm:$0xff] %v7609_v58  ;;  %v3374_v3 = vsub.f32 %v8818_v34, %v8334_v52  ;;  %v3493_v56 = vsub.f32 %v8836_v63, %v8333_v29  ;;  %v8339_v26 = vand.u32 4294901760, %v8842_v35  ;;  %v8843_v29 = vld [vmem:[#allocation32_spill] sm:$0xff] }
 0x41c   : > { %4829 = vmatprep.subr.bf16.mxu1 %v7537_v48  ;;  %v4852_v39 = vpack.c.bf16 %v3487_v15, %v3480_v20  ;;  %v3500_v36 = vsub.f32 %v8837_v37, %v8329_v33  ;;  %v3381_v14 = vsub.f32 %v8838_v21, %v8330_v0  ;;  %v3389_v33 = vand.u32 4294901760, %v3388_v4 }
 0x41d   : > { %v3375_v32 = vand.u32 4294901760, %v3374_v3  ;;  %v3494_v15 = vand.u32 4294901760, %v3493_v56  ;;  %v3508_v0 = vand.u32 4294901760, %v3507_v42  ;;  %v3395_v31 = vsub.f32 %v8842_v35, %v8339_v26  ;;  %v8846_v42 = vld [vmem:[#allocation59_spill] sm:$0xff]  ;;  %v8847_v26 = vld [vmem:[#allocation34_spill] sm:$0xff] }
 0x41e   : > { %v3501_v57 = vand.u32 4294901760, %v3500_v36  ;;  %v3382_v3 = vand.u32 4294901760, %v3381_v14  ;;  %v8342_v52 = vand.u32 4294901760, %v8843_v29 }
 0x41f   : > { %4831 = vmatpush3.bf16.msra.mxu1 %v7544_v2  ;;  %v7656_v20 = vpack.c.bf16 %v3375_v32, %v3368_v1  ;;  %v8347_v1 = vand.u32 4294901760, %v8844_v18  ;;  %v8845_v32 = vld [vmem:[#allocation64_spill] sm:$0xff]  ;;  %v3396_v4 = vand.u32 4294901760, %v3395_v31 }
 0x420   : > { %4833 = vmatprep.subr.bf16.mxu1 %v7551_v46  ;;  %v7664_v40 = vpack.c.bf16 %v3501_v57, %v3494_v15  ;;  %v8348_v56 = vand.u32 4294901760, %v8845_v32  ;;  %v7669_v36 = vpack.c.bf16 %v3389_v33, %v3382_v3  ;;  %v8355_v3 = vand.u32 4294901760, %v7592_v45 }
 0x421   : > { %v3521_v15 = vsub.f32 %v8844_v18, %v8347_v1  ;;  %v8381_v46 = vand.u32 4294901760, %v7617_v13 }
 0x422   : > { %v3528_v57 = vsub.f32 %v8845_v32, %v8348_v56 }
 0x423   : > { %4835 = vmatpush3.bf16.msra.mxu1 %v7558_v16 }
 0x424   : > { %4837 = vmatprep.subr.bf16.mxu1 %v7562_v10  ;;  %v8375_v10 = vand.u32 4294901760, %v7613_v6 }
 0x427   : > { %4839 = vmatpush3.bf16.msra.mxu1 %v7564_v60 }
 0x428   : > { %4841 = vmatprep.subr.bf16.mxu1 %v7568_v8 }
 0x42b   : > { %4843 = vmatpush3.bf16.msra.mxu1 %v7570_v11 }
 0x42c   : > { %4845 = vmatprep.subr.bf16.mxu1 %v7574_v5  ;;  %v3529_v5 = vand.u32 4294901760, %v3528_v57  ;;  %v8359_v57 = vand.u32 4294901760, %v7598_v9 }
 0x42f   : > { %4847 = vmatpush3.bf16.msra.mxu1 %v7576_v44  ;;  %v3522_v44 = vand.u32 4294901760, %v3521_v15 }
 0x430   : > { %4849 = vmatprep.subr.bf16.mxu1 %v7583_v27  ;;  %v8354_v27 = vand.u32 4294901760, %v8847_v26 }
 0x432   : > { %v3416_v1 = vsub.f32 %v8847_v26, %v8354_v27 }
 0x433   : > { %4851 = vmatpush3.bf16.msra.mxu1 %v7621_v55  ;;  %v8349_v55 = vand.u32 4294901760, %v8846_v42 }
 0x434   : > { %4853 = vmatprep.subr.bf16.mxu1 %v4852_v39  ;;  %v3514_v39 = vsub.f32 %v8841_v59, %v8338_v17  ;;  %v3402_v17 = vsub.f32 %v8843_v29, %v8342_v52  ;;  %v3417_v15 = vand.u32 4294901760, %v3416_v1 }
 0x435   : > { %v3409_v31 = vsub.f32 %v8846_v42, %v8349_v55  ;;  %v8358_v55 = vand.u32 4294901760, %v7596_v28 }
 0x436   : > { %v3515_v14 = vand.u32 4294901760, %v3514_v39  ;;  %v8361_v39 = vand.u32 4294901760, %v7594_v53  ;;  %v3403_v52 = vand.u32 4294901760, %v3402_v17  ;;  %v7701_v17 = vpack.c.bf16 %v3529_v5, %v3522_v44 }
 0x437   : > { %v3410_v56 = vand.u32 4294901760, %v3409_v31  ;;  %v3423_v31 = vsub.f32 %v7596_v28, %v8358_v55  ;;  %v8364_v5 = vand.u32 4294901760, %v7602_v50  ;;  %v8365_v44 = vand.u32 4294901760, %v7604_v51 }
 0x438   : > { %v7682_v33 = vpack.c.bf16 %v3515_v14, %v3508_v0  ;;  %v3535_v0 = vsub.f32 %v7592_v45, %v8355_v3  ;;  %v3542_v14 = vsub.f32 %v7594_v53, %v8361_v39  ;;  %v7699_v11 = vpack.c.bf16 %v3403_v52, %v3396_v4 }
 0x439   : > { %v8360_v3 = vand.u32 4294901760, %v7600_v30  ;;  %v7708_v60 = vpack.c.bf16 %v3417_v15, %v3410_v56  ;;  %v3430_v52 = vsub.f32 %v7598_v9, %v8359_v57  ;;  %v3424_v4 = vand.u32 4294901760, %v3423_v31 }
 0x43a   : > { %v3536_v8 = vand.u32 4294901760, %v3535_v0  ;;  %v3543_v27 = vand.u32 4294901760, %v3542_v14  ;;  %v8366_v14 = vand.u32 4294901760, %v7606_v23  ;;  %v3556_v56 = vsub.f32 %v7602_v50, %v8364_v5 }
 0x43b   : > { %v3549_v0 = vsub.f32 %v7600_v30, %v8360_v3  ;;  %v3431_v55 = vand.u32 4294901760, %v3430_v52  ;;  %v3437_v15 = vsub.f32 %v7604_v51, %v8365_v44  ;;  %v8372_v31 = vand.u32 4294901760, %v7611_v41 }
 0x43c   : > { %v7715_v1 = vpack.c.bf16 %v3543_v27, %v3536_v8  ;;  %v3444_v8 = vsub.f32 %v7606_v23, %v8366_v14  ;;  %v8369_v27 = vand.u32 4294901760, %v7609_v58  ;;  %v3557_v52 = vand.u32 4294901760, %v3556_v56 }
 0x43d   : > { %v3550_v57 = vand.u32 4294901760, %v3549_v0  ;;  %v7732_v3 = vpack.c.bf16 %v3431_v55, %v3424_v4  ;;  %v3438_v39 = vand.u32 4294901760, %v3437_v15  ;;  %v3570_v0 = vsub.f32 %v7611_v41, %v8372_v31 }
 0x43e   : > { %v3445_v5 = vand.u32 4294901760, %v3444_v8  ;;  %v3563_v44 = vsub.f32 %v7609_v58, %v8369_v27  ;;  %v8376_v14 = vand.u32 4294901760, %v7615_v7  ;;  %v3451_v55 = vsub.f32 %v7613_v6, %v8375_v10 }
 0x43f   : > { %v7742_v16 = vpack.c.bf16 %v3557_v52, %v3550_v57  ;;  %v3571_v15 = vand.u32 4294901760, %v3570_v0  ;;  %v8382_v31 = vand.u32 4294901760, %v7619_v61  ;;  %v8383_v57 = vand.u32 4294901760, %v7623_v19 }
 0x440   : > { %v7747_v4 = vpack.c.bf16 %v3445_v5, %v3438_v39  ;;  %v3564_v56 = vand.u32 4294901760, %v3563_v44  ;;  %v3458_v8 = vsub.f32 %v7615_v7, %v8376_v14  ;;  %v3452_v27 = vand.u32 4294901760, %v3451_v55 }
 0x441   : > { %v8384_v10 = vand.u32 4294901760, %v7625_v54  ;;  %v3577_v39 = vsub.f32 %v7617_v13, %v8381_v46  ;;  %v3584_v5 = vsub.f32 %v7619_v61, %v8382_v31  ;;  %v3465_v44 = vsub.f32 %v7623_v19, %v8383_v57 }
 0x442   : > { %v7755_v52 = vpack.c.bf16 %v3571_v15, %v3564_v56  ;;  %v3459_v2 = vand.u32 4294901760, %v3458_v8  ;;  %v4884_v46 = vpack.c.bf16 %v8815_v47, %v8814_v12  ;;  %v4886_v31 = vpack.c.bf16 %v8818_v34, %v8816_v43 }
 0x443   : > { %v3472_v55 = vsub.f32 %v7625_v54, %v8384_v10  ;;  %v3578_v56 = vand.u32 4294901760, %v3577_v39  ;;  %v3585_v15 = vand.u32 4294901760, %v3584_v5  ;;  %v3466_v8 = vand.u32 4294901760, %v3465_v44 }
 0x444   : > { %v4878_v0 = vpack.c.bf16 %v3459_v2, %v3452_v27  ;;  %v4888_v57 = vpack.c.bf16 %v8837_v37, %v8836_v63  ;;  %v4890_v2 = vpack.c.bf16 %v8839_v22, %v8838_v21  ;;  %v4892_v27 = vpack.c.bf16 %v8841_v59, %v8840_v62 }
 0x445   : > { %v3473_v14 = vand.u32 4294901760, %v3472_v55  ;;  %v4880_v48 = vpack.c.bf16 %v3585_v15, %v3578_v56  ;;  %v4894_v39 = vpack.c.bf16 %v8843_v29, %v8842_v35  ;;  %v4898_v5 = vpack.c.bf16 %v8847_v26, %v8846_v42 }
 0x446   : > { %v4900_v44 = vpack.c.bf16 %v7594_v53, %v7592_v45  ;;  %v4902_v55 = vpack.c.bf16 %v7598_v9, %v7596_v28  ;;  %v4904_v56 = vpack.c.bf16 %v7602_v50, %v7600_v30  ;;  %v4906_v15 = vpack.c.bf16 %v7606_v23, %v7604_v51  ;;  %v2343_v50 = vld [vmem:[%s7990_s6] sm:$0x3] }
 0x447   : > { %v4882_v25 = vpack.c.bf16 %v3473_v14, %v3466_v8  ;;  %v4896_v14 = vpack.c.bf16 %v8845_v32, %v8844_v18  ;;  %v4908_v8 = vpack.c.bf16 %v7611_v41, %v7609_v58  ;;  %v4910_v10 = vpack.c.bf16 %v7615_v7, %v7613_v6 }
 0x448   : > { %v4912_v26 = vpack.c.bf16 %v7619_v61, %v7617_v13  ;;  %v4914_v53 = vpack.c.bf16 %v7625_v54, %v7623_v19  ;;  %v2345_v45 = vlaneseq }
 0x44a   : > { %v2346_v9 = vshrl.u32 %v2345_v45, 7 }
 0x44c   : > { %v2347_v28 = vsub.s32 0, %v2346_v9  ;;  %v2351_v23 = vsub.s32 1, %v2346_v9 }
 0x44e   : > { %v2348_v51 = vrot.slane %v2343_v50, %v2347_v28  ;;  %v2352_v30 = vrot.slane %v2343_v50, %v2351_v23  ;;  %v8856_v50 = vld [vmem:[#allocation37_spill] sm:$0xff] }
 0x4e9   : > { %v3205_v41 = vpop.f32.mrb[0].mxu1 }
 0x4ea   : > { %v5012_v58 = vadd.f32 %v3205_v41, %v2348_v51  ;;  %v3207_v42 = vpop.f32.mrb[1].mxu1  ;;  %v8857_v51 = vld [vmem:[#allocation77_spill] sm:$0xff]  ;;  %v8858_v41 = vld [vmem:[#allocation72_spill] sm:$0xff] }
 0x4eb   : > { %v5013_v7 = vadd.f32 %v3207_v42, %v2352_v30  ;;  %v8865_v42 = vand.u32 4294901760, %v8836_v63 }
 0x4ec   : > { %v3210_v6 = vmax.f32 %v5012_v58, 0.0 }
 0x4ed   : > { %v3211_v32 = vmax.f32 %v5013_v7, 0.0  ;;  %v8860_v7 = vand.u32 4294901760, %v8814_v12  ;;  %v8867_v12 = vand.u32 4294901760, %v8838_v21 }
 0x4ee   : > { %v7805_v61 = vand.u32 4294901760, %v3210_v6 }
 0x4ef   : > { %v7807_v13 = vand.u32 4294901760, %v3211_v32 }
 0x4f0   : > { %v7810_v45 = vsub.f32 %v3210_v6, %v7805_v61  ;;  %v8859_v6 = vld [vmem:[#allocation81_spill] sm:$0xff] }
 0x4f1   : > { %v3348_v54 = vsub.f32 %v3211_v32, %v7807_v13  ;;  %v8864_v32 = vand.u32 4294901760, %v8818_v34  ;;  %v8869_v34 = vand.u32 4294901760, %v8840_v62 }
 0x4f2   : > { %v3355_v19 = vand.u32 4294901760, %v7810_v45 }
 0x4f3   : > { %v3349_v9 = vand.u32 4294901760, %v3348_v54 }
 0x4f4   : > { %v3356_v23 = vsub.f32 %v7810_v45, %v3355_v19 }
 0x4f5   : > { %v3350_v28 = vsub.f32 %v3348_v54, %v3349_v9 }
 0x4f6   : > { %v3357_v58 = vand.u32 4294901760, %v3356_v23  ;;  %v8892_v23 = vld [vmem:[#allocation87_spill] sm:$0xff] }
 0x4f7   : > { %v3351_v30 = vand.u32 4294901760, %v3350_v28  ;;  %v8893_v28 = vand.u32 4294901760, %v8892_v23 }
 0x4f9   : > { %3352 = vmatprep.mubr.f32.mxu1 %v3351_v30  ;;  %v8894_v30 = vld [vmem:[#allocation90_spill] sm:$0xff] }
 0x4fa   : > { %3358 = vmatmul.mubr.f32.vlgmr.msra.gmra.mrb[2].mxu1 %v3357_v58  ;;  %v8895_v58 = vand.u32 4294901760, %v8894_v30 }
 0x4fb   : > { %4855 = vmatpush3.bf16.msra.mxu1 %v7656_v20  ;;  %3588 = vmatprep.mubr.f32.mxu1 %v7807_v13  ;;  %v8863_v20 = vand.u32 4294901760, %v8816_v43 }
 0x4fc   : > { %4857 = vmatprep.subr.bf16.mxu1 %v7664_v40 }
 0x4ff   : > { %4859 = vmatpush3.bf16.msra.mxu1 %v7669_v36  ;;  %v4950_v36 = vpack.c.bf16 %v8864_v32, %v8863_v20  ;;  %v8898_v20 = vld [vmem:[#allocation46_spill] sm:$0xff] }
 0x500   : > { %4861 = vmatprep.subr.bf16.mxu1 %v7682_v33  ;;  %v8866_v33 = vand.u32 4294901760, %v8837_v37  ;;  %v8871_v37 = vand.u32 4294901760, %v8842_v35  ;;  %v8899_v32 = vand.u32 4294901760, %v8898_v20 }
 0x503   : > { %4863 = vmatpush3.bf16.msra.mxu1 %v7699_v11  ;;  %v8854_v11 = vld [vmem:[#allocation73_spill] sm:$0xff] }
 0x504   : > { %4865 = vmatprep.subr.bf16.mxu1 %v7701_v17  ;;  %v8870_v17 = vand.u32 4294901760, %v8841_v59  ;;  %v8880_v59 = vld [vmem:[#allocation76_spill] sm:$0xff] }
 0x506   : > { %v4956_v63 = vpack.c.bf16 %v8870_v17, %v8869_v34  ;;  %v8906_v17 = vld [vmem:[#allocation62_spill] sm:$0xff] }
 0x507   : > { %4867 = vmatpush3.bf16.msra.mxu1 %v7708_v60  ;;  %v8853_v60 = vld [vmem:[#allocation36_spill] sm:$0xff] }
 0x508   : > { %4869 = vmatprep.subr.bf16.mxu1 %v7715_v1  ;;  %v8872_v1 = vand.u32 4294901760, %v8843_v29  ;;  %v8884_v29 = vld [vmem:[#allocation80_spill] sm:$0xff] }
 0x50b   : > { %4871 = vmatpush3.bf16.msra.mxu1 %v7732_v3  ;;  %v4952_v3 = vpack.c.bf16 %v8866_v33, %v8865_v42  ;;  %v8900_v42 = vld [vmem:[#allocation39_spill] sm:$0xff] }
 0x50c   : > { %4873 = vmatprep.subr.bf16.mxu1 %v7742_v16  ;;  %v8851_v16 = vld [vmem:[#allocation69_spill] sm:$0xff]  ;;  %v8901_v33 = vand.u32 4294901760, %v8900_v42 }
 0x50f   : > { %4875 = vmatpush3.bf16.msra.mxu1 %v7747_v4  ;;  %v8874_v4 = vld [vmem:[#allocation64_spill] sm:$0xff] }
 0x510   : > { %4877 = vmatprep.subr.bf16.mxu1 %v7755_v52  ;;  %v8875_v21 = vand.u32 4294901760, %v8874_v4 }
 0x513   : > { %4879 = vmatpush3.bf16.msra.mxu1 %v4878_v0  ;;  %v8878_v0 = vld [vmem:[#allocation34_spill] sm:$0xff] }
 0x514   : > { %4881 = vmatprep.subr.bf16.mxu1 %v4880_v48  ;;  %v8849_v48 = vld [vmem:[#allocation61_spill] sm:$0xff]  ;;  %v8879_v62 = vand.u32 4294901760, %v8878_v0 }
 0x517   : > { %4883 = vmatpush3.bf16.msra.mxu1 %v4882_v25  ;;  %v8848_v25 = vld [vmem:[#allocation66_spill] sm:$0xff] }
 0x518   : > { %4885 = vmatprep.subr.bf16.mxu1 %v4884_v46  ;;  %v8850_v46 = vld [vmem:[#allocation35_spill] sm:$0xff] }
 0x51a   : > { %3590 = vmatmul.mubr.f32.vlgmr.msra.gmra.mrb[4].mxu1 %v7805_v61 }
 0x51b   : > { %4887 = vmatpush3.bf16.msra.mxu1 %v4886_v31  ;;  %3725 = vmatprep.mubr.f32.mxu1 %v3348_v54  ;;  %v8861_v54 = vand.u32 4294901760, %v8815_v47  ;;  %v8868_v47 = vand.u32 4294901760, %v8839_v22  ;;  %v8873_v31 = vand.u32 4294901760, %v8844_v18  ;;  %v8876_v22 = vld [vmem:[#allocation59_spill] sm:$0xff] }
 0x51c   : > { %4889 = vmatprep.subr.bf16.mxu1 %v4888_v57  ;;  %v8877_v52 = vand.u32 4294901760, %v8876_v22 }
 0x51d   : > { %v4948_v40 = vpack.c.bf16 %v8861_v54, %v8860_v7  ;;  %v4954_v43 = vpack.c.bf16 %v8868_v47, %v8867_v12  ;;  %v4960_v57 = vpack.c.bf16 %v8875_v21, %v8873_v31  ;;  %v4970_v7 = vpack.c.bf16 %v8895_v58, %v8893_v28  ;;  %v8896_v54 = vld [vmem:[#allocation43_spill] sm:$0xff]  ;;  %v8910_v31 = vld [vmem:[#allocation56_spill] sm:$0xff] }
 0x51e   : > { %v8911_v4 = vand.u32 4294901760, %v8910_v31 }
 0x51f   : > { %4891 = vmatpush3.bf16.msra.mxu1 %v4890_v2  ;;  %v4962_v2 = vpack.c.bf16 %v8879_v62, %v8877_v52 }
 0x520   : > { %4893 = vmatprep.subr.bf16.mxu1 %v4892_v27  ;;  %v8881_v27 = vand.u32 4294901760, %v8880_v59 }
 0x523   : > { %4895 = vmatpush3.bf16.msra.mxu1 %v4894_v39  ;;  %v8882_v39 = vld [vmem:[#allocation85_spill] sm:$0xff] }
 0x524   : > { %4897 = vmatprep.subr.bf16.mxu1 %v4896_v14  ;;  %v8883_v35 = vand.u32 4294901760, %v8882_v39 }
 0x526   : > { %v4964_v14 = vpack.c.bf16 %v8883_v35, %v8881_v27 }
 0x527   : > { %4899 = vmatpush3.bf16.msra.mxu1 %v4898_v5  ;;  %v8885_v5 = vand.u32 4294901760, %v8884_v29 }
 0x528   : > { %4901 = vmatprep.subr.bf16.mxu1 %v4900_v44  ;;  %v8886_v44 = vld [vmem:[#allocation88_spill] sm:$0xff] }
 0x529   : > { %v8887_v18 = vand.u32 4294901760, %v8886_v44 }
 0x52b   : > { %4903 = vmatpush3.bf16.msra.mxu1 %v4902_v55  ;;  %v4966_v55 = vpack.c.bf16 %v8887_v18, %v8885_v5 }
 0x52c   : > { %4905 = vmatprep.subr.bf16.mxu1 %v4904_v56  ;;  %v8888_v56 = vld [vmem:[#allocation84_spill] sm:$0xff] }
 0x52f   : > { %4907 = vmatpush3.bf16.msra.mxu1 %v4906_v15  ;;  %v8889_v15 = vand.u32 4294901760, %v8888_v56 }
 0x530   : > { %4909 = vmatprep.subr.bf16.mxu1 %v4908_v8  ;;  %v8890_v8 = vld [vmem:[#allocation89_spill] sm:$0xff] }
 0x533   : > { %4911 = vmatpush3.bf16.msra.mxu1 %v4910_v10  ;;  %v8852_v10 = vld [vmem:[#allocation65_spill] sm:$0xff] }
 0x534   : > { %4913 = vmatprep.subr.bf16.mxu1 %v4912_v26  ;;  %v8862_v26 = vld [vmem:[#allocation53_spill] sm:$0xff] }
 0x537   : > { %4915 = vmatpush3.bf16.msra.mxu1 %v4914_v53  ;;  %v8855_v53 = vld [vmem:[#allocation68_spill] sm:$0xff] }
 0x538   : > { %4917 = vmatprep.subr.bf16.mxu1 %v7508_v38 }
 0x53a   : > { %3728 = vmatmul.mubr.f32.vlgmr.msra.gmra.mrb[6].mxu1 %v7810_v45  ;;  %v8891_v45 = vand.u32 4294901760, %v8890_v8 }
 0x53b   : > { %4919 = vmatpush3.bf16.msra.mxu1 %v7515_v49  ;;  %3832 = vmatprep.mubr.f32.mxu1 %v3349_v9 }
 0x53c   : > { %4921 = vmatprep.subr.bf16.mxu1 %v7522_v24  ;;  %v4968_v9 = vpack.c.bf16 %v8891_v45, %v8889_v15 }
 0x53f   : > { %4923 = vmatpush3.bf16.msra.mxu1 %v8848_v25 }
 0x540   : > { %4925 = vmatprep.subr.bf16.mxu1 %v8849_v48 }
 0x543   : > { %4927 = vmatpush3.bf16.msra.mxu1 %v8850_v46 }
 0x544   : > { %4929 = vmatprep.subr.bf16.mxu1 %v8851_v16 }
 0x547   : > { %4931 = vmatpush3.bf16.msra.mxu1 %v8852_v10 }
 0x548   : > { %4933 = vmatprep.subr.bf16.mxu1 %v8853_v60 }
 0x54b   : > { %4935 = vmatpush3.bf16.msra.mxu1 %v8854_v11 }
 0x54c   : > { %4937 = vmatprep.subr.bf16.mxu1 %v8855_v53 }
 0x54f   : > { %4939 = vmatpush3.bf16.msra.mxu1 %v8856_v50 }
 0x550   : > { %4941 = vmatprep.subr.bf16.mxu1 %v8857_v51 }
 0x553   : > { %4943 = vmatpush3.bf16.msra.mxu1 %v8858_v41 }
 0x554   : > { %4945 = vmatprep.subr.bf16.mxu1 %v8859_v6 }
 0x557   : > { %4947 = vmatpush3.bf16.msra.mxu1 %v8862_v26 }
 0x558   : > { %4949 = vmatprep.subr.bf16.mxu1 %v4948_v40  ;;  %v8897_v40 = vand.u32 4294901760, %v8896_v54 }
 0x55a   : > { %3836 = vmatmul.mubr.f32.vlgmr.msra.gmra.mrb[8].mxu1 %v3355_v19  ;;  %v4958_v19 = vpack.c.bf16 %v8872_v1, %v8871_v37  ;;  %v8908_v1 = vld [vmem:[#allocation71_spill] sm:$0xff] }
 0x55b   : > { %4951 = vmatpush3.bf16.msra.mxu1 %v4950_v36  ;;  %4002 = vmatprep.mubr.f32.mxu1 %v7807_v13  ;;  %v4972_v36 = vpack.c.bf16 %v8899_v32, %v8897_v40 }
 0x55c   : > { %4953 = vmatprep.subr.bf16.mxu1 %v4952_v3  ;;  %v8902_v3 = vld [vmem:[#allocation49_spill] sm:$0xff] }
 0x55d   : > { %v8903_v12 = vand.u32 4294901760, %v8902_v3 }
 0x55f   : > { %4955 = vmatpush3.bf16.msra.mxu1 %v4954_v43  ;;  %v4974_v47 = vpack.c.bf16 %v8903_v12, %v8901_v33  ;;  %v8904_v43 = vld [vmem:[#allocation45_spill] sm:$0xff] }
 0x560   : > { %4957 = vmatprep.subr.bf16.mxu1 %v4956_v63  ;;  %v8905_v34 = vand.u32 4294901760, %v8904_v43  ;;  %v8907_v63 = vand.u32 4294901760, %v8906_v17 }
 0x562   : > { %v4976_v37 = vpack.c.bf16 %v8907_v63, %v8905_v34 }
 0x563   : > { %4959 = vmatpush3.bf16.msra.mxu1 %v4958_v19  ;;  %v8909_v19 = vand.u32 4294901760, %v8908_v1 }
 0x564   : > { %4961 = vmatprep.subr.bf16.mxu1 %v4960_v57 }
 0x565   : > { %v4978_v21 = vpack.c.bf16 %v8911_v4, %v8909_v19 }
 0x567   : > { %4963 = vmatpush3.bf16.msra.mxu1 %v4962_v2 }
 0x568   : > { %4965 = vmatprep.subr.bf16.mxu1 %v4964_v14 }
 0x56b   : > { %4967 = vmatpush3.bf16.msra.mxu1 %v4966_v55 }
 0x56c   : > { %4969 = vmatprep.subr.bf16.mxu1 %v4968_v9 }
 0x56f   : > { %4971 = vmatpush3.bf16.msra.mxu1 %v4970_v7 }
 0x570   : > { %4973 = vmatprep.subr.bf16.mxu1 %v4972_v36 }
 0x573   : > { %4975 = vmatpush3.bf16.msra.mxu1 %v4974_v47 }
 0x574   : > { %4977 = vmatprep.subr.bf16.mxu1 %v4976_v37 }
 0x577   : > { %4979 = vmatpush3.bf16.msra.mxu1 %v4978_v21 }
 0x578   : > { %4981 = vmatprep.subr.bf16.mxu1 %v7508_v38 }
 0x57a   : > { %4004 = vmatmul.mubr.f32.vlgmr.msra.gmra.mrb[10].mxu1 %v7805_v61 }
 0x57b   : > { %4983 = vmatpush3.bf16.msra.mxu1 %v7515_v49  ;;  %4106 = vmatprep.mubr.f32.mxu1 %v7807_v13  ;;  %v4233_v13 = vld [vmem:[%s7992_s8] ss:$0 sm:$0xff] }
 0x57c   : > { %4985 = vmatprep.subr.bf16.mxu1 %v7522_v24 }
 0x57f   : > { %4987 = vmatpush3.bf16.msra.mxu1 %v8848_v25 }
 0x580   : > { %4989 = vmatprep.subr.bf16.mxu1 %v8849_v48 }
 0x583   : > { %4991 = vmatpush3.bf16.msra.mxu1 %v8850_v46 }
 0x584   : > { %4993 = vmatprep.subr.bf16.mxu1 %v8851_v16 }
 0x587   : > { %4995 = vmatpush3.bf16.msra.mxu1 %v8852_v10 }
 0x588   : > { %4997 = vmatprep.subr.bf16.mxu1 %v8853_v60 }
 0x58b   : > { %4999 = vmatpush3.bf16.msra.mxu1 %v8854_v11 }
 0x58c   : > { %5001 = vmatprep.subr.bf16.mxu1 %v8855_v53 }
 0x58f   : > { %5003 = vmatpush3.bf16.msra.mxu1 %v8856_v50 }
 0x590   : > { %5005 = vmatprep.subr.bf16.mxu1 %v8857_v51 }
 0x593   : > { %5007 = vmatpush3.bf16.msra.mxu1 %v8858_v41 }
 0x594   : > { %5009 = vmatprep.subr.bf16.mxu1 %v8859_v6 }
 0x597   : > { %5011 = vmatpush3.bf16.msra.mxu1 %v8862_v26 }
 0x59a   : > { %4108 = vmatmul.mubr.f32.vlgmr.msra.gmra.mrb[12].mxu1 %v7805_v61 }
 0x5cd   : > { %v4270_v38 = vpop.f32.mrb[2].mxu1 }
 0x5ce   : > { %v4271_v49 = vpop.f32.mrb[3].mxu1 }
 0x5cf   : > { %v4272_v24 = vadd.f32 %v4271_v49, %v4270_v38 }
 0x5d1   : > { %v3360_v46 = vadd.f32 %v4272_v24, %v4233_v13 }
 0x5ed   : > { %v4305_v25 = vpop.f32.mrb[4].mxu1 }
 0x5ee   : > { %v4306_v48 = vpop.f32.mrb[5].mxu1 }
 0x5ef   : > { %v4307_v16 = vadd.f32 %v4306_v48, %v4305_v25 }
 0x5f1   : > { %v3592_v10 = vadd.f32 %v4307_v16, %v3360_v46 }
 0x60d   : > { %v4340_v60 = vpop.f32.mrb[6].mxu1 }
 0x60e   : > { %v4341_v11 = vpop.f32.mrb[7].mxu1 }
 0x60f   : > { %v4342_v53 = vadd.f32 %v4341_v11, %v4340_v60 }
 0x611   : > { %v3730_v50 = vadd.f32 %v4342_v53, %v3592_v10 }
 0x62d   : > { %v4375_v51 = vpop.f32.mrb[8].mxu1 }
 0x62e   : > { %v4376_v61 = vpop.f32.mrb[9].mxu1 }
 0x62f   : > { %v4377_v41 = vadd.f32 %v4376_v61, %v4375_v51 }
 0x631   : > { %v3838_v6 = vadd.f32 %v4377_v41, %v3730_v50 }
 0x64d   : > { %v4410_v26 = vpop.f32.mrb[10].mxu1 }
 0x64e   : > { %v4411_v57 = vpop.f32.mrb[11].mxu1 }
 0x64f   : > { %v4412_v22 = vadd.f32 %v4411_v57, %v4410_v26 }
 0x651   : > { %v4006_v52 = vadd.f32 %v4412_v22, %v3838_v6 }
 0x66d   : > { %v4445_v0 = vpop.f32.mrb[12].mxu1 }
 0x66e   : > { %v4446_v62 = vpop.f32.mrb[13].mxu1 }
 0x66f   : > { %v4447_v2 = vadd.f32 %v4446_v62, %v4445_v0 }
 0x671   : > { %v4110_v59 = vadd.f32 %v4447_v2, %v4006_v52 }
 0x673   : > { %4113 = vst [vmem:[%s370_s26] sm:$0xff] %v4110_v59 }
 0x674   : > { %5358 = shalt.err (!%p5355_p9)
}
 0x675   : > { %s5359_s15 = scalar_lea.hbm %s7942_s24, 128  ;;  %s5363_s22 = scalar_lea.hbm %s7993_s9, 256 }
 0x676   : > { %p5360_p2 = scmp.ne.s32.totalorder %s7942_s24, %s5359_s15  ;;  %p5364_p5 = scmp.lt.u32.totalorder %s7942_s24, %s7993_s9 }
 0x677   : > { %p5365_p10 = scmp.lt.u32.totalorder %s5363_s22, %s5359_s15  ;;  %p5367_p12 = scmp.lt.u32.totalorder %s5359_s15, %s7942_s24 }
 0x678   : > { %p5361_p0 = pnand %p5360_p2, %p8912_p7 }
 0x679   : > { %p5366_p4 = por %p5365_p10, %p5364_p5 }
 0x67a   : > { %p5362_p3 = pneg %p5361_p0 }
 0x67b   : > { %p5368_p8 = por %p5367_p12, %p5366_p4 }
 0x67d   : > { %p5369_p11 = pnand %p5368_p8, %p5362_p3 }
 0x67f   : > { %5372 = shalt.err (!%p5369_p11)
}
 0x680   : > { %5196 = dma.vmem_to_hbm [thread:$0]  (%p8912_p7), %s7944_s30, 128, %s7942_s24, %s4115_s28  }
 0x681 PF: > { %s8913_s29 = sld [smem:[#allocation12_spill]]  ;;  %s8914_s23 = sld [smem:[#allocation16_spill]] }
 0x682   : > { %p5218_p13 = scmp.ge.s32.totalorder %s5415_s12, 2 }
 0x687   : > { %s4140_s26 = sand.u32 1, %s8913_s29   ;;  %p8915_p1 = scmp.ne.s32.totalorder %s8914_s23, 0 }
 0x688   : > { %s4141_s18 = scalar_lea.sflag [#allocation4], %s4140_s26 }
 0x689   : > { %p5209_p6 = pnand %p5218_p13, %p8915_p1 }
 0x68b   : > { %5398 = dma.done.wait (!%p5209_p6), %s4141_s18, 128  }
 0x68c   : > { %5400 = vsyncadd (!%p5209_p6), %s4141_s18, 4294967168  ;;  %s8916_s12 = sld [smem:[#allocation14_spill]]  ;;  %s8917_s21 = sld [smem:[#allocation13_spill]] }
 0x68d   : > { %s8918_s11 = sld [smem:[#allocation15_spill]]  ;;  %s8919_s30 = smov %s5407_s10 }
 0x692   : > { %p21_p9 = scmp.ge.s32.totalorder %s8916_s12, 4   ;;  %s8920_s10 = smov %s8917_s21 }
 0x694   :  { %23 = sbr.rel (!%p21_p9) target bundleno = 5 (0x5), region = 104 }
 0x69b   :  { %4146 = vsyncpa [#allocation3], 1 }
 0x69c   :  { %4148 = vsyncpa [#allocation3 + $0x1], 1 }
 0x69d   :  { %4149 = vsyncpa [#allocation6], 1 }
 0x69e   :  { %4150 = vsyncpa [#allocation4], 1 }
 0x69f   :  { %4152 = vsyncpa [#allocation4 + $0x1], 1 }

</bundles_post_ra>
